<compile_context>
chip_gen: v7x
topology: tpu7x:2x2x1
jax: 0.10.0
libtpu: 0.0.40
codegen_flags: <defaults>
</compile_context>

<pallas_src>
import functools

import jax
import jax.numpy as jnp
from jax.experimental import pallas as pl
from jax.experimental.pallas import tpu as pltpu

INPUT_SIZE = 1
OUTPUT_SIZE = 3476
DEFAULT_TN = 1792  # 3476 -> padded to 3584 = 2 tiles of 1792


def _round_up(x, m):
    return ((x + m - 1) // m) * m


def _predictor_kernel(x_ref, w1_ref, b1_ref, w2_ref, b2_ref, w3_ref, b3_ref,
                      wf1_ref, bf1_ref, wf2_ref, bf2_ref, out_ref):
    # --- tiny feature stack (conv1..3 center taps + fc1 + ReLU) -------------
    # Recomputed per output tile (negligible FLOPs) so the grid axis stays
    # dependence-free ("parallel").
    x = x_ref[...]                                                   # (Bp, 1)
    # conv1 (in_channels=1): broadcast multiply instead of a K=1 matmul.
    h1 = jnp.maximum(x * w1_ref[...] + b1_ref[...], 0.0)             # (Bp, 16)
    h2 = jnp.maximum(
        jnp.dot(h1, w2_ref[...], preferred_element_type=jnp.float32)
        + b2_ref[...], 0.0)                                          # (Bp, 32)
    h3 = jnp.maximum(
        jnp.dot(h2, w3_ref[...], preferred_element_type=jnp.float32)
        + b3_ref[...], 0.0)                                          # (Bp, 64)
    h = jnp.maximum(
        jnp.dot(h3, wf1_ref[...], preferred_element_type=jnp.float32)
        + bf1_ref[...], 0.0)                                         # (Bp, 1024)
    # Dropout(0.3): identity in eval mode.

    # --- fc2 tile: (Bp, 1024) @ (1024, TN), bf16 weight stream, f32 accum ---
    out_ref[...] = (
        jnp.dot(h.astype(wf2_ref.dtype), wf2_ref[...],
                preferred_element_type=jnp.float32)
        + bf2_ref[...]
    ).astype(out_ref.dtype)


def prepare_params(params, *, tn=DEFAULT_TN):
    """One-time weight preprocessing (transpose / pad / bf16 cast).

    Called once at init, NOT per forward call, so the per-call path only
    streams the already-laid-out fc2 weight from HBM.
    """
    n_out = params["fc2_w"].shape[0]
    n_pad = _round_up(n_out, tn)
    f32 = jnp.float32
    prepared = {
        "w1": params["conv1_w"][:, :, 1].T.astype(f32),        # (1, 16) center tap
        "b1": params["conv1_b"].reshape(1, -1).astype(f32),    # (1, 16)
        "w2": params["conv2_w"][:, :, 1].T.astype(f32),        # (16, 32)
        "b2": params["conv2_b"].reshape(1, -1).astype(f32),    # (1, 32)
        "w3": params["conv3_w"][:, :, 1].T.astype(f32),        # (32, 64)
        "b3": params["conv3_b"].reshape(1, -1).astype(f32),    # (1, 64)
        "wf1": params["fc1_w"].T.astype(f32),                  # (64, 1024)
        "bf1": params["fc1_b"].reshape(1, -1).astype(f32),     # (1, 1024)
        # fc2: pre-transposed to (in, out), padded to a multiple of tn, bf16.
        "wf2": jnp.pad(params["fc2_w"].T.astype(f32),
                       ((0, 0), (0, n_pad - n_out))).astype(jnp.bfloat16),
        "bf2": jnp.pad(params["fc2_b"].reshape(1, -1).astype(f32),
                       ((0, 0), (0, n_pad - n_out))),
    }
    return jax.tree_util.tree_map(jnp.asarray, prepared)


@functools.partial(jax.jit, static_argnames=("n_out", "tn"))
def temperature_predictor_forward(x, prepared, *, n_out=OUTPUT_SIZE,
                                  tn=DEFAULT_TN):
    """x: (B, 1, INPUT_SIZE) float32 in PyTorch NCL layout. Returns (B, n_out)."""
    B = x.shape[0]
    assert x.shape[1] == 1 and x.shape[2] == INPUT_SIZE
    xf = x.reshape(B, INPUT_SIZE).astype(jnp.float32)

    # Pad batch to a multiple of 8 so output tiles fill sublanes.
    Bp = max(8, _round_up(B, 8))
    xf = jnp.pad(xf, ((0, Bp - B), (0, 0)))

    wf2 = prepared["wf2"]
    hidden, n_pad = wf2.shape
    assert n_pad % tn == 0 and n_pad >= n_out

    def full_spec(arr):
        nd = arr.ndim
        return pl.BlockSpec(arr.shape, lambda j, nd=nd: (0,) * nd)

    out_pad = pl.pallas_call(
        _predictor_kernel,
        out_shape=jax.ShapeDtypeStruct((Bp, n_pad), jnp.float32),
        grid_spec=pltpu.PrefetchScalarGridSpec(
            num_scalar_prefetch=0,
            grid=(n_pad // tn,),
            in_specs=[
                full_spec(xf),
                full_spec(prepared["w1"]), full_spec(prepared["b1"]),
                full_spec(prepared["w2"]), full_spec(prepared["b2"]),
                full_spec(prepared["w3"]), full_spec(prepared["b3"]),
                full_spec(prepared["wf1"]), full_spec(prepared["bf1"]),
                pl.BlockSpec((hidden, tn), lambda j: (0, j)),
                pl.BlockSpec((1, tn), lambda j: (0, j)),
            ],
            out_specs=pl.BlockSpec((Bp, tn), lambda j: (0, j)),
        ),
        compiler_params=pltpu.CompilerParams(
            dimension_semantics=("parallel",)),
    )(xf, prepared["w1"], prepared["b1"], prepared["w2"], prepared["b2"],
      prepared["w3"], prepared["b3"], prepared["wf1"], prepared["bf1"],
      wf2, prepared["bf2"])

    return out_pad[:B, :n_out]


def init_params(key):
    ks = jax.random.split(key, 10)
    s = 0.05
    return {
        "conv1_w": s * jax.random.normal(ks[0], (16, 1, 3), jnp.float32),
        "conv1_b": s * jax.random.normal(ks[1], (16,), jnp.float32),
        "conv2_w": s * jax.random.normal(ks[2], (32, 16, 3), jnp.float32),
        "conv2_b": s * jax.random.normal(ks[3], (32,), jnp.float32),
        "conv3_w": s * jax.random.normal(ks[4], (64, 32, 3), jnp.float32),
        "conv3_b": s * jax.random.normal(ks[5], (64,), jnp.float32),
        "fc1_w": s * jax.random.normal(ks[6], (1024, 64 * INPUT_SIZE), jnp.float32),
        "fc1_b": s * jax.random.normal(ks[7], (1024,), jnp.float32),
        "fc2_w": s * jax.random.normal(ks[8], (OUTPUT_SIZE, 1024), jnp.float32),
        "fc2_b": s * jax.random.normal(ks[9], (OUTPUT_SIZE,), jnp.float32),
    }


def reference_forward(x, p):
    """Pure-JAX f32 reference with the same (L=1, center-tap) semantics."""
    B = x.shape[0]
    h = x.reshape(B, 1)
    h = jnp.maximum(h @ p["conv1_w"][:, :, 1].T + p["conv1_b"], 0.0)
    h = jnp.maximum(h @ p["conv2_w"][:, :, 1].T + p["conv2_b"], 0.0)
    h = jnp.maximum(h @ p["conv3_w"][:, :, 1].T + p["conv3_b"], 0.0)
    h = jnp.maximum(h @ p["fc1_w"].T + p["fc1_b"], 0.0)
    return h @ p["fc2_w"].T + p["fc2_b"]


if __name__ == "__main__":
    key = jax.random.PRNGKey(0)
    pkey, xkey = jax.random.split(key)
    params = init_params(pkey)

    # One-time weight layout / bf16 prep (outside the per-call path).
    prepared = jax.block_until_ready(prepare_params(params))

    B = 2
    # PyTorch NCL layout: (batch, channels=1, length=input_size=1)
    x = jax.random.normal(xkey, (B, 1, INPUT_SIZE), jnp.float32)

    out = temperature_predictor_forward(x, prepared)
    out = jax.block_until_ready(out)
    assert out.shape == (B, OUTPUT_SIZE), out.shape

    ref = reference_forward(x, params)
    # Slightly relaxed tolerance because fc2 weights are intentionally streamed
    # in bf16 (with f32 accumulation); observed error ~1e-4 at these scales.
    assert jnp.allclose(out, ref, atol=2e-3, rtol=2e-3), float(
        jnp.max(jnp.abs(out - ref)))

    print("KERNEL_OK")
</pallas_src>

<mosaic_0001>
module attributes {stable_mosaic.version = 11 : i64} {
  func.func @_predictor_kernel(%arg0: i32, %arg1: memref<8x1xf32, #tpu.memory_space<vmem>>, %arg2: memref<1x16xf32, #tpu.memory_space<vmem>>, %arg3: memref<1x16xf32, #tpu.memory_space<vmem>>, %arg4: memref<16x32xf32, #tpu.memory_space<vmem>>, %arg5: memref<1x32xf32, #tpu.memory_space<vmem>>, %arg6: memref<32x64xf32, #tpu.memory_space<vmem>>, %arg7: memref<1x64xf32, #tpu.memory_space<vmem>>, %arg8: memref<64x1024xf32, #tpu.memory_space<vmem>>, %arg9: memref<1x1024xf32, #tpu.memory_space<vmem>>, %arg10: memref<1024x1792xbf16, #tpu.memory_space<vmem>>, %arg11: memref<1x1792xf32, #tpu.memory_space<vmem>>, %arg12: memref<8x1792xf32, #tpu.memory_space<vmem>>) attributes {dimension_semantics = [#tpu.dimension_semantics<parallel>], iteration_bounds = array<i64: 2>, scalar_prefetch = 0 : i64, scratch_operands = 0 : i64, tpu.core_type = #tpu.core_type<tc>, window_params = [{pipeline_mode = #tpu.pipeline_mode<synchronous>, transform_indices = @transform_0, window_bounds = array<i64: 8, 1>}, {pipeline_mode = #tpu.pipeline_mode<synchronous>, transform_indices = @transform_1, window_bounds = array<i64: 1, 16>}, {pipeline_mode = #tpu.pipeline_mode<synchronous>, transform_indices = @transform_2, window_bounds = array<i64: 1, 16>}, {pipeline_mode = #tpu.pipeline_mode<synchronous>, transform_indices = @transform_3, window_bounds = array<i64: 16, 32>}, {pipeline_mode = #tpu.pipeline_mode<synchronous>, transform_indices = @transform_4, window_bounds = array<i64: 1, 32>}, {pipeline_mode = #tpu.pipeline_mode<synchronous>, transform_indices = @transform_5, window_bounds = array<i64: 32, 64>}, {pipeline_mode = #tpu.pipeline_mode<synchronous>, transform_indices = @transform_6, window_bounds = array<i64: 1, 64>}, {pipeline_mode = #tpu.pipeline_mode<synchronous>, transform_indices = @transform_7, window_bounds = array<i64: 64, 1024>}, {pipeline_mode = #tpu.pipeline_mode<synchronous>, transform_indices = @transform_8, window_bounds = array<i64: 1, 1024>}, {transform_indices = @transform_9, window_bounds = array<i64: 1024, 1792>}, {transform_indices = @transform_10, window_bounds = array<i64: 1, 1792>}, {transform_indices = @transform_11, window_bounds = array<i64: 8, 1792>}]} {
    %c0 = arith.constant 0 : index
    %c0_0 = arith.constant 0 : index
    %0 = vector.load %arg1[%c0, %c0_0] : memref<8x1xf32, #tpu.memory_space<vmem>>, vector<8x1xf32>
    %c0_1 = arith.constant 0 : index
    %c0_2 = arith.constant 0 : index
    %1 = vector.load %arg2[%c0_1, %c0_2] : memref<1x16xf32, #tpu.memory_space<vmem>>, vector<1x16xf32>
    %2 = vector.broadcast %0 : vector<8x1xf32> to vector<8x16xf32>
    %3 = vector.broadcast %1 : vector<1x16xf32> to vector<8x16xf32>
    %4 = arith.mulf %2, %3 : vector<8x16xf32>
    %c0_3 = arith.constant 0 : index
    %c0_4 = arith.constant 0 : index
    %5 = vector.load %arg3[%c0_3, %c0_4] : memref<1x16xf32, #tpu.memory_space<vmem>>, vector<1x16xf32>
    %6 = vector.broadcast %5 : vector<1x16xf32> to vector<8x16xf32>
    %7 = arith.addf %4, %6 : vector<8x16xf32>
    %cst = arith.constant 0.000000e+00 : f32
    %8 = vector.broadcast %cst : f32 to vector<8x16xf32>
    %9 = arith.maximumf %7, %8 : vector<8x16xf32>
    %c0_5 = arith.constant 0 : index
    %c0_6 = arith.constant 0 : index
    %10 = vector.load %arg4[%c0_5, %c0_6] : memref<16x32xf32, #tpu.memory_space<vmem>>, vector<16x32xf32>
    %cst_7 = arith.constant dense<0.000000e+00> : vector<8x32xf32>
    %11 = tpu.matmul %9, %10, %cst_7 {dimension_numbers = #tpu.dot_dimension_numbers<[1], [0], [0], [1], [0, 0, 1, 1], [], []>} : vector<8x16xf32>, vector<16x32xf32>, vector<8x32xf32> -> vector<8x32xf32>
    %c0_8 = arith.constant 0 : index
    %c0_9 = arith.constant 0 : index
    %12 = vector.load %arg5[%c0_8, %c0_9] : memref<1x32xf32, #tpu.memory_space<vmem>>, vector<1x32xf32>
    %13 = vector.broadcast %12 : vector<1x32xf32> to vector<8x32xf32>
    %14 = arith.addf %11, %13 : vector<8x32xf32>
    %cst_10 = arith.constant 0.000000e+00 : f32
    %15 = vector.broadcast %cst_10 : f32 to vector<8x32xf32>
    %16 = arith.maximumf %14, %15 : vector<8x32xf32>
    %c0_11 = arith.constant 0 : index
    %c0_12 = arith.constant 0 : index
    %17 = vector.load %arg6[%c0_11, %c0_12] : memref<32x64xf32, #tpu.memory_space<vmem>>, vector<32x64xf32>
    %cst_13 = arith.constant dense<0.000000e+00> : vector<8x64xf32>
    %18 = tpu.matmul %16, %17, %cst_13 {dimension_numbers = #tpu.dot_dimension_numbers<[1], [0], [0], [1], [0, 0, 1, 1], [], []>} : vector<8x32xf32>, vector<32x64xf32>, vector<8x64xf32> -> vector<8x64xf32>
    %c0_14 = arith.constant 0 : index
    %c0_15 = arith.constant 0 : index
    %19 = vector.load %arg7[%c0_14, %c0_15] : memref<1x64xf32, #tpu.memory_space<vmem>>, vector<1x64xf32>
    %20 = vector.broadcast %19 : vector<1x64xf32> to vector<8x64xf32>
    %21 = arith.addf %18, %20 : vector<8x64xf32>
    %cst_16 = arith.constant 0.000000e+00 : f32
    %22 = vector.broadcast %cst_16 : f32 to vector<8x64xf32>
    %23 = arith.maximumf %21, %22 : vector<8x64xf32>
    %c0_17 = arith.constant 0 : index
    %c0_18 = arith.constant 0 : index
    %24 = vector.load %arg8[%c0_17, %c0_18] : memref<64x1024xf32, #tpu.memory_space<vmem>>, vector<64x1024xf32>
    %cst_19 = arith.constant dense<0.000000e+00> : vector<8x1024xf32>
    %25 = tpu.matmul %23, %24, %cst_19 {dimension_numbers = #tpu.dot_dimension_numbers<[1], [0], [0], [1], [0, 0, 1, 1], [], []>} : vector<8x64xf32>, vector<64x1024xf32>, vector<8x1024xf32> -> vector<8x1024xf32>
    %c0_20 = arith.constant 0 : index
    %c0_21 = arith.constant 0 : index
    %26 = vector.load %arg9[%c0_20, %c0_21] : memref<1x1024xf32, #tpu.memory_space<vmem>>, vector<1x1024xf32>
    %27 = vector.broadcast %26 : vector<1x1024xf32> to vector<8x1024xf32>
    %28 = arith.addf %25, %27 : vector<8x1024xf32>
    %cst_22 = arith.constant 0.000000e+00 : f32
    %29 = vector.broadcast %cst_22 : f32 to vector<8x1024xf32>
    %30 = arith.maximumf %28, %29 : vector<8x1024xf32>
    %31 = arith.truncf %30 : vector<8x1024xf32> to vector<8x1024xbf16>
    %c0_23 = arith.constant 0 : index
    %c0_24 = arith.constant 0 : index
    %32 = vector.load %arg10[%c0_23, %c0_24] : memref<1024x1792xbf16, #tpu.memory_space<vmem>>, vector<1024x1792xbf16>
    %cst_25 = arith.constant dense<0.000000e+00> : vector<8x1792xf32>
    %33 = tpu.matmul %31, %32, %cst_25 {dimension_numbers = #tpu.dot_dimension_numbers<[1], [0], [0], [1], [0, 0, 1, 1], [], []>} : vector<8x1024xbf16>, vector<1024x1792xbf16>, vector<8x1792xf32> -> vector<8x1792xf32>
    %c0_26 = arith.constant 0 : index
    %c0_27 = arith.constant 0 : index
    %34 = vector.load %arg11[%c0_26, %c0_27] : memref<1x1792xf32, #tpu.memory_space<vmem>>, vector<1x1792xf32>
    %35 = vector.broadcast %34 : vector<1x1792xf32> to vector<8x1792xf32>
    %36 = arith.addf %33, %35 : vector<8x1792xf32>
    %c0_28 = arith.constant 0 : index
    %c0_29 = arith.constant 0 : index
    %37 = vector.load %arg12[%c0_28, %c0_29] : memref<8x1792xf32, #tpu.memory_space<vmem>>, vector<8x1792xf32>
    tpu.vector_store %arg12[%c0_28, %c0_29], %36 {strides = array<i32>} : memref<8x1792xf32, #tpu.memory_space<vmem>>, vector<8x1792xf32>,
    return
  }
  func.func @transform_0(%arg0: i32) -> (i32, i32) {
    %c0_i32 = arith.constant 0 : i32
    %c0_i32_0 = arith.constant 0 : i32
    %c0_i32_1 = arith.constant 0 : i32
    return %c0_i32, %c0_i32_0 : i32, i32
  }
  func.func @transform_1(%arg0: i32) -> (i32, i32) {
    %c0_i32 = arith.constant 0 : i32
    %c0_i32_0 = arith.constant 0 : i32
    %c0_i32_1 = arith.constant 0 : i32
    return %c0_i32, %c0_i32_0 : i32, i32
  }
  func.func @transform_2(%arg0: i32) -> (i32, i32) {
    %c0_i32 = arith.constant 0 : i32
    %c0_i32_0 = arith.constant 0 : i32
    %c0_i32_1 = arith.constant 0 : i32
    return %c0_i32, %c0_i32_0 : i32, i32
  }
  func.func @transform_3(%arg0: i32) -> (i32, i32) {
    %c0_i32 = arith.constant 0 : i32
    %c0_i32_0 = arith.constant 0 : i32
    %c0_i32_1 = arith.constant 0 : i32
    return %c0_i32, %c0_i32_0 : i32, i32
  }
  func.func @transform_4(%arg0: i32) -> (i32, i32) {
    %c0_i32 = arith.constant 0 : i32
    %c0_i32_0 = arith.constant 0 : i32
    %c0_i32_1 = arith.constant 0 : i32
    return %c0_i32, %c0_i32_0 : i32, i32
  }
  func.func @transform_5(%arg0: i32) -> (i32, i32) {
    %c0_i32 = arith.constant 0 : i32
    %c0_i32_0 = arith.constant 0 : i32
    %c0_i32_1 = arith.constant 0 : i32
    return %c0_i32, %c0_i32_0 : i32, i32
  }
  func.func @transform_6(%arg0: i32) -> (i32, i32) {
    %c0_i32 = arith.constant 0 : i32
    %c0_i32_0 = arith.constant 0 : i32
    %c0_i32_1 = arith.constant 0 : i32
    return %c0_i32, %c0_i32_0 : i32, i32
  }
  func.func @transform_7(%arg0: i32) -> (i32, i32) {
    %c0_i32 = arith.constant 0 : i32
    %c0_i32_0 = arith.constant 0 : i32
    %c0_i32_1 = arith.constant 0 : i32
    return %c0_i32, %c0_i32_0 : i32, i32
  }
  func.func @transform_8(%arg0: i32) -> (i32, i32) {
    %c0_i32 = arith.constant 0 : i32
    %c0_i32_0 = arith.constant 0 : i32
    %c0_i32_1 = arith.constant 0 : i32
    return %c0_i32, %c0_i32_0 : i32, i32
  }
  func.func @transform_9(%arg0: i32) -> (i32, i32) {
    %c0_i32 = arith.constant 0 : i32
    %c0_i32_0 = arith.constant 0 : i32
    return %c0_i32, %arg0 : i32, i32
  }
  func.func @transform_10(%arg0: i32) -> (i32, i32) {
    %c0_i32 = arith.constant 0 : i32
    %c0_i32_0 = arith.constant 0 : i32
    return %c0_i32, %arg0 : i32, i32
  }
  func.func @transform_11(%arg0: i32) -> (i32, i32) {
    %c0_i32 = arith.constant 0 : i32
    %c0_i32_0 = arith.constant 0 : i32
    return %c0_i32, %arg0 : i32, i32
  }
}

</mosaic_0001>

<bundles_post_ra>
// kernel: temperature_predictor_forward.1
= control target key start
LH: loop header
LB: loop body
LE: loop exit
PB: predicated region body
PF: predicated region fallthrough
CT: control target
= control target key end

     0   :  { %s12398_s0 = inlined_call_operand.vmem [shape: f32[8,1], index: 0, kind: input, shape index: {}]   ;;  %s12399_s1 = inlined_call_operand.hbm [shape: f32[1,16], index: 1, kind: input, shape index: {}]   ;;  %s12400_s2 = inlined_call_operand.hbm [shape: f32[1,16], index: 2, kind: input, shape index: {}]   ;;  %s12401_s3 = inlined_call_operand.hbm [shape: f32[16,32], index: 3, kind: input, shape index: {}]   ;;  %s12402_s4 = inlined_call_operand.hbm [shape: f32[1,32], index: 4, kind: input, shape index: {}]   ;;  %s12403_s5 = inlined_call_operand.hbm [shape: f32[32,64], index: 5, kind: input, shape index: {}]   ;;  %s12404_s6 = inlined_call_operand.hbm [shape: f32[1,64], index: 6, kind: input, shape index: {}]   ;;  %s12405_s7 = inlined_call_operand.hbm [shape: f32[64,1024], index: 7, kind: input, shape index: {}]   ;;  %s12406_s8 = inlined_call_operand.hbm [shape: f32[1,1024], index: 8, kind: input, shape index: {}]   ;;  %s12407_s9 = inlined_call_operand.hbm [shape: bf16[1024,3584], index: 9, kind: input, shape index: {}]   ;;  %s12408_s10 = inlined_call_operand.hbm [shape: f32[1,3584], index: 10, kind: input, shape index: {}]   ;;  %s12409_s11 = inlined_call_operand.vmem [shape: f32[8,3584], index: 11, kind: output, shape index: {}]  }
   0x1   :  { %12421 = sst [smem:[#allocation25_spill]] %s12398_s0 }
   0x2   :  { %12422 = sst [smem:[#allocation26_spill]] %s12399_s1 }
   0x3   :  { %12423 = sst [smem:[#allocation27_spill]] %s12400_s2 }
   0x4   :  { %12424 = sst [smem:[#allocation28_spill]] %s12402_s4 }
   0x5   :  { %12425 = sst [smem:[#allocation29_spill]] %s12404_s6 }
   0x6   :  { %12426 = sst [smem:[#allocation30_spill]] %s12407_s9 }
   0x7   :  { %12427 = sst [smem:[#allocation31_spill]] %s12409_s11 }
   0x8   :  { %16 = vsyncpa [#allocation3], 0 }
   0x9   :  { %17 = vsyncpa [#allocation5], 0 }
   0xa   :  { %18 = vsyncpa [#allocation8], 0 }
   0xb   :  { %19 = vsyncpa [#allocation11], 0 }
   0xc   :  { %20 = vsyncpa [#allocation14], 0  ;;  %s10964_s17 = smov 0   ;;  %s10966_s18 = smov 0  }
   0xd   :  { %s10968_s19 = smov 0   ;;  %s10970_s20 = smov 0  }
   0xe LB: > { %s10883_s21 = smov [#allocation2]   ;;  %s10985_s23 = sadd.s32 4294967295, %s10881_s20   ;;  %s10881_s20 = sphi %s10970_s20, %s12460_s20   ;;  %s10877_s19 = sphi %s10968_s19, %s12464_s19   ;;  %s10873_s18 = sphi %s10966_s18, %s12463_s18   ;;  %s10869_s17 = sphi %s10964_s17, %s12462_s17  }
   0xf   : > { %s314_s22 = sshll.u32 %s10883_s21, 4  ;;  %p7929_p0 = scmp.ge.s32.totalorder %s10881_s20, 1  ;;  %s10990_s22 = int_to_ptr.vmem [resolvable:$true] %s314_s22 }
  0x10   : > { %p12410_p1 = scmp.eq.s32.totalorder %s10985_s23, 0  ;;  %p298_p2 = scmp.lt.s32.totalorder %s10881_s20, 3 }
  0x11   : > { %s10884_s25 = smov [#allocation4]   ;;  %s10885_s27 = smov [#allocation7]  }
  0x12   : > { %p10992_p3 = pnand %p7929_p0, %p298_p2  ;;  %s325_s26 = sshll.u32 %s10884_s25, 4  ;;  %s10998_s26 = int_to_ptr.vmem [resolvable:$true] %s325_s26 }
  0x13   : > { %s349_s28 = sshll.u32 %s10885_s27, 4  ;;  %s10886_s30 = smov [#allocation10]   ;;  %s11006_s28 = int_to_ptr.vmem [resolvable:$true] %s349_s28 }
  0x14   : > { %s12428_s24 = scalar_select %p10992_p3, 1, 0 }
  0x15   : > { %p9096_p4 = pneg %p10992_p3  ;;  %s11008_s12 = sshll.u32 %s10886_s30, 4  ;;  %s374_s12 = int_to_ptr.vmem [resolvable:$true] %s11008_s12 }
  0x16   : > { %s12430_s1 = sld [smem:[#allocation26_spill]] }
  0x17   : > { %p11002_p5 = pnand %p9096_p4, %p12410_p1 }
  0x19   : > { %s12429_s29 = scalar_select %p11002_p5, 1, 0 }
  0x1a   : > { %p11018_p7 = pneg %p11002_p5 }
  0x1c   : > { %s10543_s15 = scalar_lea.hbm %s12430_s1, 16 }
  0x1d   : > { %p10544_p6 = scmp.ne.s32.totalorder %s12430_s1, %s10543_s15  ;;  %p10550_p10 = scmp.lt.u32.totalorder %s10543_s15, %s12430_s1 }
  0x1f   : > { %p10546_p8 = pnand %p11018_p7, %p10544_p6 }
  0x21   : > { %p10547_p9 = pneg %p10546_p8 }
  0x23   : > { %p10552_p11 = pnand %p10550_p10, %p10547_p9 }
  0x25   : > { %10555 = shalt.err (!%p10552_p11)
}
  0x26   : > { %s10556_s13 = scalar_lea.vmem %s10990_s22, 16  ;;  %s10563_s14 = scalar_lea.vmem %s10990_s22, 32 }
  0x27   : > { %p10557_p12 = scmp.ne.s32.totalorder %s10990_s22, %s10556_s13  ;;  %p10564_p2 = scmp.lt.s32.totalorder %s10990_s22, %s10990_s22 }
  0x28   : > { %p10565_p4 = scmp.lt.s32.totalorder %s10563_s14, %s10556_s13 }
  0x29   : > { %p10559_p13 = pnand %p10557_p12, %p11018_p7 }
  0x2a   : > { %p10566_p6 = por %p10565_p4, %p10564_p2 }
  0x2b   : > { %p10560_p0 = pneg %p10559_p13 }
  0x2d   : > { %p10567_p8 = pnand %p10566_p6, %p10560_p0 }
  0x2f   : > { %10570 = shalt.err (!%p10567_p8)
}
  0x30   : > { %9099 = dma.hbm_to_vmem [thread:$0]  (!%p11002_p5), %s12430_s1, 16, %s10990_s22, [#allocation3]  }
  0x31   : > { %s12432_s2 = sld [smem:[#allocation27_spill]] }
  0x37   : > { %s10571_s30 = scalar_lea.hbm %s12432_s2, 16 }
  0x38   : > { %p10572_p9 = scmp.ne.s32.totalorder %s12432_s2, %s10571_s30  ;;  %p10578_p12 = scmp.lt.u32.totalorder %s10571_s30, %s12432_s2 }
  0x3a   : > { %p10574_p10 = pnand %p10572_p9, %p11018_p7 }
  0x3c   : > { %p10575_p11 = pneg %p10574_p10 }
  0x3e   : > { %p10580_p13 = pnand %p10578_p12, %p10575_p11 }
  0x40   : > { %10583 = shalt.err (!%p10580_p13)
}
  0x41   : > { %s10584_s22 = scalar_lea.vmem %s10998_s26, 16  ;;  %s10591_s0 = scalar_lea.vmem %s10998_s26, 32 }
  0x42   : > { %p10585_p0 = scmp.ne.s32.totalorder %s10998_s26, %s10584_s22  ;;  %p10592_p6 = scmp.lt.s32.totalorder %s10998_s26, %s10998_s26 }
  0x43   : > { %p10593_p8 = scmp.lt.s32.totalorder %s10591_s0, %s10584_s22 }
  0x44   : > { %p10587_p2 = pnand %p10585_p0, %p11018_p7 }
  0x45   : > { %p10594_p9 = por %p10593_p8, %p10592_p6 }
  0x46   : > { %p10588_p4 = pneg %p10587_p2 }
  0x48   : > { %p10595_p10 = pnand %p10594_p9, %p10588_p4 }
  0x4a   : > { %10598 = shalt.err (!%p10595_p10)
}
  0x4b   : > { %9102 = dma.hbm_to_vmem [thread:$0]  (!%p11002_p5), %s12432_s2, 16, %s10998_s26, [#allocation5]  }
  0x4c   : > { %s12433_s4 = sld [smem:[#allocation28_spill]] }
  0x52   : > { %s10599_s27 = scalar_lea.hbm %s12433_s4, 16 }
  0x53   : > { %p10600_p11 = scmp.ne.s32.totalorder %s12433_s4, %s10599_s27  ;;  %p10606_p0 = scmp.lt.u32.totalorder %s10599_s27, %s12433_s4 }
  0x55   : > { %p10602_p12 = pnand %p10600_p11, %p11018_p7 }
  0x57   : > { %p10603_p13 = pneg %p10602_p12 }
  0x59   : > { %p10608_p2 = pnand %p10606_p0, %p10603_p13 }
  0x5b   : > { %10611 = shalt.err (!%p10608_p2)
}
  0x5c   : > { %s10612_s26 = scalar_lea.vmem %s11006_s28, 16  ;;  %s10619_s0 = scalar_lea.vmem %s11006_s28, 32 }
  0x5d   : > { %p10613_p4 = scmp.ne.s32.totalorder %s11006_s28, %s10612_s26  ;;  %p10620_p9 = scmp.lt.s32.totalorder %s11006_s28, %s11006_s28 }
  0x5e   : > { %p10621_p10 = scmp.lt.s32.totalorder %s10619_s0, %s10612_s26 }
  0x5f   : > { %p10615_p6 = pnand %p10613_p4, %p11018_p7 }
  0x60   : > { %p10622_p11 = por %p10621_p10, %p10620_p9 }
  0x61   : > { %p10616_p8 = pneg %p10615_p6 }
  0x63   : > { %p10623_p12 = pnand %p10622_p11, %p10616_p8 }
  0x65   : > { %10626 = shalt.err (!%p10623_p12)
}
  0x66   : > { %9108 = dma.hbm_to_vmem [thread:$0]  (!%p11002_p5), %s12433_s4, 16, %s11006_s28, [#allocation8]  }
  0x67   : > { %s12434_s6 = sld [smem:[#allocation29_spill]] }
  0x6d   : > { %s10627_s27 = scalar_lea.hbm %s12434_s6, 16 }
  0x6e   : > { %p10628_p13 = scmp.ne.s32.totalorder %s12434_s6, %s10627_s27  ;;  %p10634_p4 = scmp.lt.u32.totalorder %s10627_s27, %s12434_s6 }
  0x70   : > { %p10630_p0 = pnand %p10628_p13, %p11018_p7 }
  0x72   : > { %p10631_p2 = pneg %p10630_p0 }
  0x74   : > { %p10636_p6 = pnand %p10634_p4, %p10631_p2 }
  0x76   : > { %10639 = shalt.err (!%p10636_p6)
}
  0x77   : > { %s10640_s26 = scalar_lea.vmem %s374_s12, 16  ;;  %s10647_s28 = scalar_lea.vmem %s374_s12, 32 }
  0x78   : > { %p10641_p8 = scmp.ne.s32.totalorder %s374_s12, %s10640_s26  ;;  %p10648_p11 = scmp.lt.s32.totalorder %s374_s12, %s374_s12 }
  0x79   : > { %p10649_p12 = scmp.lt.s32.totalorder %s10647_s28, %s10640_s26 }
  0x7a   : > { %p10643_p9 = pnand %p10641_p8, %p11018_p7 }
  0x7b   : > { %p10650_p1 = por %p10649_p12, %p10648_p11 }
  0x7c   : > { %p10644_p10 = pneg %p10643_p9 }
  0x7e   : > { %p10651_p3 = pnand %p10650_p1, %p10644_p10 }
  0x80   : > { %10654 = shalt.err (!%p10651_p3)
}
  0x81   : > { %9114 = dma.hbm_to_vmem [thread:$0]  (!%p11002_p5), %s12434_s6, 16, %s374_s12, [#allocation11]  }
  0x82   : > { %s11108_s15 = sadd.s32 1, %s10881_s20   ;;  %s222_s16 = sadd.s32 1, %s10877_s19 }
  0x83   : > { %12435 = sst [smem:[#allocation23_spill]] %s11108_s15  ;;  %s219_s21 = ssub.s32 %s10881_s20, %s11108_s15 }
  0x84   : > { %p229_p1 = scmp.ne.s32.totalorder %s10877_s19, %s10873_s18  ;;  %p220_p3 = scmp.eq.s32.totalorder %s219_s21, 0 }
  0x85   : > { %p230_p13 = scmp.eq.s32.totalorder %s10881_s20, 0  ;;  %p235_p0 = scmp.ne.s32.totalorder %s10873_s18, %s10869_s17 }
  0x86   : > { %p9136_p2 = scmp.lt.s32.totalorder %s10881_s20, 2  ;;  %p12437_p6 = scmp.eq.s32.totalorder %s10985_s23, 0 }
  0x87   : > { %s11120_s27 = scalar_select %p220_p3, %s10877_s19, %s222_s16  }
  0x88   : > { %p231_p4 = por %p230_p13, %p229_p1  ;;  %p11124_p8 = por %p12437_p6, %p235_p0 }
  0x89   : > { %12436 = sst [smem:[#allocation24_spill]] %s11120_s27  ;;  %s408_s13 = sand.u32 1, %s10881_s20  }
  0x8a   : > { %s12438_s30 = scalar_select %p11124_p8, 1, 0 }
  0x8b   : > { %s12412_s12 = sand.u32 1, %s10877_s19   ;;  %s8859_s22 = smul.u32 896, %s10881_s20 }
  0x8c   : > { %s9056_s14 = smul.u32 7168, %s12412_s12  ;;  %p11133_p9 = pnand %p9136_p2, %p231_p4 }
  0x8d   : > { %s12440_s9 = sld [smem:[#allocation30_spill]]  ;;  %s11144_s21 = scalar_lea.sflag [#allocation3], %s408_s13 }
  0x8e   : > { %s12439_s26 = scalar_select %p11133_p9, 1, 0 }
  0x8f   : > { %s412_s11 = scalar_lea.vmem [#allocation15], %s9056_s14  ;;  %p12416_p11 = pneg %p11133_p9 }
  0x90   : > { %s419_s16 = sshll.u32 %s412_s11, 4  ;;  %s11142_s16 = int_to_ptr.vmem [resolvable:$true] %s419_s16 }
  0x93   : > { %s11140_s0 = scalar_lea.hbm %s12440_s9, %s8859_s22  ;;  %s10660_s17 = scalar_lea.hbm %s12440_s9, 229376 }
  0x94   : > { %s10655_s12 = scalar_lea.hbm %s11140_s0, 114688  ;;  %p10661_p3 = scmp.lt.u32.totalorder %s11140_s0, %s12440_s9 }
  0x95   : > { %p10656_p10 = scmp.ne.s32.totalorder %s11140_s0, %s10655_s12  ;;  %p10662_p13 = scmp.lt.u32.totalorder %s10660_s17, %s10655_s12 }
  0x96   : > { %p10664_p2 = scmp.lt.u32.totalorder %s10655_s12, %s11140_s0 }
  0x97   : > { %p10658_p12 = pnand %p12416_p11, %p10656_p10  ;;  %p10663_p0 = por %p10662_p13, %p10661_p3 }
  0x99   : > { %p10659_p1 = pneg %p10658_p12  ;;  %p10665_p4 = por %p10664_p2, %p10663_p0 }
  0x9b   : > { %p10666_p6 = pnand %p10665_p4, %p10659_p1 }
  0x9d   : > { %10669 = shalt.err (!%p10666_p6)
}
  0x9e   : > { %s10670_s13 = scalar_lea.vmem %s11142_s16, 114688  ;;  %s10887_s14 = smov [#allocation15]  }
  0x9f   : > { %p10671_p10 = scmp.ne.s32.totalorder %s11142_s16, %s10670_s13  ;;  %s10675_s11 = sshll.u32 %s10887_s14, 4  ;;  %s10676_s11 = int_to_ptr.vmem [resolvable:$false] %s10675_s11 }
  0xa0   : > { %s10677_s1 = scalar_lea.vmem %s10676_s11, 229376  ;;  %p10678_p5 = scmp.lt.s32.totalorder %s11142_s16, %s10676_s11 }
  0xa1   : > { %p10673_p12 = pnand %p10671_p10, %p12416_p11  ;;  %p10679_p3 = scmp.lt.s32.totalorder %s10677_s1, %s10670_s13 }
  0xa3   : > { %p10674_p8 = pneg %p10673_p12  ;;  %p10680_p13 = por %p10679_p3, %p10678_p5 }
  0xa5   : > { %p10681_p0 = pnand %p10680_p13, %p10674_p8 }
  0xa7   : > { %10684 = shalt.err (!%p10681_p0)
}
  0xa8   : > { %s10888_s2 = smov 1792   ;;  %s10889_s12 = smov 896  }
  0xa9   : > { %s10890_s22 = smov 56   ;;  %s10891_s28 = smov [#allocation6]  }
  0xaa   : > { %9124 = dma.hbm_to_vmem [thread:$0]  (!%p11133_p9), %s11140_s0, 114688, %s11142_s16, %s11144_s21, %s10888_s2, %s10889_s12, %s10890_s22  }
  0xab   : > { %s335_s17 = sshll.u32 %s10891_s28, 4  ;;  %s10685_s13 = scalar_lea.hbm %s12401_s3, 256  ;;  %s336_s17 = int_to_ptr.vmem [resolvable:$true] %s335_s17 }
  0xac   : > { %p10686_p5 = scmp.ne.s32.totalorder %s12401_s3, %s10685_s13  ;;  %p10692_p2 = scmp.lt.u32.totalorder %s10685_s13, %s12401_s3 }
  0xae   : > { %p10688_p8 = pnand %p10686_p5, %p11018_p7 }
  0xb0   : > { %p10689_p1 = pneg %p10688_p8 }
  0xb2   : > { %p10694_p4 = pnand %p10692_p2, %p10689_p1 }
  0xb4   : > { %10697 = shalt.err (!%p10694_p4)
}
  0xb5   : > { %s10698_s0 = scalar_lea.vmem %s336_s17, 256  ;;  %p10706_p3 = scmp.lt.s32.totalorder %s336_s17, %s336_s17 }
  0xb6   : > { %p10699_p6 = scmp.ne.s32.totalorder %s336_s17, %s10698_s0  ;;  %p10707_p13 = scmp.lt.s32.totalorder %s10698_s0, %s10698_s0 }
  0xb8   : > { %p10701_p10 = pnand %p10699_p6, %p11018_p7  ;;  %p10708_p0 = por %p10707_p13, %p10706_p3 }
  0xba   : > { %p10702_p12 = pneg %p10701_p10 }
  0xbc   : > { %p10709_p11 = pnand %p10708_p0, %p10702_p12 }
  0xbe   : > { %10712 = shalt.err (!%p10709_p11)
}
  0xbf   : > { %s10892_s4 = smov 128   ;;  %s10893_s16 = smov 8  }
  0xc0   : > { %p12441_p5 = scmp.ne.s32.totalorder %s12429_s29, 0  ;;  %s10894_s2 = smov [#allocation9]  }
  0xc1   : > { %s359_s12 = sshll.u32 %s10894_s2, 4  ;;  %s10895_s22 = smov [#allocation12]   ;;  %s360_s12 = int_to_ptr.vmem [resolvable:$true] %s359_s12 }
  0xc2   : > { %9105 = dma.hbm_to_vmem [thread:$0]  (!%p12441_p5), %s12401_s3, 256, %s336_s17, [#allocation5], %s10892_s4, %s10892_s4, %s10893_s16  }
  0xc3   : > { %s383_s28 = sshll.u32 %s10895_s22, 4  ;;  %s10713_s11 = scalar_lea.hbm %s12403_s5, 512  ;;  %s384_s28 = int_to_ptr.vmem [resolvable:$true] %s383_s28 }
  0xc4   : > { %p10714_p11 = scmp.ne.s32.totalorder %s12403_s5, %s10713_s11  ;;  %p10720_p2 = scmp.lt.u32.totalorder %s10713_s11, %s12403_s5 }
  0xc6   : > { %p10716_p8 = pnand %p10714_p11, %p11018_p7 }
  0xc8   : > { %p10717_p1 = pneg %p10716_p8 }
  0xca   : > { %p10722_p4 = pnand %p10720_p2, %p10717_p1 }
  0xcc   : > { %10725 = shalt.err (!%p10722_p4)
}
  0xcd   : > { %s10726_s17 = scalar_lea.vmem %s360_s12, 512  ;;  %p10734_p3 = scmp.lt.s32.totalorder %s360_s12, %s360_s12 }
  0xce   : > { %p10727_p6 = scmp.ne.s32.totalorder %s360_s12, %s10726_s17  ;;  %p10735_p13 = scmp.lt.s32.totalorder %s10726_s17, %s10726_s17 }
  0xd0   : > { %p10729_p10 = pnand %p10727_p6, %p11018_p7  ;;  %p10736_p0 = por %p10735_p13, %p10734_p3 }
  0xd2   : > { %p10730_p12 = pneg %p10729_p10 }
  0xd4   : > { %p10737_p9 = pnand %p10736_p0, %p10730_p12 }
  0xd6   : > { %10740 = shalt.err (!%p10737_p9)
}
  0xd7   : > { %9111 = dma.hbm_to_vmem [thread:$0]  (!%p12441_p5), %s12403_s5, 512, %s360_s12, [#allocation8], %s10892_s4, %s10892_s4, %s10893_s16  }
  0xd8   : > { %s10741_s2 = scalar_lea.hbm %s12405_s7, 8192 }
  0xd9   : > { %p10742_p11 = scmp.ne.s32.totalorder %s12405_s7, %s10741_s2  ;;  %p10748_p9 = scmp.lt.u32.totalorder %s10741_s2, %s12405_s7 }
  0xdb   : > { %p10744_p8 = pnand %p10742_p11, %p11018_p7 }
  0xdd   : > { %p10745_p1 = pneg %p10744_p8 }
  0xdf   : > { %p10750_p2 = pnand %p10748_p9, %p10745_p1 }
  0xe1   : > { %10753 = shalt.err (!%p10750_p2)
}
  0xe2   : > { %s10754_s1 = scalar_lea.vmem %s384_s28, 8192  ;;  %p10762_p12 = scmp.lt.s32.totalorder %s384_s28, %s384_s28 }
  0xe3   : > { %p10755_p4 = scmp.ne.s32.totalorder %s384_s28, %s10754_s1  ;;  %p10763_p3 = scmp.lt.s32.totalorder %s10754_s1, %s10754_s1 }
  0xe5   : > { %p10757_p6 = pnand %p10755_p4, %p11018_p7  ;;  %p10764_p13 = por %p10763_p3, %p10762_p12 }
  0xe7   : > { %p10758_p10 = pneg %p10757_p6 }
  0xe9   : > { %p10765_p0 = pnand %p10764_p13, %p10758_p10 }
  0xeb   : > { %10768 = shalt.err (!%p10765_p0)
}
  0xec   : > { %s10896_s4 = smov 1024   ;;  %s10897_s16 = smov 64  }
  0xed   : > { %9117 = dma.hbm_to_vmem [thread:$0]  (!%p12441_p5), %s12405_s7, 8192, %s384_s28, [#allocation11], %s10896_s4, %s10896_s4, %s10897_s16  }
  0xee   : > { %s10898_s17 = smov [#allocation13]   ;;  %s12442_s9 = sand.u32 1, %s10877_s19  }
  0xef   : > { %s397_s6 = sshll.u32 %s10898_s17, 4  ;;  %s9057_s15 = smul.u32 14, %s12442_s9  ;;  %s398_s6 = int_to_ptr.vmem [resolvable:$true] %s397_s6 }
  0xf0   : > { %s8860_s27 = smul.u32 224, %s10881_s20  ;;  %s10769_s14 = scalar_lea.hbm %s12406_s8, 128 }
  0xf1   : > { %p10770_p11 = scmp.ne.s32.totalorder %s12406_s8, %s10769_s14  ;;  %p10776_p9 = scmp.lt.u32.totalorder %s10769_s14, %s12406_s8 }
  0xf3   : > { %p10772_p8 = pnand %p10770_p11, %p11018_p7 }
  0xf5   : > { %p10773_p1 = pneg %p10772_p8 }
  0xf7   : > { %p10778_p2 = pnand %p10776_p9, %p10773_p1 }
  0xf9   : > { %10781 = shalt.err (!%p10778_p2)
}
  0xfa   : > { %s10782_s28 = scalar_lea.vmem %s398_s6, 128  ;;  %p10790_p12 = scmp.lt.s32.totalorder %s398_s6, %s398_s6 }
  0xfb   : > { %p10783_p4 = scmp.ne.s32.totalorder %s398_s6, %s10782_s28  ;;  %p10791_p3 = scmp.lt.s32.totalorder %s10782_s28, %s10782_s28 }
  0xfd   : > { %p10785_p6 = pnand %p10783_p4, %p11018_p7  ;;  %p10792_p13 = por %p10791_p3, %p10790_p12 }
  0xff   : > { %p10786_p10 = pneg %p10785_p6 }
 0x101   : > { %p10793_p0 = pnand %p10792_p13, %p10786_p10 }
 0x103   : > { %10796 = shalt.err (!%p10793_p0)
}
 0x104   : > { %9120 = dma.hbm_to_vmem [thread:$0]  (!%p12441_p5), %s12406_s8, 128, %s398_s6, [#allocation14]  }
 0x105   : > { %s11250_s17 = scalar_lea.hbm %s12408_s10, %s8860_s27  ;;  %s433_s25 = scalar_lea.vmem [#allocation16], %s9057_s15 }
 0x106   : > { %s441_s9 = sshll.u32 %s433_s25, 4  ;;  %s10797_s2 = scalar_lea.hbm %s11250_s17, 224  ;;  %s442_s9 = int_to_ptr.vmem [resolvable:$true] %s441_s9 }
 0x107   : > { %p10798_p7 = scmp.ne.s32.totalorder %s11250_s17, %s10797_s2  ;;  %p12443_p11 = scmp.ne.s32.totalorder %s12439_s26, 0 }
 0x108   : > { %s10802_s22 = scalar_lea.hbm %s12408_s10, 448  ;;  %p10803_p5 = scmp.lt.u32.totalorder %s11250_s17, %s12408_s10 }
 0x109   : > { %p12444_p8 = pneg %p12443_p11  ;;  %p10804_p2 = scmp.lt.u32.totalorder %s10802_s22, %s10797_s2 }
 0x10a   : > { %p10806_p6 = scmp.lt.u32.totalorder %s10797_s2, %s11250_s17 }
 0x10b   : > { %p10800_p1 = pnand %p10798_p7, %p12444_p8  ;;  %p10805_p4 = por %p10804_p2, %p10803_p5 }
 0x10d   : > { %p10801_p9 = pneg %p10800_p1  ;;  %p10807_p10 = por %p10806_p6, %p10805_p4 }
 0x10f   : > { %p10808_p12 = pnand %p10807_p10, %p10801_p9 }
 0x111   : > { %10811 = shalt.err (!%p10808_p12)
}
 0x112   : > { %s10812_s15 = scalar_lea.vmem %s442_s9, 224  ;;  %p12445_p13 = pmov %p12444_p8 }
 0x113   : > { %p10813_p3 = scmp.ne.s32.totalorder %s442_s9, %s10812_s15  ;;  %s10899_s13 = smov [#allocation16]  }
 0x114   : > { %s10817_s11 = sshll.u32 %s10899_s13, 4  ;;  %s10818_s11 = int_to_ptr.vmem [resolvable:$false] %s10817_s11 }
 0x115   : > { %p10815_p0 = pnand %p10813_p3, %p12445_p13  ;;  %s10819_s1 = scalar_lea.vmem %s10818_s11, 448 }
 0x116   : > { %p10820_p8 = scmp.lt.s32.totalorder %s442_s9, %s10818_s11  ;;  %p10821_p1 = scmp.lt.s32.totalorder %s10819_s1, %s10812_s15 }
 0x117   : > { %p10816_p7 = pneg %p10815_p0 }
 0x118   : > { %p10822_p2 = por %p10821_p1, %p10820_p8 }
 0x11a   : > { %p10823_p5 = pnand %p10822_p2, %p10816_p7 }
 0x11c   : > { %10826 = shalt.err (!%p10823_p5)
}
 0x11d   : > { %9127 = dma.hbm_to_vmem [thread:$0]  (!%p12443_p11), %s11250_s17, 224, %s442_s9, %s11144_s21  }
 0x11e   : > { %p12446_p9 = scmp.ne.s32.totalorder %s12428_s24, 0 }
 0x11f   : > { %p12447_p4 = scmp.eq.s32.totalorder (!%p12446_p9), %s10985_s23, 0 }
 0x120   : > { %450 = sbr.rel (%p12446_p9) target bundleno = 2171 (0x87b), region = 64 }
 0x127   : > { %10844 = dma.done.wait (%p12447_p4), [#allocation3], 16   ;;  %p12448_p6 = pmov %p12447_p4 }
 0x128   : > { %p12449_p10 = pmov %p12447_p4 }
 0x129   : > { %10846 = vsyncadd (%p12448_p6), [#allocation3], 4294967280 }
 0x12a   : > { %10848 = dma.done.wait (%p12449_p10), [#allocation5], 272   ;;  %p12450_p12 = pmov %p12447_p4 }
 0x12b   : > { %p12451_p3 = pmov %p12447_p4 }
 0x12c   : > { %10850 = vsyncadd (%p12450_p12), [#allocation5], 4294967024 }
 0x12d   : > { %10852 = dma.done.wait (%p12451_p3), [#allocation8], 528   ;;  %p12452_p11 = pmov %p12451_p3 }
 0x12e   : > { %p12453_p13 = pmov %p12451_p3 }
 0x12f   : > { %10854 = vsyncadd (%p12452_p11), [#allocation8], 4294966768 }
 0x130   : > { %10856 = dma.done.wait (%p12453_p13), [#allocation11], 8208   ;;  %p12454_p0 = pmov %p12451_p3 }
 0x132   : > { %10858 = vsyncadd (%p12454_p0), [#allocation11], 4294959088  ;;  %p12455_p7 = pmov %p12454_p0 }
 0x133   : > { %p12456_p8 = pmov %p12454_p0 }
 0x134   : > { %10860 = dma.done.wait (%p12455_p7), [#allocation14], 128  }
 0x135   : > { %10862 = vsyncadd (%p12456_p8), [#allocation14], 4294967168  ;;  %s484_s24 = sand.u32 1, %s10985_s23   ;;  %s486_s26 = sand.u32 1, %s10873_s18  }
 0x136   : > { %s9058_s21 = smul.u32 7168, %s486_s26  ;;  %s485_s12 = scalar_lea.sflag [#allocation3], %s484_s24 }
 0x137   : > { %p12457_p1 = scmp.ne.s32.totalorder %s12438_s30, 0 }
 0x138   : > { %s11298_s28 = scalar_lea.vmem [#allocation15], %s9058_s21 }
 0x139   : > { %10864 = dma.done.wait (%p12457_p1), %s485_s12, 114912  }
 0x13a   : > { %10866 = vsyncadd (%p12457_p1), %s485_s12, 4294852384  ;;  %v10900_v0 = vmov 0   ;;  %s12458_s16 = sld [smem:[#allocation25_spill]]  ;;  %v572_v2 = vld [vmem:[#allocation6] sm:$0xff]  ;;  %v573_v3 = vld [vmem:[#allocation6 + $0x8] sm:$0xff]  ;;  %v10901_v5 = vmov 0.0|0.0  }
 0x13b   : > { %9196 = vset.pattern.permute.xlu0 %v10900_v0  ;;  %v8888_v4 = vpack.c.bf16 %v573_v3, %v572_v2  ;;  %8887 = vmatprep.subr.bf16.mxu0 %v10901_v5  ;;  %vm10902_vm0 = vmmov 0   ;;  %v10903_v6 = vmov 0.0   ;;  %v656_v7 = vld [vmem:[#allocation9] sm:$0xff]  ;;  %v657_v8 = vld [vmem:[#allocation9 + $0x8] sm:$0xff]  ;;  %vm581_vm1 = vcmask 130048   ;;  %v658_v16 = vld [vmem:[#allocation9 + $0x10] sm:$0xff] }
 0x13c   : > { %8890 = vmatprep.subr.bf16.mxu1 %v10901_v5  ;;  %8873 = vmatprep.mubr.msk.f32.mxu0 %vm10902_vm0, %v10903_v6  ;;  %v8891_v9 = vpack.c.bf16 %v657_v8, %v656_v7  ;;  %v7951_v10 = vld [vmem:[#allocation2] ss:$0 sm:$0xff]  ;;  %v7952_v11 = vld [vmem:[#allocation4] ss:$0 sm:$0xff]  ;;  %v659_v17 = vld [vmem:[#allocation9 + $0x18] sm:$0xff]  ;;  %vm667_vm2 = vcmask 261120  }
 0x13d   : > { %8889 = vmatpush3.bf16.msra.mxu0 %v8888_v4  ;;  %8884 = vmatprep.mubr.msk.f32.mxu1 %vm10902_vm0, %v10903_v6  ;;  %v8894_v18 = vpack.c.bf16 %v659_v17, %v658_v16  ;;  %v743_v19 = vld [vmem:[#allocation12 + $0x8] sm:$0xff]  ;;  %v745_v21 = vld [vmem:[#allocation12 + $0x18] sm:$0xff]  ;;  %v742_v24 = vld [vmem:[#allocation12] sm:$0xff]  ;;  %vm848_vm3 = vcmask 523264   ;;  %s9059_s30 = smul.u32 14, %s486_s26  ;;  %s12459_s2 = sld [smem:[#allocation31_spill]] }
 0x13e   : > { %8892 = vmatpush3.bf16.msra.mxu1 %v8891_v9  ;;  %v751_v20 = vld [vmem:[#allocation12 + $0x48] sm:$0xff]  ;;  %v753_v23 = vld [vmem:[#allocation12 + $0x58] sm:$0xff]  ;;  %v750_v25 = vld [vmem:[#allocation12 + $0x40] sm:$0xff]  ;;  %s543_s0 = smul.u32 14, %s10985_s23 }
 0x13f   : > { %8893 = vmatprep.subr.bf16.mxu1 %v10901_v5  ;;  %v8896_v22 = vpack.c.bf16 %v751_v20, %v743_v19  ;;  %v8912_v26 = vpack.c.bf16 %v753_v23, %v745_v21  ;;  %v8898_v27 = vpack.c.bf16 %v750_v25, %v742_v24  ;;  %v759_v28 = vld [vmem:[#allocation12 + $0x88] sm:$0xff]  ;;  %v758_v31 = vld [vmem:[#allocation12 + $0x80] sm:$0xff]  ;;  %v7953_v40 = vld [vmem:[#allocation7] ss:$0 sm:$0xff]  ;;  %s11751_s23 = scalar_lea.vmem [#allocation16], %s9059_s30 }
 0x140   : > { %v549_v1 = vld [vmem:[%s12458_s16] sm:$0xff]  ;;  %v766_v32 = vld [vmem:[#allocation12 + $0xc0] sm:$0xff]  ;;  %v744_v41 = vld [vmem:[#allocation12 + $0x10] sm:$0xff]  ;;  %p544_p2 = scmp.lt.s32.totalorder %s543_s0, 27 }
 0x141   : > { %553 = vperm.xlu0 %9196, %v549_v1   ;;  %8897 = vmatprep.subr.bf16.mxu0 %v8896_v22  ;;  %v767_v29 = vld [vmem:[#allocation12 + $0xc8] sm:$0xff]  ;;  %v8902_v33 = vpack.c.bf16 %v766_v32, %v758_v31  ;;  %v774_v37 = vld [vmem:[#allocation12 + $0x100] sm:$0xff]  ;;  %v752_v42 = vld [vmem:[#allocation12 + $0x50] sm:$0xff] }
 0x142   : > { %8895 = vmatpush3.bf16.msra.mxu1 %v8894_v18  ;;  %v8900_v30 = vpack.c.bf16 %v767_v29, %v759_v28  ;;  %v775_v34 = vld [vmem:[#allocation12 + $0x108] sm:$0xff]  ;;  %v782_v38 = vld [vmem:[#allocation12 + $0x140] sm:$0xff]  ;;  %v761_v44 = vld [vmem:[#allocation12 + $0x98] sm:$0xff]  ;;  %v8914_v48 = vpack.c.bf16 %v752_v42, %v744_v41  ;;  %s12466_s0 = smov (!%p544_p2, %s543_s0), 27 }
 0x143   : > { %8913 = vmatprep.subr.bf16.mxu1 %v8912_v26  ;;  %v783_v35 = vld [vmem:[#allocation12 + $0x148] sm:$0xff]  ;;  %v8906_v39 = vpack.c.bf16 %v782_v38, %v774_v37  ;;  %v769_v45 = vld [vmem:[#allocation12 + $0xd8] sm:$0xff]  ;;  %v760_v51 = vld [vmem:[#allocation12 + $0x90] sm:$0xff]  ;;  %s7950_s17 = sshll.u32 %s12466_s0, 3 }
 0x144   : > { %v8904_v36 = vpack.c.bf16 %v783_v35, %v775_v34  ;;  %v8916_v50 = vpack.c.bf16 %v769_v45, %v761_v44  ;;  %v768_v52 = vld [vmem:[#allocation12 + $0xd0] sm:$0xff]  ;;  %v777_v53 = vld [vmem:[#allocation12 + $0x118] sm:$0xff]  ;;  %v791_v60 = vld [vmem:[#allocation12 + $0x188] sm:$0xff]  ;;  %s11767_s29 = scalar_lea.vmem %s12459_s2, %s7950_s17 }
 0x145   : > { %v785_v54 = vld [vmem:[#allocation12 + $0x158] sm:$0xff]  ;;  %v8918_v55 = vpack.c.bf16 %v768_v52, %v760_v51  ;;  %v776_v57 = vld [vmem:[#allocation12 + $0x110] sm:$0xff]  ;;  %v799_v61 = vld [vmem:[#allocation12 + $0x1c8] sm:$0xff] }
 0x146   : > { %v8920_v56 = vpack.c.bf16 %v785_v54, %v777_v53  ;;  %v784_v58 = vld [vmem:[#allocation12 + $0x150] sm:$0xff]  ;;  %v793_v62 = vld [vmem:[#allocation12 + $0x198] sm:$0xff]  ;;  %v8908_v63 = vpack.c.bf16 %v799_v61, %v791_v60  ;;  %v790_v1 = vld [vmem:[#allocation12 + $0x180] sm:$0xff] }
 0x147   : > { %v8922_v59 = vpack.c.bf16 %v784_v58, %v776_v57  ;;  %v801_v0 = vld [vmem:[#allocation12 + $0x1d8] sm:$0xff]  ;;  %v798_v2 = vld [vmem:[#allocation12 + $0x1c0] sm:$0xff]  ;;  %v792_v5 = vld [vmem:[#allocation12 + $0x190] sm:$0xff] }
 0x148   : > { %v8924_v3 = vpack.c.bf16 %v801_v0, %v793_v62  ;;  %v8910_v4 = vpack.c.bf16 %v798_v2, %v790_v1  ;;  %v800_v7 = vld [vmem:[#allocation12 + $0x1d0] sm:$0xff]  ;;  %v747_v9 = vld [vmem:[#allocation12 + $0x28] sm:$0xff]  ;;  %v746_v16 = vld [vmem:[#allocation12 + $0x20] sm:$0xff] }
 0x149   : > { %v8926_v8 = vpack.c.bf16 %v800_v7, %v792_v5  ;;  %v754_v17 = vld [vmem:[#allocation12 + $0x60] sm:$0xff]  ;;  %v748_v18 = vld [vmem:[#allocation12 + $0x30] sm:$0xff]  ;;  %v763_v20 = vld [vmem:[#allocation12 + $0xa8] sm:$0xff] }
 0x14a   : > { %v756_v19 = vld [vmem:[#allocation12 + $0x70] sm:$0xff]  ;;  %v771_v22 = vld [vmem:[#allocation12 + $0xe8] sm:$0xff]  ;;  %v765_v23 = vld [vmem:[#allocation12 + $0xb8] sm:$0xff] }
 0x14b   : > { %v773_v24 = vld [vmem:[#allocation12 + $0xf8] sm:$0xff]  ;;  %v8946_v28 = vpack.c.bf16 %v756_v19, %v748_v18  ;;  %v762_v29 = vld [vmem:[#allocation12 + $0xa0] sm:$0xff]  ;;  %v8932_v32 = vpack.c.bf16 %v771_v22, %v763_v20  ;;  %v764_v34 = vld [vmem:[#allocation12 + $0xb0] sm:$0xff] }
 0x14c   : > { %v772_v35 = vld [vmem:[#allocation12 + $0xf0] sm:$0xff]  ;;  %v787_v37 = vld [vmem:[#allocation12 + $0x168] sm:$0xff]  ;;  %v781_v38 = vld [vmem:[#allocation12 + $0x138] sm:$0xff] }
 0x14d   : > { %v8950_v41 = vpack.c.bf16 %v772_v35, %v764_v34  ;;  %v778_v42 = vld [vmem:[#allocation12 + $0x120] sm:$0xff]  ;;  %v805_v51 = vld [vmem:[#allocation12 + $0x1f8] sm:$0xff]  ;;  %v796_v58 = vld [vmem:[#allocation12 + $0x1b0] sm:$0xff] }
 0x14e   : > { %v794_v54 = vld [vmem:[#allocation12 + $0x1a0] sm:$0xff]  ;;  %v9202_v1 = vld [vmem:[%s11298_s28 + $0x74] ss:$56 sps:$4 sm:$0xff]   ;;  %v9218_v20 = vld [vmem:[%s11298_s28 + $0x230] ss:$56 sps:$4 sm:$0xff]  }
 0x14f   : > { %v802_v57 = vld [vmem:[#allocation12 + $0x1e0] sm:$0xff]  ;;  %v9217_v2 = vld [vmem:[%s11298_s28 + $0xe74] ss:$56 sps:$4 sm:$0xff]  }
 0x150   : > { %v9199_v61 = vld [vmem:[%s11298_s28 + $0x4] ss:$56 sps:$4 sm:$0xff]   ;;  %v9209_v0 = vld [vmem:[%s11298_s28 + $0xe00] ss:$56 sps:$4 sm:$0xff]   ;;  %v9220_v18 = vld [vmem:[%s11298_s28 + $0x234] ss:$56 sps:$4 sm:$0xff]  }
 0x151   : > { %v9211_v62 = vld [vmem:[%s11298_s28 + $0xe04] ss:$56 sps:$4 sm:$0xff]   ;;  %v9241_v19 = vld [vmem:[%s11298_s28 + $0x1034] ss:$56 sps:$4 sm:$0xff]  }
 0x152   : > { %v9205_v5 = vld [vmem:[%s11298_s28 + $0xe4] ss:$56 sps:$4 sm:$0xff]   ;;  %v9244_v34 = vld [vmem:[%s11298_s28 + $0x3f4] ss:$56 sps:$4 sm:$0xff]  }
 0x153   : > { %v9223_v7 = vld [vmem:[%s11298_s28 + $0xee4] ss:$56 sps:$4 sm:$0xff]   ;;  %v9265_v35 = vld [vmem:[%s11298_s28 + $0x11f4] ss:$56 sps:$4 sm:$0xff]  }
 0x154   : > { %v9226_v22 = vld [vmem:[%s11298_s28 + $0x2a4] ss:$56 sps:$4 sm:$0xff]  }
 0x1c0   : > { %v554_v12 = vpop.permute.xlu0 %553 }
 0x1c1   : > { %v562_v13 = vmul.f32 %v7951_v10, %v554_v12  ;;  %v755_v10 = vld [vmem:[#allocation12 + $0x68] sm:$0xff] }
 0x1c2   : > { %v8928_v12 = vpack.c.bf16 %v755_v10, %v747_v9  ;;  %v9221_v9 = vld [vmem:[%s11298_s28 + $0xee0] ss:$56 sps:$4 sm:$0xff]   ;;  %v9208_v10 = vld [vmem:[%s11298_s28 + $0x154] ss:$56 sps:$4 sm:$0xff]  }
 0x1c3   : > { %v570_v14 = vadd.f32 %v7952_v11, %v562_v13  ;;  %v749_v11 = vld [vmem:[#allocation12 + $0x38] sm:$0xff] }
 0x1c4   : > { %v757_v13 = vld [vmem:[#allocation12 + $0x78] sm:$0xff] }
 0x1c5   : > { %v571_v15 = vmax.f32 %v570_v14, 0.0  ;;  %v8944_v14 = vpack.c.bf16 %v757_v13, %v749_v11  ;;  %v9229_v11 = vld [vmem:[%s11298_s28 + $0xf54] ss:$56 sps:$4 sm:$0xff]   ;;  %v9227_v13 = vld [vmem:[%s11298_s28 + $0xf50] ss:$56 sps:$4 sm:$0xff]  }
 0x1c7   : > { %8874 = vmatmul.mubr.msk.f32.vlgmr.msra.gmra.mrb[0].mxu0 %vm581_vm1, %v571_v15  ;;  %v7955_v15 = vld [vmem:[#allocation10] ss:$0 sm:$0xff] }
 0x1c8   : > { %916 = vmatprep.mubr.f32.mxu0 %v10903_v6  ;;  %8899 = vmatpush1.bf16.msra.mxu0 %v8898_v27  ;;  %v8930_v27 = vpack.c.bf16 %v754_v17, %v746_v16  ;;  %v9212_v16 = vld [vmem:[%s11298_s28 + $0x1c0] ss:$56 sps:$4 sm:$0xff]  }
 0x1c9   : > { %8901 = vmatprep.subr.bf16.mxu0 %v8900_v30  ;;  %v770_v30 = vld [vmem:[#allocation12 + $0xe0] sm:$0xff] }
 0x1ca   : > { %v9233_v17 = vld [vmem:[%s11298_s28 + $0xfc0] ss:$56 sps:$4 sm:$0xff]  }
 0x1cc   : > { %8903 = vmatpush1.bf16.msra.mxu0 %v8902_v33  ;;  %v8948_v33 = vpack.c.bf16 %v773_v24, %v765_v23  ;;  %v9247_v23 = vld [vmem:[%s11298_s28 + $0x10a4] ss:$56 sps:$4 sm:$0xff]   ;;  %v9224_v24 = vld [vmem:[%s11298_s28 + $0x2a0] ss:$56 sps:$4 sm:$0xff]  }
 0x1cd   : > { %8905 = vmatprep.subr.bf16.mxu0 %v8904_v36  ;;  %v779_v36 = vld [vmem:[#allocation12 + $0x128] sm:$0xff] }
 0x1ce   : > { %v8936_v44 = vpack.c.bf16 %v787_v37, %v779_v36  ;;  %v9242_v36 = vld [vmem:[%s11298_s28 + $0x3f0] ss:$56 sps:$4 sm:$0xff]  }
 0x1cf   : > { %v9263_v37 = vld [vmem:[%s11298_s28 + $0x11f0] ss:$56 sps:$4 sm:$0xff]  }
 0x1d0   : > { %8907 = vmatpush1.bf16.msra.mxu0 %v8906_v39  ;;  %v789_v39 = vld [vmem:[#allocation12 + $0x178] sm:$0xff] }
 0x1d1   : > { %8909 = vmatprep.subr.bf16.mxu0 %v8908_v63  ;;  %v8952_v45 = vpack.c.bf16 %v789_v39, %v781_v38  ;;  %v9197_v63 = vld [vmem:[%s11298_s28] ss:$56 sps:$4 sm:$0xff]   ;;  %v9250_v38 = vld [vmem:[%s11298_s28 + $0x464] ss:$56 sps:$4 sm:$0xff]  }
 0x1d2   : > { %v9271_v39 = vld [vmem:[%s11298_s28 + $0x1264] ss:$56 sps:$4 sm:$0xff]  }
 0x1d4   : > { %8911 = vmatpush1.bf16.msra.mxu0 %v8910_v4  ;;  %v9215_v4 = vld [vmem:[%s11298_s28 + $0xe70] ss:$56 sps:$4 sm:$0xff]  }
 0x1d5   : > { %8929 = vmatprep.subr.bf16.mxu0 %v8928_v12  ;;  %v9206_v12 = vld [vmem:[%s11298_s28 + $0x150] ss:$56 sps:$4 sm:$0xff]  }
 0x29a   : > { %v651_v43 = vpop.f32.mrb[0].mxu0 }
 0x29b   : > { %v652_v46 = vadd.f32 %v7953_v40, %v651_v43  ;;  %v8875_v47 = vpop.f32.mrb[1].mxu0  ;;  %v8934_v40 = vpack.c.bf16 %v770_v30, %v762_v29  ;;  %v786_v43 = vld [vmem:[#allocation12 + $0x160] sm:$0xff]  ;;  %v9251_v29 = vld [vmem:[%s11298_s28 + $0x1110] ss:$56 sps:$4 sm:$0xff]  }
 0x29c   : > { %v788_v47 = vld [vmem:[#allocation12 + $0x170] sm:$0xff]  ;;  %v8938_v52 = vpack.c.bf16 %v786_v43, %v778_v42  ;;  %v9238_v30 = vld [vmem:[%s11298_s28 + $0x384] ss:$56 sps:$4 sm:$0xff]  }
 0x29d   : > { %v655_v49 = vmax.f32 %v652_v46, 0.0  ;;  %v780_v46 = vld [vmem:[#allocation12 + $0x130] sm:$0xff] }
 0x29e   : > { %v8954_v53 = vpack.c.bf16 %v788_v47, %v780_v46  ;;  %v9256_v42 = vld [vmem:[%s11298_s28 + $0x4d4] ss:$56 sps:$4 sm:$0xff]   ;;  %v9254_v43 = vld [vmem:[%s11298_s28 + $0x4d0] ss:$56 sps:$4 sm:$0xff]  }
 0x29f   : > { %8885 = vmatmul.mubr.msk.f32.vlgmr.msra.gmra.mrb[0].mxu1 %vm667_vm2, %v655_v49  ;;  %v803_v49 = vld [vmem:[#allocation12 + $0x1e8] sm:$0xff]  ;;  %v9268_v46 = vld [vmem:[%s11298_s28 + $0x5b4] ss:$56 sps:$4 sm:$0xff]   ;;  %v9266_v47 = vld [vmem:[%s11298_s28 + $0x5b0] ss:$56 sps:$4 sm:$0xff]  }
 0x2a0   : > { %8915 = vmatpush1.bf16.msra.mxu1 %v8914_v48  ;;  %987 = vmatprep.mubr.f32.mxu1 %v10903_v6  ;;  %v795_v48 = vld [vmem:[#allocation12 + $0x1a8] sm:$0xff] }
 0x2a1   : > { %8917 = vmatprep.subr.bf16.mxu1 %v8916_v50  ;;  %v797_v50 = vld [vmem:[#allocation12 + $0x1b8] sm:$0xff] }
 0x2a4   : > { %8919 = vmatpush1.bf16.msra.mxu1 %v8918_v55  ;;  %v8940_v55 = vpack.c.bf16 %v803_v49, %v795_v48  ;;  %v9274_v48 = vld [vmem:[%s11298_s28 + $0x624] ss:$56 sps:$4 sm:$0xff]   ;;  %v9272_v49 = vld [vmem:[%s11298_s28 + $0x620] ss:$56 sps:$4 sm:$0xff]  }
 0x2a5   : > { %8921 = vmatprep.subr.bf16.mxu1 %v8920_v56  ;;  %v8956_v56 = vpack.c.bf16 %v805_v51, %v797_v50  ;;  %v9277_v50 = vld [vmem:[%s11298_s28 + $0x12d4] ss:$56 sps:$4 sm:$0xff]   ;;  %v9275_v51 = vld [vmem:[%s11298_s28 + $0x12d0] ss:$56 sps:$4 sm:$0xff]  }
 0x2a8   : > { %8923 = vmatpush1.bf16.msra.mxu1 %v8922_v59  ;;  %v804_v59 = vld [vmem:[#allocation12 + $0x1f0] sm:$0xff] }
 0x2a9   : > { %8925 = vmatprep.subr.bf16.mxu1 %v8924_v3  ;;  %v8958_v60 = vpack.c.bf16 %v804_v59, %v796_v58  ;;  %v9200_v3 = vld [vmem:[%s11298_s28 + $0x70] ss:$56 sps:$4 sm:$0xff]   ;;  %v9289_v58 = vld [vmem:[%s11298_s28 + $0x13b4] ss:$56 sps:$4 sm:$0xff]   ;;  %v9295_v59 = vld [vmem:[%s11298_s28 + $0x1424] ss:$56 sps:$4 sm:$0xff]  }
 0x2ac   : > { %8927 = vmatpush1.bf16.msra.mxu1 %v8926_v8  ;;  %v9203_v8 = vld [vmem:[%s11298_s28 + $0xe0] ss:$56 sps:$4 sm:$0xff]  }
 0x2ad   : > { %8945 = vmatprep.subr.bf16.mxu1 %v8944_v14  ;;  %v9214_v14 = vld [vmem:[%s11298_s28 + $0x1c4] ss:$56 sps:$4 sm:$0xff]  }
 0x372   : > { %v737_v21 = vpop.f32.mrb[0].mxu1 }
 0x373   : > { %v738_v25 = vadd.f32 %v7955_v15, %v737_v21  ;;  %v8886_v26 = vpop.f32.mrb[1].mxu1  ;;  %v9235_v15 = vld [vmem:[%s11298_s28 + $0xfc4] ss:$56 sps:$4 sm:$0xff]   ;;  %v9239_v21 = vld [vmem:[%s11298_s28 + $0x1030] ss:$56 sps:$4 sm:$0xff]  }
 0x374   : > { %v9232_v26 = vld [vmem:[%s11298_s28 + $0x314] ss:$56 sps:$4 sm:$0xff]  }
 0x375   : > { %v741_v31 = vmax.f32 %v738_v25, 0.0  ;;  %v9245_v25 = vld [vmem:[%s11298_s28 + $0x10a0] ss:$56 sps:$4 sm:$0xff]  }
 0x377   : > { %7957 = vmatmul.mubr.msk.f32.vlgmr.msra.gmra.mrb[2].mxu0 %vm848_vm3, %v741_v31  ;;  %7958 = vmatmul.mubr.msk.f32.vlgmr.msra.gmra.mrb[2].mxu1 %vm848_vm3, %v741_v31 }
 0x378   : > { %8931 = vmatpush1.bf16.msra.mxu0 %v8930_v27  ;;  %8947 = vmatpush1.bf16.msra.mxu1 %v8946_v28  ;;  %v9253_v27 = vld [vmem:[%s11298_s28 + $0x1114] ss:$56 sps:$4 sm:$0xff]   ;;  %v9230_v28 = vld [vmem:[%s11298_s28 + $0x310] ss:$56 sps:$4 sm:$0xff]  }
 0x379   : > { %8933 = vmatprep.subr.bf16.mxu0 %v8932_v32  ;;  %8949 = vmatprep.subr.bf16.mxu1 %v8948_v33  ;;  %v9236_v32 = vld [vmem:[%s11298_s28 + $0x380] ss:$56 sps:$4 sm:$0xff]  }
 0x37a   : > { %1058 = vmatprep.mubr.f32.mxu0 %v10903_v6  ;;  %1129 = vmatprep.mubr.f32.mxu1 %v10903_v6  ;;  %v8942_v6 = vpack.c.bf16 %v802_v57, %v794_v54  ;;  %v9257_v33 = vld [vmem:[%s11298_s28 + $0x1180] ss:$56 sps:$4 sm:$0xff]   ;;  %v9287_v57 = vld [vmem:[%s11298_s28 + $0x13b0] ss:$56 sps:$4 sm:$0xff]  }
 0x37b   : > { %v9281_v54 = vld [vmem:[%s11298_s28 + $0x1340] ss:$56 sps:$4 sm:$0xff]  }
 0x37c   : > { %8935 = vmatpush1.bf16.msra.mxu0 %v8934_v40  ;;  %8951 = vmatpush1.bf16.msra.mxu1 %v8950_v41  ;;  %v9248_v40 = vld [vmem:[%s11298_s28 + $0x460] ss:$56 sps:$4 sm:$0xff]  }
 0x37d   : > { %8937 = vmatprep.subr.bf16.mxu0 %v8936_v44  ;;  %8953 = vmatprep.subr.bf16.mxu1 %v8952_v45  ;;  %v9269_v41 = vld [vmem:[%s11298_s28 + $0x1260] ss:$56 sps:$4 sm:$0xff]   ;;  %v9262_v44 = vld [vmem:[%s11298_s28 + $0x544] ss:$56 sps:$4 sm:$0xff]  }
 0x37e   : > { %v9260_v45 = vld [vmem:[%s11298_s28 + $0x540] ss:$56 sps:$4 sm:$0xff]  }
 0x380   : > { %8939 = vmatpush1.bf16.msra.mxu0 %v8938_v52  ;;  %8955 = vmatpush1.bf16.msra.mxu1 %v8954_v53  ;;  %v9280_v52 = vld [vmem:[%s11298_s28 + $0x694] ss:$56 sps:$4 sm:$0xff]   ;;  %v9278_v53 = vld [vmem:[%s11298_s28 + $0x690] ss:$56 sps:$4 sm:$0xff]  }
 0x381   : > { %8941 = vmatprep.subr.bf16.mxu0 %v8940_v55  ;;  %8957 = vmatprep.subr.bf16.mxu1 %v8956_v56  ;;  %v9283_v55 = vld [vmem:[%s11298_s28 + $0x1344] ss:$56 sps:$4 sm:$0xff]  }
 0x382   : > { %v9286_v56 = vld [vmem:[%s11298_s28 + $0x704] ss:$56 sps:$4 sm:$0xff]  }
 0x384   : > { %8943 = vmatpush1.bf16.msra.mxu0 %v8942_v6  ;;  %8959 = vmatpush1.bf16.msra.mxu1 %v8958_v60  ;;  %v9293_v6 = vld [vmem:[%s11298_s28 + $0x1420] ss:$56 sps:$4 sm:$0xff]   ;;  %v9301_v60 = vld [vmem:[%s11298_s28 + $0x1494] ss:$56 sps:$4 sm:$0xff]  }
 0x385   : > { %6602 = vmatprep.subr.bf16.mxu1 %v9199_v61  ;;  %6684 = vmatprep.subr.bf16.mxu0 %v9211_v62  ;;  %v9299_v61 = vld [vmem:[%s11298_s28 + $0x1490] ss:$56 sps:$4 sm:$0xff]   ;;  %v9307_v62 = vld [vmem:[%s11298_s28 + $0x1504] ss:$56 sps:$4 sm:$0xff]  }
 0x387   : > { %7959 = vmatmul.mubr.msk.f32.vlgmr.msra.gmra.mrb[4].mxu0 %vm848_vm3, %v741_v31  ;;  %7960 = vmatmul.mubr.msk.f32.vlgmr.msra.gmra.mrb[4].mxu1 %vm848_vm3, %v741_v31  ;;  %v9259_v31 = vld [vmem:[%s11298_s28 + $0x1184] ss:$56 sps:$4 sm:$0xff]  }
 0x388   : > { %6603 = vmatpush1.bf16.msra.mxu1 %v9197_v63  ;;  %6685 = vmatpush1.bf16.msra.mxu0 %v9209_v0  ;;  %v808_v63 = vlaneseq }
 0x389   : > { %6604 = vmatprep.subr.bf16.mxu1 %v9202_v1  ;;  %6686 = vmatprep.subr.bf16.mxu0 %v9217_v2  ;;  %v11388_v2 = vld [vmem:[#allocation13] sm:$0xff] }
 0x38a   : > { %v11383_v0 = vshrl.u32 %v808_v63, 7  ;;  %v9334_v63 = vld [vmem:[%s11298_s28 + $0xa84] ss:$56 sps:$4 sm:$0xff]  }
 0x38c   : > { %6605 = vmatpush1.bf16.msra.mxu1 %v9200_v3  ;;  %6687 = vmatpush1.bf16.msra.mxu0 %v9215_v4  ;;  %v11386_v1 = vsub.s32 0, %v11383_v0  ;;  %v11391_v3 = vsub.s32 1, %v11383_v0  ;;  %v11394_v4 = vsub.s32 3, %v11383_v0 }
 0x38d   : > { %6606 = vmatprep.subr.bf16.mxu1 %v9205_v5  ;;  %6688 = vmatprep.subr.bf16.mxu0 %v9223_v7 }
 0x38e   : > { %v811_v5 = vrot.slane %v11388_v2, %v11386_v1  ;;  %v815_v7 = vrot.slane %v11388_v2, %v11391_v3 }
 0x390   : > { %6607 = vmatpush1.bf16.msra.mxu1 %v9203_v8  ;;  %6689 = vmatpush1.bf16.msra.mxu0 %v9221_v9  ;;  %v823_v8 = vrot.slane %v11388_v2, %v11394_v4 }
 0x391   : > { %6608 = vmatprep.subr.bf16.mxu1 %v9208_v10  ;;  %6690 = vmatprep.subr.bf16.mxu0 %v9229_v11 }
 0x394   : > { %6609 = vmatpush1.bf16.msra.mxu1 %v9206_v12  ;;  %6691 = vmatpush1.bf16.msra.mxu0 %v9227_v13 }
 0x395   : > { %6610 = vmatprep.subr.bf16.mxu1 %v9214_v14  ;;  %6692 = vmatprep.subr.bf16.mxu0 %v9235_v15 }
 0x398   : > { %6611 = vmatpush1.bf16.msra.mxu1 %v9212_v16  ;;  %6693 = vmatpush1.bf16.msra.mxu0 %v9233_v17 }
 0x399   : > { %6612 = vmatprep.subr.bf16.mxu1 %v9220_v18  ;;  %6694 = vmatprep.subr.bf16.mxu0 %v9241_v19 }
 0x39c   : > { %6613 = vmatpush1.bf16.msra.mxu1 %v9218_v20  ;;  %6695 = vmatpush1.bf16.msra.mxu0 %v9239_v21  ;;  %v9284_v20 = vld [vmem:[%s11298_s28 + $0x700] ss:$56 sps:$4 sm:$0xff]  }
 0x39d   : > { %6614 = vmatprep.subr.bf16.mxu1 %v9226_v22  ;;  %6696 = vmatprep.subr.bf16.mxu0 %v9247_v23  ;;  %v9292_v22 = vld [vmem:[%s11298_s28 + $0x774] ss:$56 sps:$4 sm:$0xff]  }
 0x3a0   : > { %6615 = vmatpush1.bf16.msra.mxu1 %v9224_v24  ;;  %6697 = vmatpush1.bf16.msra.mxu0 %v9245_v25  ;;  %v11415_v24 = vsub.s32 4, %v11383_v0  ;;  %v9290_v25 = vld [vmem:[%s11298_s28 + $0x770] ss:$56 sps:$4 sm:$0xff]  }
 0x3a1   : > { %6616 = vmatprep.subr.bf16.mxu1 %v9232_v26  ;;  %6698 = vmatprep.subr.bf16.mxu0 %v9253_v27  ;;  %v11420_v26 = vsub.s32 5, %v11383_v0  ;;  %v838_v27 = vsub.s32 7, %v11383_v0 }
 0x3a4   : > { %6617 = vmatpush1.bf16.msra.mxu1 %v9230_v28  ;;  %6699 = vmatpush1.bf16.msra.mxu0 %v9251_v29  ;;  %v9298_v28 = vld [vmem:[%s11298_s28 + $0x7e4] ss:$56 sps:$4 sm:$0xff]   ;;  %v827_v29 = vrot.slane %v11388_v2, %v11415_v24 }
 0x3a5   : > { %6618 = vmatprep.subr.bf16.mxu1 %v9238_v30  ;;  %6700 = vmatprep.subr.bf16.mxu0 %v9259_v31  ;;  %v831_v30 = vrot.slane %v11388_v2, %v11420_v26  ;;  %v839_v31 = vrot.slane %v11388_v2, %v838_v27 }
 0x3a8   : > { %6619 = vmatpush1.bf16.msra.mxu1 %v9236_v32  ;;  %6701 = vmatpush1.bf16.msra.mxu0 %v9257_v33  ;;  %v9296_v32 = vld [vmem:[%s11298_s28 + $0x7e0] ss:$56 sps:$4 sm:$0xff]   ;;  %v9304_v33 = vld [vmem:[%s11298_s28 + $0x854] ss:$56 sps:$4 sm:$0xff]  }
 0x3a9   : > { %6620 = vmatprep.subr.bf16.mxu1 %v9244_v34  ;;  %6702 = vmatprep.subr.bf16.mxu0 %v9265_v35 }
 0x3ac   : > { %6621 = vmatpush1.bf16.msra.mxu1 %v9242_v36  ;;  %6703 = vmatpush1.bf16.msra.mxu0 %v9263_v37 }
 0x3ad   : > { %6622 = vmatprep.subr.bf16.mxu1 %v9250_v38  ;;  %6704 = vmatprep.subr.bf16.mxu0 %v9271_v39 }
 0x3b0   : > { %6623 = vmatpush1.bf16.msra.mxu1 %v9248_v40  ;;  %6705 = vmatpush1.bf16.msra.mxu0 %v9269_v41  ;;  %v9302_v41 = vld [vmem:[%s11298_s28 + $0x850] ss:$56 sps:$4 sm:$0xff]  }
 0x3b1   : > { %6624 = vmatprep.subr.bf16.mxu1 %v9256_v42  ;;  %6706 = vmatprep.subr.bf16.mxu0 %v9277_v50  ;;  %v9313_v50 = vld [vmem:[%s11298_s28 + $0x1574] ss:$56 sps:$4 sm:$0xff]  }
 0x3b4   : > { %6625 = vmatpush1.bf16.msra.mxu1 %v9254_v43  ;;  %6707 = vmatpush1.bf16.msra.mxu0 %v9275_v51  ;;  %v9310_v43 = vld [vmem:[%s11298_s28 + $0x8c4] ss:$56 sps:$4 sm:$0xff]   ;;  %v9316_v51 = vld [vmem:[%s11298_s28 + $0x934] ss:$56 sps:$4 sm:$0xff]  }
 0x3b5   : > { %6626 = vmatprep.subr.bf16.mxu1 %v9262_v44  ;;  %6708 = vmatprep.subr.bf16.mxu0 %v9283_v55  ;;  %v9319_v55 = vld [vmem:[%s11298_s28 + $0x15e4] ss:$56 sps:$4 sm:$0xff]  }
 0x3b8   : > { %6627 = vmatpush1.bf16.msra.mxu1 %v9260_v45  ;;  %6709 = vmatpush1.bf16.msra.mxu0 %v9281_v54  ;;  %v9314_v54 = vld [vmem:[%s11298_s28 + $0x930] ss:$56 sps:$4 sm:$0xff]  }
 0x3b9   : > { %6628 = vmatprep.subr.bf16.mxu1 %v9268_v46  ;;  %6710 = vmatprep.subr.bf16.mxu0 %v9289_v58  ;;  %v9320_v58 = vld [vmem:[%s11298_s28 + $0x9a0] ss:$56 sps:$4 sm:$0xff]  }
 0x3bc   : > { %6629 = vmatpush1.bf16.msra.mxu1 %v9266_v47  ;;  %6711 = vmatpush1.bf16.msra.mxu0 %v9287_v57  ;;  %v9305_v47 = vld [vmem:[%s11298_s28 + $0x1500] ss:$56 sps:$4 sm:$0xff]  }
 0x3bd   : > { %6630 = vmatprep.subr.bf16.mxu1 %v9274_v48  ;;  %6712 = vmatprep.subr.bf16.mxu0 %v9295_v59  ;;  %v9308_v48 = vld [vmem:[%s11298_s28 + $0x8c0] ss:$56 sps:$4 sm:$0xff]   ;;  %v9325_v59 = vld [vmem:[%s11298_s28 + $0x1654] ss:$56 sps:$4 sm:$0xff]  }
 0x3be   : > { %v9317_v57 = vld [vmem:[%s11298_s28 + $0x15e0] ss:$56 sps:$4 sm:$0xff]  }
 0x3c0   : > { %6631 = vmatpush1.bf16.msra.mxu1 %v9272_v49  ;;  %6713 = vmatpush1.bf16.msra.mxu0 %v9293_v6  ;;  %v9328_v6 = vld [vmem:[%s11298_s28 + $0xa14] ss:$56 sps:$4 sm:$0xff]  }
 0x3c1   : > { %6632 = vmatprep.subr.bf16.mxu1 %v9280_v52  ;;  %6714 = vmatprep.subr.bf16.mxu0 %v9301_v60  ;;  %v9323_v60 = vld [vmem:[%s11298_s28 + $0x1650] ss:$56 sps:$4 sm:$0xff]  }
 0x3c4   : > { %6633 = vmatpush1.bf16.msra.mxu1 %v9278_v53  ;;  %6715 = vmatpush1.bf16.msra.mxu0 %v9299_v61  ;;  %v9311_v53 = vld [vmem:[%s11298_s28 + $0x1570] ss:$56 sps:$4 sm:$0xff]  }
 0x3c5   : > { %6643 = vmatprep.subr.bf16.mxu1 %v9286_v56  ;;  %6725 = vmatprep.subr.bf16.mxu0 %v9307_v62  ;;  %v9322_v56 = vld [vmem:[%s11298_s28 + $0x9a4] ss:$56 sps:$4 sm:$0xff]   ;;  %v9326_v61 = vld [vmem:[%s11298_s28 + $0xa10] ss:$56 sps:$4 sm:$0xff]  }
 0x3c6   : > { %v9331_v62 = vld [vmem:[%s11298_s28 + $0x16c4] ss:$56 sps:$4 sm:$0xff]  }
 0x44a   : > { %v918_v9 = vpop.f32.mrb[2].mxu0  ;;  %v11402_v10 = vpop.f32.mrb[2].mxu1 }
 0x44b   : > { %v919_v11 = vadd.f32 %v918_v9, %v811_v5  ;;  %v920_v12 = vpop.f32.mrb[3].mxu0  ;;  %v991_v13 = vpop.f32.mrb[3].mxu1  ;;  %v9329_v5 = vld [vmem:[%s11298_s28 + $0x16c0] ss:$56 sps:$4 sm:$0xff]   ;;  %v9340_v9 = vld [vmem:[%s11298_s28 + $0xaf4] ss:$56 sps:$4 sm:$0xff]  }
 0x44c   : > { %v921_v14 = vadd.f32 %v920_v12, %v815_v7  ;;  %v992_v15 = vadd.f32 %v991_v13, %v823_v8  ;;  %v9332_v7 = vld [vmem:[%s11298_s28 + $0xa80] ss:$56 sps:$4 sm:$0xff]   ;;  %v9337_v8 = vld [vmem:[%s11298_s28 + $0x1734] ss:$56 sps:$4 sm:$0xff]   ;;  %v9338_v12 = vld [vmem:[%s11298_s28 + $0xaf0] ss:$56 sps:$4 sm:$0xff]  }
 0x44d   : > { %v1136_v16 = vmax.f32 %v919_v11, 0.0  ;;  %v9335_v11 = vld [vmem:[%s11298_s28 + $0x1730] ss:$56 sps:$4 sm:$0xff]   ;;  %v9343_v13 = vld [vmem:[%s11298_s28 + $0x17a4] ss:$56 sps:$4 sm:$0xff]  }
 0x44e   : > { %v1137_v17 = vmax.f32 %v921_v14, 0.0  ;;  %v1139_v18 = vmax.f32 %v992_v15, 0.0  ;;  %v9346_v14 = vld [vmem:[%s11298_s28 + $0xb64] ss:$56 sps:$4 sm:$0xff]   ;;  %v9341_v15 = vld [vmem:[%s11298_s28 + $0x17a0] ss:$56 sps:$4 sm:$0xff]  }
 0x44f   : > { %v11407_v21 = vpack.c.bf16 %v1136_v16, %v1136_v16  ;;  %v9344_v16 = vld [vmem:[%s11298_s28 + $0xb60] ss:$56 sps:$4 sm:$0xff]  }
 0x450   : > { %v11404_v19 = vpack.c.bf16 %v1137_v17, %v1137_v17  ;;  %v11410_v23 = vpack.c.bf16 %v1139_v18, %v1139_v18  ;;  %v9349_v17 = vld [vmem:[%s11298_s28 + $0x1814] ss:$56 sps:$4 sm:$0xff]  }
 0x451   : > { %v9352_v18 = vld [vmem:[%s11298_s28 + $0xbd4] ss:$56 sps:$4 sm:$0xff]  }
 0x452   : > { %6634 = vmatprep.mubr.bf16.mxu1 %v11404_v19 }
 0x453   : > { %6635 = vmatmul.mubr.bf16.vlgmr.msra.gmra.mrb[8].mxu1 %v11407_v21 }
 0x454   : > { %6644 = vmatpush1.bf16.msra.mxu1 %v9284_v20  ;;  %6675 = vmatprep.mubr.bf16.mxu1 %v11410_v23  ;;  %v9347_v20 = vld [vmem:[%s11298_s28 + $0x1810] ss:$56 sps:$4 sm:$0xff]  }
 0x455   : > { %6645 = vmatprep.subr.bf16.mxu1 %v9292_v22  ;;  %v9350_v22 = vld [vmem:[%s11298_s28 + $0xbd0] ss:$56 sps:$4 sm:$0xff]  }
 0x458   : > { %6646 = vmatpush1.bf16.msra.mxu1 %v9290_v25  ;;  %v9355_v25 = vld [vmem:[%s11298_s28 + $0x1884] ss:$56 sps:$4 sm:$0xff]  }
 0x459   : > { %6647 = vmatprep.subr.bf16.mxu1 %v9298_v28  ;;  %v9358_v28 = vld [vmem:[%s11298_s28 + $0xc44] ss:$56 sps:$4 sm:$0xff]  }
 0x45a   : > { %v1060_v34 = vpop.f32.mrb[4].mxu0  ;;  %v11433_v35 = vpop.f32.mrb[4].mxu1 }
 0x45b   : > { %v1061_v36 = vadd.f32 %v1060_v34, %v827_v29  ;;  %v1062_v37 = vpop.f32.mrb[5].mxu0  ;;  %v1133_v38 = vpop.f32.mrb[5].mxu1  ;;  %v9353_v29 = vld [vmem:[%s11298_s28 + $0x1880] ss:$56 sps:$4 sm:$0xff]   ;;  %v9359_v34 = vld [vmem:[%s11298_s28 + $0x18f0] ss:$56 sps:$4 sm:$0xff]  }
 0x45c   : > { %v1063_v39 = vadd.f32 %v1062_v37, %v831_v30  ;;  %v1134_v40 = vadd.f32 %v1133_v38, %v839_v31  ;;  %6648 = vmatpush1.bf16.msra.mxu1 %v9296_v32  ;;  %v9356_v30 = vld [vmem:[%s11298_s28 + $0xc40] ss:$56 sps:$4 sm:$0xff]   ;;  %v11481_v31 = vsub.s32 2, %v11383_v0  ;;  %v9361_v32 = vld [vmem:[%s11298_s28 + $0x18f4] ss:$56 sps:$4 sm:$0xff]  }
 0x45d   : > { %v1140_v42 = vmax.f32 %v1061_v36, 0.0  ;;  %6649 = vmatprep.subr.bf16.mxu1 %v9304_v33  ;;  %v9364_v33 = vld [vmem:[%s11298_s28 + $0xcb4] ss:$56 sps:$4 sm:$0xff]   ;;  %v9362_v36 = vld [vmem:[%s11298_s28 + $0xcb0] ss:$56 sps:$4 sm:$0xff]  }
 0x45e   : > { %v1141_v44 = vmax.f32 %v1063_v39, 0.0  ;;  %v1143_v45 = vmax.f32 %v1134_v40, 0.0  ;;  %v819_v37 = vrot.slane %v11388_v2, %v11481_v31  ;;  %v9367_v38 = vld [vmem:[%s11298_s28 + $0x1964] ss:$56 sps:$4 sm:$0xff]   ;;  %v9365_v40 = vld [vmem:[%s11298_s28 + $0x1960] ss:$56 sps:$4 sm:$0xff]  }
 0x45f   : > { %v11441_v49 = vpack.c.bf16 %v1140_v42, %v1140_v42  ;;  %v9370_v39 = vld [vmem:[%s11298_s28 + $0xd24] ss:$56 sps:$4 sm:$0xff]  }
 0x460   : > { %v11437_v46 = vpack.c.bf16 %v1141_v44, %v1141_v44  ;;  %6650 = vmatpush1.bf16.msra.mxu1 %v9302_v41  ;;  %v11446_v52 = vpack.c.bf16 %v1143_v45, %v1143_v45  ;;  %v9368_v41 = vld [vmem:[%s11298_s28 + $0xd20] ss:$56 sps:$4 sm:$0xff]   ;;  %v990_v42 = vadd.f32 %v11402_v10, %v819_v37  ;;  %v9376_v44 = vld [vmem:[%s11298_s28 + $0xd94] ss:$56 sps:$4 sm:$0xff]   ;;  %v9371_v45 = vld [vmem:[%s11298_s28 + $0x19d0] ss:$56 sps:$4 sm:$0xff]  }
 0x461   : > { %6651 = vmatprep.subr.bf16.mxu1 %v9310_v43  ;;  %v9373_v43 = vld [vmem:[%s11298_s28 + $0x19d4] ss:$56 sps:$4 sm:$0xff]   ;;  %v9377_v10 = vld [vmem:[%s11298_s28 + $0x1a40] ss:$56 sps:$4 sm:$0xff]  }
 0x462   : > { %6716 = vmatprep.mubr.bf16.mxu0 %v11437_v46  ;;  %v9430_v37 = vld [vmem:[%s11298_s28 + $0x38c] ss:$56 sps:$4 sm:$0xff]  }
 0x463   : > { %6717 = vmatmul.mubr.bf16.vlgmr.msra.gmra.mrb[8].mxu0 %v11441_v49 }
 0x464   : > { %6726 = vmatpush1.bf16.msra.mxu0 %v9305_v47  ;;  %6652 = vmatpush1.bf16.msra.mxu1 %v9308_v48  ;;  %v9374_v47 = vld [vmem:[%s11298_s28 + $0xd90] ss:$56 sps:$4 sm:$0xff]   ;;  %v1138_v48 = vmax.f32 %v990_v42, 0.0  ;;  %v9431_v42 = vld [vmem:[%s11298_s28 + $0x240] ss:$56 sps:$4 sm:$0xff]  }
 0x465   : > { %6757 = vmatprep.mubr.bf16.mxu0 %v11446_v52  ;;  %6727 = vmatprep.subr.bf16.mxu0 %v9313_v50  ;;  %v9379_v50 = vld [vmem:[%s11298_s28 + $0x1a44] ss:$56 sps:$4 sm:$0xff]  }
 0x466   : > { %6653 = vmatprep.subr.bf16.mxu1 %v9316_v51  ;;  %v9382_v51 = vld [vmem:[%s11298_s28 + $0xc] ss:$56 sps:$4 sm:$0xff]  }
 0x468   : > { %6728 = vmatpush1.bf16.msra.mxu0 %v9311_v53  ;;  %6654 = vmatpush1.bf16.msra.mxu1 %v9314_v54  ;;  %v9380_v53 = vld [vmem:[%s11298_s28 + $0x8] ss:$56 sps:$4 sm:$0xff]   ;;  %v11502_v54 = vpack.c.bf16 %v1138_v48, %v1138_v48 }
 0x469   : > { %6729 = vmatprep.subr.bf16.mxu0 %v9319_v55  ;;  %6655 = vmatprep.subr.bf16.mxu1 %v9322_v56  ;;  %v834_v55 = vsub.s32 6, %v11383_v0  ;;  %v9385_v56 = vld [vmem:[%s11298_s28 + $0x1ab4] ss:$56 sps:$4 sm:$0xff]   ;;  %v9440_v48 = vld [vmem:[%s11298_s28 + $0x468] ss:$56 sps:$4 sm:$0xff]  }
 0x46a   : > { %v10472_v0 = vld [vmem:[%s11298_s28 + $0x17c8] ss:$56 sps:$4 sm:$0xff]  }
 0x46c   : > { %6730 = vmatpush1.bf16.msra.mxu0 %v9317_v57  ;;  %6656 = vmatpush1.bf16.msra.mxu1 %v9320_v58  ;;  %v9388_v57 = vld [vmem:[%s11298_s28 + $0x7c] ss:$56 sps:$4 sm:$0xff]   ;;  %v9383_v58 = vld [vmem:[%s11298_s28 + $0x1ab0] ss:$56 sps:$4 sm:$0xff]  }
 0x46d   : > { %6731 = vmatprep.subr.bf16.mxu0 %v9325_v59  ;;  %6657 = vmatprep.subr.bf16.mxu1 %v9328_v6  ;;  %v9386_v59 = vld [vmem:[%s11298_s28 + $0x78] ss:$56 sps:$4 sm:$0xff]   ;;  %v835_v6 = vrot.slane %v11388_v2, %v834_v55  ;;  %v9397_v2 = vld [vmem:[%s11298_s28 + $0x1b94] ss:$56 sps:$4 sm:$0xff]  }
 0x470   : > { %6732 = vmatpush1.bf16.msra.mxu0 %v9323_v60  ;;  %6658 = vmatpush1.bf16.msra.mxu1 %v9326_v61  ;;  %v9391_v60 = vld [vmem:[%s11298_s28 + $0x1b24] ss:$56 sps:$4 sm:$0xff]  }
 0x471   : > { %6733 = vmatprep.subr.bf16.mxu0 %v9331_v62  ;;  %6659 = vmatprep.subr.bf16.mxu1 %v9334_v63  ;;  %v9394_v61 = vld [vmem:[%s11298_s28 + $0xec] ss:$56 sps:$4 sm:$0xff]   ;;  %v9389_v62 = vld [vmem:[%s11298_s28 + $0x1b20] ss:$56 sps:$4 sm:$0xff]  }
 0x472   : > { %v9392_v63 = vld [vmem:[%s11298_s28 + $0xe8] ss:$56 sps:$4 sm:$0xff]  }
 0x474   : > { %6734 = vmatpush1.bf16.msra.mxu0 %v9329_v5  ;;  %6660 = vmatpush1.bf16.msra.mxu1 %v9332_v7  ;;  %v1132_v5 = vadd.f32 %v11433_v35, %v835_v6  ;;  %v9400_v7 = vld [vmem:[%s11298_s28 + $0x15c] ss:$56 sps:$4 sm:$0xff]   ;;  %v9401_v35 = vld [vmem:[%s11298_s28 + $0x10] ss:$56 sps:$4 sm:$0xff]  }
 0x475   : > { %6735 = vmatprep.subr.bf16.mxu0 %v9337_v8  ;;  %6661 = vmatprep.subr.bf16.mxu1 %v9340_v9  ;;  %v9395_v8 = vld [vmem:[%s11298_s28 + $0x1b90] ss:$56 sps:$4 sm:$0xff]   ;;  %v9457_v6 = vld [vmem:[%s11298_s28 + $0x404] ss:$56 sps:$4 sm:$0xff]  }
 0x476   : > { %v9398_v9 = vld [vmem:[%s11298_s28 + $0x158] ss:$56 sps:$4 sm:$0xff]  }
 0x478   : > { %6736 = vmatpush1.bf16.msra.mxu0 %v9335_v11  ;;  %6662 = vmatpush1.bf16.msra.mxu1 %v9338_v12  ;;  %v1142_v11 = vmax.f32 %v1132_v5, 0.0  ;;  %v9403_v12 = vld [vmem:[%s11298_s28 + $0x14] ss:$56 sps:$4 sm:$0xff]  }
 0x479   : > { %6737 = vmatprep.subr.bf16.mxu0 %v9343_v13  ;;  %6663 = vmatprep.subr.bf16.mxu1 %v9346_v14  ;;  %v9406_v13 = vld [vmem:[%s11298_s28 + $0x1cc] ss:$56 sps:$4 sm:$0xff]  }
 0x47a   : > { %v11526_v14 = vpack.c.bf16 %v1142_v11, %v1142_v11  ;;  %v9466_v5 = vld [vmem:[%s11298_s28 + $0x62c] ss:$56 sps:$4 sm:$0xff]   ;;  %v9467_v11 = vld [vmem:[%s11298_s28 + $0x4e0] ss:$56 sps:$4 sm:$0xff]  }
 0x47c   : > { %6738 = vmatpush1.bf16.msra.mxu0 %v9341_v15  ;;  %6664 = vmatpush1.bf16.msra.mxu1 %v9344_v16  ;;  %v9404_v15 = vld [vmem:[%s11298_s28 + $0x1c8] ss:$56 sps:$4 sm:$0xff]   ;;  %v9409_v16 = vld [vmem:[%s11298_s28 + $0x84] ss:$56 sps:$4 sm:$0xff]  }
 0x47d   : > { %6739 = vmatprep.subr.bf16.mxu0 %v9349_v17  ;;  %6665 = vmatprep.subr.bf16.mxu1 %v9352_v18  ;;  %v9412_v17 = vld [vmem:[%s11298_s28 + $0x23c] ss:$56 sps:$4 sm:$0xff]   ;;  %v9407_v18 = vld [vmem:[%s11298_s28 + $0x80] ss:$56 sps:$4 sm:$0xff]  }
 0x480   : > { %6740 = vmatpush1.bf16.msra.mxu0 %v9347_v20  ;;  %6666 = vmatpush1.bf16.msra.mxu1 %v9350_v22  ;;  %v9410_v20 = vld [vmem:[%s11298_s28 + $0x238] ss:$56 sps:$4 sm:$0xff]   ;;  %v9415_v22 = vld [vmem:[%s11298_s28 + $0xf4] ss:$56 sps:$4 sm:$0xff]  }
 0x481   : > { %6741 = vmatprep.subr.bf16.mxu0 %v9355_v25  ;;  %6667 = vmatprep.subr.bf16.mxu1 %v9358_v28  ;;  %v9418_v25 = vld [vmem:[%s11298_s28 + $0x2ac] ss:$56 sps:$4 sm:$0xff]   ;;  %v9413_v28 = vld [vmem:[%s11298_s28 + $0xf0] ss:$56 sps:$4 sm:$0xff]  }
 0x484   : > { %6742 = vmatpush1.bf16.msra.mxu0 %v9353_v29  ;;  %6668 = vmatpush1.bf16.msra.mxu1 %v9356_v30  ;;  %v9416_v29 = vld [vmem:[%s11298_s28 + $0x2a8] ss:$56 sps:$4 sm:$0xff]   ;;  %v9421_v30 = vld [vmem:[%s11298_s28 + $0x164] ss:$56 sps:$4 sm:$0xff]  }
 0x485   : > { %6743 = vmatprep.subr.bf16.mxu0 %v9361_v32  ;;  %6669 = vmatprep.subr.bf16.mxu1 %v9364_v33  ;;  %v9424_v32 = vld [vmem:[%s11298_s28 + $0x31c] ss:$56 sps:$4 sm:$0xff]   ;;  %v9419_v33 = vld [vmem:[%s11298_s28 + $0x160] ss:$56 sps:$4 sm:$0xff]  }
 0x488   : > { %6744 = vmatpush1.bf16.msra.mxu0 %v9359_v34  ;;  %6670 = vmatpush1.bf16.msra.mxu1 %v9362_v36  ;;  %v9422_v34 = vld [vmem:[%s11298_s28 + $0x318] ss:$56 sps:$4 sm:$0xff]   ;;  %v9427_v36 = vld [vmem:[%s11298_s28 + $0x1d4] ss:$56 sps:$4 sm:$0xff]  }
 0x489   : > { %6745 = vmatprep.subr.bf16.mxu0 %v9367_v38  ;;  %6671 = vmatprep.subr.bf16.mxu1 %v9370_v39  ;;  %v9425_v38 = vld [vmem:[%s11298_s28 + $0x1d0] ss:$56 sps:$4 sm:$0xff]  }
 0x48a   : > { %v9428_v39 = vld [vmem:[%s11298_s28 + $0x388] ss:$56 sps:$4 sm:$0xff]  }
 0x48c   : > { %6746 = vmatpush1.bf16.msra.mxu0 %v9365_v40  ;;  %6672 = vmatpush1.bf16.msra.mxu1 %v9368_v41  ;;  %v9433_v40 = vld [vmem:[%s11298_s28 + $0x244] ss:$56 sps:$4 sm:$0xff]  }
 0x48d   : > { %6747 = vmatprep.subr.bf16.mxu0 %v9373_v43  ;;  %6673 = vmatprep.subr.bf16.mxu1 %v9376_v44  ;;  %v9436_v41 = vld [vmem:[%s11298_s28 + $0x3fc] ss:$56 sps:$4 sm:$0xff]   ;;  %v9434_v43 = vld [vmem:[%s11298_s28 + $0x3f8] ss:$56 sps:$4 sm:$0xff]  }
 0x48e   : > { %v9439_v44 = vld [vmem:[%s11298_s28 + $0x2b4] ss:$56 sps:$4 sm:$0xff]  }
 0x490   : > { %6748 = vmatpush1.bf16.msra.mxu0 %v9371_v45  ;;  %6674 = vmatpush1.bf16.msra.mxu1 %v9374_v47  ;;  %v9442_v45 = vld [vmem:[%s11298_s28 + $0x46c] ss:$56 sps:$4 sm:$0xff]   ;;  %v9437_v47 = vld [vmem:[%s11298_s28 + $0x2b0] ss:$56 sps:$4 sm:$0xff]  }
 0x491   : > { %6749 = vmatprep.subr.bf16.mxu0 %v9379_v50  ;;  %6766 = vmatprep.subr.bf16.mxu1 %v9382_v51  ;;  %v9445_v50 = vld [vmem:[%s11298_s28 + $0x324] ss:$56 sps:$4 sm:$0xff]  }
 0x492   : > { %v9448_v51 = vld [vmem:[%s11298_s28 + $0x4dc] ss:$56 sps:$4 sm:$0xff]  }
 0x493   : > { %6676 = vmatmul.mubr.bf16.vlgmr.msra.gmra.mrb[8].mxu1 %v11502_v54 }
 0x494   : > { %6750 = vmatpush1.bf16.msra.mxu0 %v9377_v10  ;;  %6767 = vmatpush1.bf16.msra.mxu1 %v9380_v53  ;;  %v9443_v10 = vld [vmem:[%s11298_s28 + $0x320] ss:$56 sps:$4 sm:$0xff]  }
 0x495   : > { %6798 = vmatprep.mubr.bf16.mxu1 %v11404_v19  ;;  %6751 = vmatprep.subr.bf16.mxu0 %v9385_v56  ;;  %v9446_v53 = vld [vmem:[%s11298_s28 + $0x4d8] ss:$56 sps:$4 sm:$0xff]   ;;  %v9451_v56 = vld [vmem:[%s11298_s28 + $0x394] ss:$56 sps:$4 sm:$0xff]  }
 0x496   : > { %6768 = vmatprep.subr.bf16.mxu1 %v9388_v57  ;;  %v9454_v57 = vld [vmem:[%s11298_s28 + $0x54c] ss:$56 sps:$4 sm:$0xff]  }
 0x498   : > { %6752 = vmatpush1.bf16.msra.mxu0 %v9383_v58  ;;  %6769 = vmatpush1.bf16.msra.mxu1 %v9386_v59  ;;  %v9449_v58 = vld [vmem:[%s11298_s28 + $0x390] ss:$56 sps:$4 sm:$0xff]  }
 0x499   : > { %6753 = vmatprep.subr.bf16.mxu0 %v9391_v60  ;;  %6770 = vmatprep.subr.bf16.mxu1 %v9394_v61  ;;  %v9452_v59 = vld [vmem:[%s11298_s28 + $0x548] ss:$56 sps:$4 sm:$0xff]   ;;  %v9460_v60 = vld [vmem:[%s11298_s28 + $0x5bc] ss:$56 sps:$4 sm:$0xff]  }
 0x49a   : > { %v9455_v61 = vld [vmem:[%s11298_s28 + $0x400] ss:$56 sps:$4 sm:$0xff]  }
 0x49c   : > { %6754 = vmatpush1.bf16.msra.mxu0 %v9389_v62  ;;  %6771 = vmatpush1.bf16.msra.mxu1 %v9392_v63  ;;  %v9458_v62 = vld [vmem:[%s11298_s28 + $0x5b8] ss:$56 sps:$4 sm:$0xff]   ;;  %v9463_v63 = vld [vmem:[%s11298_s28 + $0x474] ss:$56 sps:$4 sm:$0xff]  }
 0x49d   : > { %6755 = vmatprep.subr.bf16.mxu0 %v9397_v2  ;;  %6772 = vmatprep.subr.bf16.mxu1 %v9400_v7  ;;  %v9461_v2 = vld [vmem:[%s11298_s28 + $0x470] ss:$56 sps:$4 sm:$0xff]  }
 0x49e   : > { %v9464_v7 = vld [vmem:[%s11298_s28 + $0x628] ss:$56 sps:$4 sm:$0xff]  }
 0x4a0   : > { %6756 = vmatpush1.bf16.msra.mxu0 %v9395_v8  ;;  %6773 = vmatpush1.bf16.msra.mxu1 %v9398_v9  ;;  %v9469_v8 = vld [vmem:[%s11298_s28 + $0x4e4] ss:$56 sps:$4 sm:$0xff]  }
 0x4a1   : > { %6930 = vmatprep.subr.bf16.mxu0 %v9403_v12  ;;  %6774 = vmatprep.subr.bf16.mxu1 %v9406_v13  ;;  %v9472_v9 = vld [vmem:[%s11298_s28 + $0x69c] ss:$56 sps:$4 sm:$0xff]   ;;  %v9470_v12 = vld [vmem:[%s11298_s28 + $0x698] ss:$56 sps:$4 sm:$0xff]  }
 0x4a2   : > { %v9475_v13 = vld [vmem:[%s11298_s28 + $0x554] ss:$56 sps:$4 sm:$0xff]  }
 0x4a3   : > { %6758 = vmatmul.mubr.bf16.vlgmr.msra.gmra.mrb[8].mxu0 %v11526_v14 }
 0x4a4   : > { %6931 = vmatpush1.bf16.msra.mxu0 %v9401_v35  ;;  %6962 = vmatprep.mubr.bf16.mxu0 %v11404_v19  ;;  %v9478_v35 = vld [vmem:[%s11298_s28 + $0x70c] ss:$56 sps:$4 sm:$0xff]  }
 0x4a5   : > { %6775 = vmatpush1.bf16.msra.mxu1 %v9404_v15  ;;  %6932 = vmatprep.subr.bf16.mxu0 %v9409_v16  ;;  %v9473_v15 = vld [vmem:[%s11298_s28 + $0x550] ss:$56 sps:$4 sm:$0xff]  }
 0x4a6   : > { %6776 = vmatprep.subr.bf16.mxu1 %v9412_v17  ;;  %v9476_v16 = vld [vmem:[%s11298_s28 + $0x708] ss:$56 sps:$4 sm:$0xff]   ;;  %v9481_v17 = vld [vmem:[%s11298_s28 + $0x5c4] ss:$56 sps:$4 sm:$0xff]  }
 0x4a8   : > { %6933 = vmatpush1.bf16.msra.mxu0 %v9407_v18  ;;  %v9484_v18 = vld [vmem:[%s11298_s28 + $0x77c] ss:$56 sps:$4 sm:$0xff]  }
 0x4a9   : > { %6777 = vmatpush1.bf16.msra.mxu1 %v9410_v20  ;;  %6934 = vmatprep.subr.bf16.mxu0 %v9415_v22  ;;  %v9479_v20 = vld [vmem:[%s11298_s28 + $0x5c0] ss:$56 sps:$4 sm:$0xff]  }
 0x4aa   : > { %6778 = vmatprep.subr.bf16.mxu1 %v9418_v25  ;;  %v9482_v22 = vld [vmem:[%s11298_s28 + $0x778] ss:$56 sps:$4 sm:$0xff]   ;;  %v9487_v25 = vld [vmem:[%s11298_s28 + $0x634] ss:$56 sps:$4 sm:$0xff]  }
 0x4ac   : > { %6935 = vmatpush1.bf16.msra.mxu0 %v9413_v28  ;;  %v9490_v28 = vld [vmem:[%s11298_s28 + $0x7ec] ss:$56 sps:$4 sm:$0xff]  }
 0x4ad   : > { %6779 = vmatpush1.bf16.msra.mxu1 %v9416_v29  ;;  %6936 = vmatprep.subr.bf16.mxu0 %v9421_v30  ;;  %v9485_v29 = vld [vmem:[%s11298_s28 + $0x630] ss:$56 sps:$4 sm:$0xff]  }
 0x4ae   : > { %6780 = vmatprep.subr.bf16.mxu1 %v9424_v32  ;;  %v9488_v30 = vld [vmem:[%s11298_s28 + $0x7e8] ss:$56 sps:$4 sm:$0xff]   ;;  %v9493_v32 = vld [vmem:[%s11298_s28 + $0x6a4] ss:$56 sps:$4 sm:$0xff]  }
 0x4b0   : > { %6937 = vmatpush1.bf16.msra.mxu0 %v9419_v33  ;;  %v9496_v33 = vld [vmem:[%s11298_s28 + $0x85c] ss:$56 sps:$4 sm:$0xff]  }
 0x4b1   : > { %6781 = vmatpush1.bf16.msra.mxu1 %v9422_v34  ;;  %6938 = vmatprep.subr.bf16.mxu0 %v9427_v36  ;;  %v9491_v34 = vld [vmem:[%s11298_s28 + $0x6a0] ss:$56 sps:$4 sm:$0xff]  }
 0x4b2   : > { %6782 = vmatprep.subr.bf16.mxu1 %v9430_v37  ;;  %v9494_v36 = vld [vmem:[%s11298_s28 + $0x858] ss:$56 sps:$4 sm:$0xff]   ;;  %v9499_v37 = vld [vmem:[%s11298_s28 + $0x714] ss:$56 sps:$4 sm:$0xff]  }
 0x4b4   : > { %6939 = vmatpush1.bf16.msra.mxu0 %v9425_v38  ;;  %v9502_v38 = vld [vmem:[%s11298_s28 + $0x8cc] ss:$56 sps:$4 sm:$0xff]  }
 0x4b5   : > { %6783 = vmatpush1.bf16.msra.mxu1 %v9428_v39  ;;  %6940 = vmatprep.subr.bf16.mxu0 %v9433_v40  ;;  %v9497_v39 = vld [vmem:[%s11298_s28 + $0x710] ss:$56 sps:$4 sm:$0xff]  }
 0x4b6   : > { %6784 = vmatprep.subr.bf16.mxu1 %v9436_v41  ;;  %v9500_v40 = vld [vmem:[%s11298_s28 + $0x8c8] ss:$56 sps:$4 sm:$0xff]   ;;  %v9505_v41 = vld [vmem:[%s11298_s28 + $0x784] ss:$56 sps:$4 sm:$0xff]  }
 0x4b8   : > { %6941 = vmatpush1.bf16.msra.mxu0 %v9431_v42  ;;  %v9508_v42 = vld [vmem:[%s11298_s28 + $0x93c] ss:$56 sps:$4 sm:$0xff]  }
 0x4b9   : > { %6785 = vmatpush1.bf16.msra.mxu1 %v9434_v43  ;;  %6942 = vmatprep.subr.bf16.mxu0 %v9439_v44  ;;  %v9503_v43 = vld [vmem:[%s11298_s28 + $0x780] ss:$56 sps:$4 sm:$0xff]  }
 0x4ba   : > { %6786 = vmatprep.subr.bf16.mxu1 %v9442_v45  ;;  %v9506_v44 = vld [vmem:[%s11298_s28 + $0x938] ss:$56 sps:$4 sm:$0xff]   ;;  %v9511_v45 = vld [vmem:[%s11298_s28 + $0x7f4] ss:$56 sps:$4 sm:$0xff]  }
 0x4bc   : > { %6943 = vmatpush1.bf16.msra.mxu0 %v9437_v47  ;;  %v9514_v47 = vld [vmem:[%s11298_s28 + $0x9ac] ss:$56 sps:$4 sm:$0xff]  }
 0x4bd   : > { %6787 = vmatpush1.bf16.msra.mxu1 %v9440_v48  ;;  %6944 = vmatprep.subr.bf16.mxu0 %v9445_v50  ;;  %v9509_v48 = vld [vmem:[%s11298_s28 + $0x7f0] ss:$56 sps:$4 sm:$0xff]  }
 0x4be   : > { %6788 = vmatprep.subr.bf16.mxu1 %v9448_v51  ;;  %v9512_v50 = vld [vmem:[%s11298_s28 + $0x9a8] ss:$56 sps:$4 sm:$0xff]   ;;  %v9517_v51 = vld [vmem:[%s11298_s28 + $0x864] ss:$56 sps:$4 sm:$0xff]  }
 0x4c0   : > { %6945 = vmatpush1.bf16.msra.mxu0 %v9443_v10  ;;  %v9520_v10 = vld [vmem:[%s11298_s28 + $0xa1c] ss:$56 sps:$4 sm:$0xff]  }
 0x4c1   : > { %6789 = vmatpush1.bf16.msra.mxu1 %v9446_v53  ;;  %6946 = vmatprep.subr.bf16.mxu0 %v9451_v56  ;;  %v9515_v53 = vld [vmem:[%s11298_s28 + $0x860] ss:$56 sps:$4 sm:$0xff]  }
 0x4c2   : > { %6790 = vmatprep.subr.bf16.mxu1 %v9454_v57  ;;  %v9518_v56 = vld [vmem:[%s11298_s28 + $0xa18] ss:$56 sps:$4 sm:$0xff]   ;;  %v9523_v57 = vld [vmem:[%s11298_s28 + $0x8d4] ss:$56 sps:$4 sm:$0xff]  }
 0x4c4   : > { %6947 = vmatpush1.bf16.msra.mxu0 %v9449_v58  ;;  %v9526_v58 = vld [vmem:[%s11298_s28 + $0xa8c] ss:$56 sps:$4 sm:$0xff]  }
 0x4c5   : > { %6791 = vmatpush1.bf16.msra.mxu1 %v9452_v59  ;;  %6948 = vmatprep.subr.bf16.mxu0 %v9457_v6  ;;  %v9521_v59 = vld [vmem:[%s11298_s28 + $0x8d0] ss:$56 sps:$4 sm:$0xff]  }
 0x4c6   : > { %6792 = vmatprep.subr.bf16.mxu1 %v9460_v60  ;;  %v9524_v6 = vld [vmem:[%s11298_s28 + $0xa88] ss:$56 sps:$4 sm:$0xff]   ;;  %v9529_v60 = vld [vmem:[%s11298_s28 + $0x944] ss:$56 sps:$4 sm:$0xff]  }
 0x4c8   : > { %6949 = vmatpush1.bf16.msra.mxu0 %v9455_v61  ;;  %v9532_v61 = vld [vmem:[%s11298_s28 + $0xafc] ss:$56 sps:$4 sm:$0xff]  }
 0x4c9   : > { %6793 = vmatpush1.bf16.msra.mxu1 %v9458_v62  ;;  %6950 = vmatprep.subr.bf16.mxu0 %v9463_v63  ;;  %v9527_v62 = vld [vmem:[%s11298_s28 + $0x940] ss:$56 sps:$4 sm:$0xff]  }
 0x4ca   : > { %6794 = vmatprep.subr.bf16.mxu1 %v9466_v5  ;;  %v9530_v63 = vld [vmem:[%s11298_s28 + $0xaf8] ss:$56 sps:$4 sm:$0xff]   ;;  %v9535_v5 = vld [vmem:[%s11298_s28 + $0x9b4] ss:$56 sps:$4 sm:$0xff]  }
 0x4cc   : > { %6951 = vmatpush1.bf16.msra.mxu0 %v9461_v2  ;;  %v9538_v2 = vld [vmem:[%s11298_s28 + $0xb6c] ss:$56 sps:$4 sm:$0xff]  }
 0x4cd   : > { %6795 = vmatpush1.bf16.msra.mxu1 %v9464_v7  ;;  %6952 = vmatprep.subr.bf16.mxu0 %v9469_v8  ;;  %v9533_v7 = vld [vmem:[%s11298_s28 + $0x9b0] ss:$56 sps:$4 sm:$0xff]  }
 0x4ce   : > { %6796 = vmatprep.subr.bf16.mxu1 %v9472_v9  ;;  %v9536_v8 = vld [vmem:[%s11298_s28 + $0xb68] ss:$56 sps:$4 sm:$0xff]   ;;  %v9541_v9 = vld [vmem:[%s11298_s28 + $0xa24] ss:$56 sps:$4 sm:$0xff]  }
 0x4d0   : > { %6953 = vmatpush1.bf16.msra.mxu0 %v9467_v11  ;;  %v9544_v11 = vld [vmem:[%s11298_s28 + $0xbdc] ss:$56 sps:$4 sm:$0xff]  }
 0x4d1   : > { %6797 = vmatpush1.bf16.msra.mxu1 %v9470_v12  ;;  %6954 = vmatprep.subr.bf16.mxu0 %v9475_v13  ;;  %v9539_v12 = vld [vmem:[%s11298_s28 + $0xa20] ss:$56 sps:$4 sm:$0xff]  }
 0x4d2   : > { %6807 = vmatprep.subr.bf16.mxu1 %v9478_v35  ;;  %v9542_v13 = vld [vmem:[%s11298_s28 + $0xbd8] ss:$56 sps:$4 sm:$0xff]   ;;  %v9547_v35 = vld [vmem:[%s11298_s28 + $0xa94] ss:$56 sps:$4 sm:$0xff]  }
 0x4d4   : > { %6799 = vmatmul.mubr.bf16.vlgmr.msra.gmra.mrb[12].mxu1 %v11407_v21  ;;  %6955 = vmatpush1.bf16.msra.mxu0 %v9473_v15  ;;  %v9550_v15 = vld [vmem:[%s11298_s28 + $0xc4c] ss:$56 sps:$4 sm:$0xff]  }
 0x4d5   : > { %6808 = vmatpush1.bf16.msra.mxu1 %v9476_v16  ;;  %6839 = vmatprep.mubr.bf16.mxu1 %v11410_v23  ;;  %v9545_v16 = vld [vmem:[%s11298_s28 + $0xa90] ss:$56 sps:$4 sm:$0xff]  }
 0x4d6   : > { %6956 = vmatprep.subr.bf16.mxu0 %v9481_v17  ;;  %6809 = vmatprep.subr.bf16.mxu1 %v9484_v18  ;;  %v9548_v17 = vld [vmem:[%s11298_s28 + $0xc48] ss:$56 sps:$4 sm:$0xff]   ;;  %v9553_v18 = vld [vmem:[%s11298_s28 + $0xb04] ss:$56 sps:$4 sm:$0xff]  }
 0x4d8   : > { %6957 = vmatpush1.bf16.msra.mxu0 %v9479_v20  ;;  %v9556_v20 = vld [vmem:[%s11298_s28 + $0xcbc] ss:$56 sps:$4 sm:$0xff]  }
 0x4d9   : > { %6810 = vmatpush1.bf16.msra.mxu1 %v9482_v22  ;;  %6958 = vmatprep.subr.bf16.mxu0 %v9487_v25  ;;  %v9551_v22 = vld [vmem:[%s11298_s28 + $0xb00] ss:$56 sps:$4 sm:$0xff]  }
 0x4da   : > { %6811 = vmatprep.subr.bf16.mxu1 %v9490_v28  ;;  %v9554_v25 = vld [vmem:[%s11298_s28 + $0xcb8] ss:$56 sps:$4 sm:$0xff]   ;;  %v9559_v28 = vld [vmem:[%s11298_s28 + $0xb74] ss:$56 sps:$4 sm:$0xff]  }
 0x4dc   : > { %6959 = vmatpush1.bf16.msra.mxu0 %v9485_v29  ;;  %v9562_v29 = vld [vmem:[%s11298_s28 + $0xd2c] ss:$56 sps:$4 sm:$0xff]  }
 0x4dd   : > { %6812 = vmatpush1.bf16.msra.mxu1 %v9488_v30  ;;  %6960 = vmatprep.subr.bf16.mxu0 %v9493_v32  ;;  %v9557_v30 = vld [vmem:[%s11298_s28 + $0xb70] ss:$56 sps:$4 sm:$0xff]  }
 0x4de   : > { %6813 = vmatprep.subr.bf16.mxu1 %v9496_v33  ;;  %v9560_v32 = vld [vmem:[%s11298_s28 + $0xd28] ss:$56 sps:$4 sm:$0xff]   ;;  %v9565_v33 = vld [vmem:[%s11298_s28 + $0xbe4] ss:$56 sps:$4 sm:$0xff]  }
 0x4e0   : > { %6961 = vmatpush1.bf16.msra.mxu0 %v9491_v34  ;;  %v9568_v34 = vld [vmem:[%s11298_s28 + $0xd9c] ss:$56 sps:$4 sm:$0xff]  }
 0x4e1   : > { %6814 = vmatpush1.bf16.msra.mxu1 %v9494_v36  ;;  %6971 = vmatprep.subr.bf16.mxu0 %v9499_v37  ;;  %v9563_v36 = vld [vmem:[%s11298_s28 + $0xbe0] ss:$56 sps:$4 sm:$0xff]  }
 0x4e2   : > { %6815 = vmatprep.subr.bf16.mxu1 %v9502_v38  ;;  %v9566_v37 = vld [vmem:[%s11298_s28 + $0xd98] ss:$56 sps:$4 sm:$0xff]   ;;  %v9571_v38 = vld [vmem:[%s11298_s28 + $0xc54] ss:$56 sps:$4 sm:$0xff]  }
 0x4e3   : > { %6963 = vmatmul.mubr.bf16.vlgmr.msra.gmra.mrb[12].mxu0 %v11407_v21 }
 0x4e4   : > { %6972 = vmatpush1.bf16.msra.mxu0 %v9497_v39  ;;  %7003 = vmatprep.mubr.bf16.mxu0 %v11410_v23  ;;  %v9574_v39 = vld [vmem:[%s11298_s28 + $0xe0c] ss:$56 sps:$4 sm:$0xff]  }
 0x4e5   : > { %6816 = vmatpush1.bf16.msra.mxu1 %v9500_v40  ;;  %6973 = vmatprep.subr.bf16.mxu0 %v9505_v41  ;;  %v9569_v40 = vld [vmem:[%s11298_s28 + $0xc50] ss:$56 sps:$4 sm:$0xff]  }
 0x4e6   : > { %6817 = vmatprep.subr.bf16.mxu1 %v9508_v42  ;;  %v9572_v41 = vld [vmem:[%s11298_s28 + $0xe08] ss:$56 sps:$4 sm:$0xff]   ;;  %v9577_v42 = vld [vmem:[%s11298_s28 + $0xcc4] ss:$56 sps:$4 sm:$0xff]  }
 0x4e8   : > { %6974 = vmatpush1.bf16.msra.mxu0 %v9503_v43  ;;  %v9580_v43 = vld [vmem:[%s11298_s28 + $0xe7c] ss:$56 sps:$4 sm:$0xff]  }
 0x4e9   : > { %6818 = vmatpush1.bf16.msra.mxu1 %v9506_v44  ;;  %6975 = vmatprep.subr.bf16.mxu0 %v9511_v45  ;;  %v9575_v44 = vld [vmem:[%s11298_s28 + $0xcc0] ss:$56 sps:$4 sm:$0xff]  }
 0x4ea   : > { %6819 = vmatprep.subr.bf16.mxu1 %v9514_v47  ;;  %v9578_v45 = vld [vmem:[%s11298_s28 + $0xe78] ss:$56 sps:$4 sm:$0xff]   ;;  %v9583_v47 = vld [vmem:[%s11298_s28 + $0xd34] ss:$56 sps:$4 sm:$0xff]  }
 0x4ec   : > { %6976 = vmatpush1.bf16.msra.mxu0 %v9509_v48  ;;  %v9586_v48 = vld [vmem:[%s11298_s28 + $0xeec] ss:$56 sps:$4 sm:$0xff]  }
 0x4ed   : > { %6820 = vmatpush1.bf16.msra.mxu1 %v9512_v50  ;;  %6977 = vmatprep.subr.bf16.mxu0 %v9517_v51  ;;  %v9581_v50 = vld [vmem:[%s11298_s28 + $0xd30] ss:$56 sps:$4 sm:$0xff]  }
 0x4ee   : > { %6821 = vmatprep.subr.bf16.mxu1 %v9520_v10  ;;  %v9584_v51 = vld [vmem:[%s11298_s28 + $0xee8] ss:$56 sps:$4 sm:$0xff]   ;;  %v9589_v10 = vld [vmem:[%s11298_s28 + $0xda4] ss:$56 sps:$4 sm:$0xff]  }
 0x4f0   : > { %6978 = vmatpush1.bf16.msra.mxu0 %v9515_v53  ;;  %v9592_v53 = vld [vmem:[%s11298_s28 + $0xf5c] ss:$56 sps:$4 sm:$0xff]  }
 0x4f1   : > { %6822 = vmatpush1.bf16.msra.mxu1 %v9518_v56  ;;  %6979 = vmatprep.subr.bf16.mxu0 %v9523_v57  ;;  %v9587_v56 = vld [vmem:[%s11298_s28 + $0xda0] ss:$56 sps:$4 sm:$0xff]  }
 0x4f2   : > { %6823 = vmatprep.subr.bf16.mxu1 %v9526_v58  ;;  %v9590_v57 = vld [vmem:[%s11298_s28 + $0xf58] ss:$56 sps:$4 sm:$0xff]   ;;  %v9595_v58 = vld [vmem:[%s11298_s28 + $0xe14] ss:$56 sps:$4 sm:$0xff]  }
 0x4f4   : > { %6980 = vmatpush1.bf16.msra.mxu0 %v9521_v59  ;;  %v9598_v59 = vld [vmem:[%s11298_s28 + $0xfcc] ss:$56 sps:$4 sm:$0xff]  }
 0x4f5   : > { %6824 = vmatpush1.bf16.msra.mxu1 %v9524_v6  ;;  %6981 = vmatprep.subr.bf16.mxu0 %v9529_v60  ;;  %v9593_v6 = vld [vmem:[%s11298_s28 + $0xe10] ss:$56 sps:$4 sm:$0xff]  }
 0x4f6   : > { %6825 = vmatprep.subr.bf16.mxu1 %v9532_v61  ;;  %v9596_v60 = vld [vmem:[%s11298_s28 + $0xfc8] ss:$56 sps:$4 sm:$0xff]   ;;  %v9601_v61 = vld [vmem:[%s11298_s28 + $0xe84] ss:$56 sps:$4 sm:$0xff]  }
 0x4f8   : > { %6982 = vmatpush1.bf16.msra.mxu0 %v9527_v62  ;;  %v9604_v62 = vld [vmem:[%s11298_s28 + $0x103c] ss:$56 sps:$4 sm:$0xff]  }
 0x4f9   : > { %6826 = vmatpush1.bf16.msra.mxu1 %v9530_v63  ;;  %6983 = vmatprep.subr.bf16.mxu0 %v9535_v5  ;;  %v9599_v63 = vld [vmem:[%s11298_s28 + $0xe80] ss:$56 sps:$4 sm:$0xff]  }
 0x4fa   : > { %6827 = vmatprep.subr.bf16.mxu1 %v9538_v2  ;;  %v9602_v5 = vld [vmem:[%s11298_s28 + $0x1038] ss:$56 sps:$4 sm:$0xff]   ;;  %v9607_v2 = vld [vmem:[%s11298_s28 + $0xef4] ss:$56 sps:$4 sm:$0xff]  }
 0x4fc   : > { %6984 = vmatpush1.bf16.msra.mxu0 %v9533_v7  ;;  %v9610_v7 = vld [vmem:[%s11298_s28 + $0x10ac] ss:$56 sps:$4 sm:$0xff]  }
 0x4fd   : > { %6828 = vmatpush1.bf16.msra.mxu1 %v9536_v8  ;;  %6985 = vmatprep.subr.bf16.mxu0 %v9541_v9  ;;  %v9605_v8 = vld [vmem:[%s11298_s28 + $0xef0] ss:$56 sps:$4 sm:$0xff]  }
 0x4fe   : > { %6829 = vmatprep.subr.bf16.mxu1 %v9544_v11  ;;  %v9608_v9 = vld [vmem:[%s11298_s28 + $0x10a8] ss:$56 sps:$4 sm:$0xff]   ;;  %v9613_v11 = vld [vmem:[%s11298_s28 + $0xf64] ss:$56 sps:$4 sm:$0xff]  }
 0x500   : > { %6986 = vmatpush1.bf16.msra.mxu0 %v9539_v12  ;;  %v9616_v12 = vld [vmem:[%s11298_s28 + $0x111c] ss:$56 sps:$4 sm:$0xff]  }
 0x501   : > { %6830 = vmatpush1.bf16.msra.mxu1 %v9542_v13  ;;  %6987 = vmatprep.subr.bf16.mxu0 %v9547_v35  ;;  %v9611_v13 = vld [vmem:[%s11298_s28 + $0xf60] ss:$56 sps:$4 sm:$0xff]  }
 0x502   : > { %6831 = vmatprep.subr.bf16.mxu1 %v9550_v15  ;;  %v9614_v35 = vld [vmem:[%s11298_s28 + $0x1118] ss:$56 sps:$4 sm:$0xff]   ;;  %v9619_v15 = vld [vmem:[%s11298_s28 + $0xfd4] ss:$56 sps:$4 sm:$0xff]  }
 0x504   : > { %6988 = vmatpush1.bf16.msra.mxu0 %v9545_v16  ;;  %v9622_v16 = vld [vmem:[%s11298_s28 + $0x118c] ss:$56 sps:$4 sm:$0xff]  }
 0x505   : > { %6832 = vmatpush1.bf16.msra.mxu1 %v9548_v17  ;;  %6989 = vmatprep.subr.bf16.mxu0 %v9553_v18  ;;  %v9617_v17 = vld [vmem:[%s11298_s28 + $0xfd0] ss:$56 sps:$4 sm:$0xff]  }
 0x506   : > { %6833 = vmatprep.subr.bf16.mxu1 %v9556_v20  ;;  %v9620_v18 = vld [vmem:[%s11298_s28 + $0x1188] ss:$56 sps:$4 sm:$0xff]   ;;  %v9625_v20 = vld [vmem:[%s11298_s28 + $0x1044] ss:$56 sps:$4 sm:$0xff]  }
 0x508   : > { %6990 = vmatpush1.bf16.msra.mxu0 %v9551_v22  ;;  %v9628_v22 = vld [vmem:[%s11298_s28 + $0x11fc] ss:$56 sps:$4 sm:$0xff]  }
 0x509   : > { %6834 = vmatpush1.bf16.msra.mxu1 %v9554_v25  ;;  %6991 = vmatprep.subr.bf16.mxu0 %v9559_v28  ;;  %v9623_v25 = vld [vmem:[%s11298_s28 + $0x1040] ss:$56 sps:$4 sm:$0xff]  }
 0x50a   : > { %6835 = vmatprep.subr.bf16.mxu1 %v9562_v29  ;;  %v9626_v28 = vld [vmem:[%s11298_s28 + $0x11f8] ss:$56 sps:$4 sm:$0xff]   ;;  %v9631_v29 = vld [vmem:[%s11298_s28 + $0x10b4] ss:$56 sps:$4 sm:$0xff]  }
 0x50c   : > { %6992 = vmatpush1.bf16.msra.mxu0 %v9557_v30  ;;  %v9634_v30 = vld [vmem:[%s11298_s28 + $0x126c] ss:$56 sps:$4 sm:$0xff]  }
 0x50d   : > { %6836 = vmatpush1.bf16.msra.mxu1 %v9560_v32  ;;  %6993 = vmatprep.subr.bf16.mxu0 %v9565_v33  ;;  %v9629_v32 = vld [vmem:[%s11298_s28 + $0x10b0] ss:$56 sps:$4 sm:$0xff]  }
 0x50e   : > { %6837 = vmatprep.subr.bf16.mxu1 %v9568_v34  ;;  %v9632_v33 = vld [vmem:[%s11298_s28 + $0x1268] ss:$56 sps:$4 sm:$0xff]   ;;  %v9637_v34 = vld [vmem:[%s11298_s28 + $0x1124] ss:$56 sps:$4 sm:$0xff]  }
 0x510   : > { %6994 = vmatpush1.bf16.msra.mxu0 %v9563_v36  ;;  %v9640_v36 = vld [vmem:[%s11298_s28 + $0x12dc] ss:$56 sps:$4 sm:$0xff]  }
 0x511   : > { %6838 = vmatpush1.bf16.msra.mxu1 %v9566_v37  ;;  %6995 = vmatprep.subr.bf16.mxu0 %v9571_v38  ;;  %v9635_v37 = vld [vmem:[%s11298_s28 + $0x1120] ss:$56 sps:$4 sm:$0xff]  }
 0x512   : > { %6848 = vmatprep.subr.bf16.mxu1 %v9574_v39  ;;  %v9638_v38 = vld [vmem:[%s11298_s28 + $0x12d8] ss:$56 sps:$4 sm:$0xff]   ;;  %v9643_v39 = vld [vmem:[%s11298_s28 + $0x1194] ss:$56 sps:$4 sm:$0xff]  }
 0x514   : > { %6840 = vmatmul.mubr.bf16.vlgmr.msra.gmra.mrb[12].mxu1 %v11502_v54  ;;  %6996 = vmatpush1.bf16.msra.mxu0 %v9569_v40  ;;  %v9646_v40 = vld [vmem:[%s11298_s28 + $0x134c] ss:$56 sps:$4 sm:$0xff]  }
 0x515   : > { %6849 = vmatpush1.bf16.msra.mxu1 %v9572_v41  ;;  %6880 = vmatprep.mubr.bf16.mxu1 %v11437_v46  ;;  %v9641_v41 = vld [vmem:[%s11298_s28 + $0x1190] ss:$56 sps:$4 sm:$0xff]  }
 0x516   : > { %6997 = vmatprep.subr.bf16.mxu0 %v9577_v42  ;;  %6850 = vmatprep.subr.bf16.mxu1 %v9580_v43  ;;  %v9644_v42 = vld [vmem:[%s11298_s28 + $0x1348] ss:$56 sps:$4 sm:$0xff]   ;;  %v9649_v43 = vld [vmem:[%s11298_s28 + $0x1204] ss:$56 sps:$4 sm:$0xff]  }
 0x518   : > { %6998 = vmatpush1.bf16.msra.mxu0 %v9575_v44  ;;  %v9652_v44 = vld [vmem:[%s11298_s28 + $0x13bc] ss:$56 sps:$4 sm:$0xff]  }
 0x519   : > { %6851 = vmatpush1.bf16.msra.mxu1 %v9578_v45  ;;  %6999 = vmatprep.subr.bf16.mxu0 %v9583_v47  ;;  %v9647_v45 = vld [vmem:[%s11298_s28 + $0x1200] ss:$56 sps:$4 sm:$0xff]  }
 0x51a   : > { %6852 = vmatprep.subr.bf16.mxu1 %v9586_v48  ;;  %v9650_v47 = vld [vmem:[%s11298_s28 + $0x13b8] ss:$56 sps:$4 sm:$0xff]   ;;  %v9655_v48 = vld [vmem:[%s11298_s28 + $0x1274] ss:$56 sps:$4 sm:$0xff]  }
 0x51c   : > { %7000 = vmatpush1.bf16.msra.mxu0 %v9581_v50  ;;  %v9658_v50 = vld [vmem:[%s11298_s28 + $0x142c] ss:$56 sps:$4 sm:$0xff]  }
 0x51d   : > { %6853 = vmatpush1.bf16.msra.mxu1 %v9584_v51  ;;  %7001 = vmatprep.subr.bf16.mxu0 %v9589_v10  ;;  %v9653_v51 = vld [vmem:[%s11298_s28 + $0x1270] ss:$56 sps:$4 sm:$0xff]  }
 0x51e   : > { %6854 = vmatprep.subr.bf16.mxu1 %v9592_v53  ;;  %v9656_v10 = vld [vmem:[%s11298_s28 + $0x1428] ss:$56 sps:$4 sm:$0xff]   ;;  %v9661_v53 = vld [vmem:[%s11298_s28 + $0x12e4] ss:$56 sps:$4 sm:$0xff]  }
 0x520   : > { %7002 = vmatpush1.bf16.msra.mxu0 %v9587_v56  ;;  %v9664_v56 = vld [vmem:[%s11298_s28 + $0x149c] ss:$56 sps:$4 sm:$0xff]  }
 0x521   : > { %6855 = vmatpush1.bf16.msra.mxu1 %v9590_v57  ;;  %7012 = vmatprep.subr.bf16.mxu0 %v9595_v58  ;;  %v9659_v57 = vld [vmem:[%s11298_s28 + $0x12e0] ss:$56 sps:$4 sm:$0xff]  }
 0x522   : > { %6856 = vmatprep.subr.bf16.mxu1 %v9598_v59  ;;  %v9662_v58 = vld [vmem:[%s11298_s28 + $0x1498] ss:$56 sps:$4 sm:$0xff]   ;;  %v9667_v59 = vld [vmem:[%s11298_s28 + $0x1354] ss:$56 sps:$4 sm:$0xff]  }
 0x523   : > { %7004 = vmatmul.mubr.bf16.vlgmr.msra.gmra.mrb[12].mxu0 %v11502_v54 }
 0x524   : > { %7013 = vmatpush1.bf16.msra.mxu0 %v9593_v6  ;;  %7044 = vmatprep.mubr.bf16.mxu0 %v11437_v46  ;;  %v9670_v6 = vld [vmem:[%s11298_s28 + $0x150c] ss:$56 sps:$4 sm:$0xff]  }
 0x525   : > { %6857 = vmatpush1.bf16.msra.mxu1 %v9596_v60  ;;  %7014 = vmatprep.subr.bf16.mxu0 %v9601_v61  ;;  %v9665_v60 = vld [vmem:[%s11298_s28 + $0x1350] ss:$56 sps:$4 sm:$0xff]  }
 0x526   : > { %6858 = vmatprep.subr.bf16.mxu1 %v9604_v62  ;;  %v9668_v61 = vld [vmem:[%s11298_s28 + $0x1508] ss:$56 sps:$4 sm:$0xff]   ;;  %v9673_v62 = vld [vmem:[%s11298_s28 + $0x13c4] ss:$56 sps:$4 sm:$0xff]  }
 0x528   : > { %7015 = vmatpush1.bf16.msra.mxu0 %v9599_v63  ;;  %v9676_v63 = vld [vmem:[%s11298_s28 + $0x157c] ss:$56 sps:$4 sm:$0xff]  }
 0x529   : > { %6859 = vmatpush1.bf16.msra.mxu1 %v9602_v5  ;;  %7016 = vmatprep.subr.bf16.mxu0 %v9607_v2  ;;  %v9671_v5 = vld [vmem:[%s11298_s28 + $0x13c0] ss:$56 sps:$4 sm:$0xff]  }
 0x52a   : > { %6860 = vmatprep.subr.bf16.mxu1 %v9610_v7  ;;  %v9674_v2 = vld [vmem:[%s11298_s28 + $0x1578] ss:$56 sps:$4 sm:$0xff]   ;;  %v9679_v7 = vld [vmem:[%s11298_s28 + $0x1434] ss:$56 sps:$4 sm:$0xff]  }
 0x52c   : > { %7017 = vmatpush1.bf16.msra.mxu0 %v9605_v8  ;;  %v9682_v8 = vld [vmem:[%s11298_s28 + $0x15ec] ss:$56 sps:$4 sm:$0xff]  }
 0x52d   : > { %6861 = vmatpush1.bf16.msra.mxu1 %v9608_v9  ;;  %7018 = vmatprep.subr.bf16.mxu0 %v9613_v11  ;;  %v9677_v9 = vld [vmem:[%s11298_s28 + $0x1430] ss:$56 sps:$4 sm:$0xff]  }
 0x52e   : > { %6862 = vmatprep.subr.bf16.mxu1 %v9616_v12  ;;  %v9680_v11 = vld [vmem:[%s11298_s28 + $0x15e8] ss:$56 sps:$4 sm:$0xff]   ;;  %v9685_v12 = vld [vmem:[%s11298_s28 + $0x14a4] ss:$56 sps:$4 sm:$0xff]  }
 0x530   : > { %7019 = vmatpush1.bf16.msra.mxu0 %v9611_v13  ;;  %v9688_v13 = vld [vmem:[%s11298_s28 + $0x165c] ss:$56 sps:$4 sm:$0xff]  }
 0x531   : > { %6863 = vmatpush1.bf16.msra.mxu1 %v9614_v35  ;;  %7020 = vmatprep.subr.bf16.mxu0 %v9619_v15  ;;  %v9683_v35 = vld [vmem:[%s11298_s28 + $0x14a0] ss:$56 sps:$4 sm:$0xff]  }
 0x532   : > { %6864 = vmatprep.subr.bf16.mxu1 %v9622_v16  ;;  %v9686_v15 = vld [vmem:[%s11298_s28 + $0x1658] ss:$56 sps:$4 sm:$0xff]   ;;  %v9691_v16 = vld [vmem:[%s11298_s28 + $0x1514] ss:$56 sps:$4 sm:$0xff]  }
 0x534   : > { %7021 = vmatpush1.bf16.msra.mxu0 %v9617_v17  ;;  %v9694_v17 = vld [vmem:[%s11298_s28 + $0x16cc] ss:$56 sps:$4 sm:$0xff]  }
 0x535   : > { %6865 = vmatpush1.bf16.msra.mxu1 %v9620_v18  ;;  %7022 = vmatprep.subr.bf16.mxu0 %v9625_v20  ;;  %v9689_v18 = vld [vmem:[%s11298_s28 + $0x1510] ss:$56 sps:$4 sm:$0xff]  }
 0x536   : > { %6866 = vmatprep.subr.bf16.mxu1 %v9628_v22  ;;  %v9692_v20 = vld [vmem:[%s11298_s28 + $0x16c8] ss:$56 sps:$4 sm:$0xff]   ;;  %v9697_v22 = vld [vmem:[%s11298_s28 + $0x1584] ss:$56 sps:$4 sm:$0xff]  }
 0x538   : > { %7023 = vmatpush1.bf16.msra.mxu0 %v9623_v25  ;;  %v9700_v25 = vld [vmem:[%s11298_s28 + $0x173c] ss:$56 sps:$4 sm:$0xff]  }
 0x539   : > { %6867 = vmatpush1.bf16.msra.mxu1 %v9626_v28  ;;  %7024 = vmatprep.subr.bf16.mxu0 %v9631_v29  ;;  %v9695_v28 = vld [vmem:[%s11298_s28 + $0x1580] ss:$56 sps:$4 sm:$0xff]  }
 0x53a   : > { %6868 = vmatprep.subr.bf16.mxu1 %v9634_v30  ;;  %v9698_v29 = vld [vmem:[%s11298_s28 + $0x1738] ss:$56 sps:$4 sm:$0xff]   ;;  %v9703_v30 = vld [vmem:[%s11298_s28 + $0x15f4] ss:$56 sps:$4 sm:$0xff]  }
 0x53c   : > { %7025 = vmatpush1.bf16.msra.mxu0 %v9629_v32 }
 0x53d   : > { %6869 = vmatpush1.bf16.msra.mxu1 %v9632_v33  ;;  %7026 = vmatprep.subr.bf16.mxu0 %v9637_v34  ;;  %v9706_v33 = vld [vmem:[%s11298_s28 + $0x17ac] ss:$56 sps:$4 sm:$0xff]  }
 0x53e   : > { %6870 = vmatprep.subr.bf16.mxu1 %v9640_v36 }
 0x540   : > { %7027 = vmatpush1.bf16.msra.mxu0 %v9635_v37  ;;  %v9701_v37 = vld [vmem:[%s11298_s28 + $0x15f0] ss:$56 sps:$4 sm:$0xff]  }
 0x541   : > { %6871 = vmatpush1.bf16.msra.mxu1 %v9638_v38  ;;  %7028 = vmatprep.subr.bf16.mxu0 %v9643_v39  ;;  %v9704_v39 = vld [vmem:[%s11298_s28 + $0x17a8] ss:$56 sps:$4 sm:$0xff]  }
 0x542   : > { %6872 = vmatprep.subr.bf16.mxu1 %v9646_v40  ;;  %v9709_v40 = vld [vmem:[%s11298_s28 + $0x1664] ss:$56 sps:$4 sm:$0xff]  }
 0x544   : > { %7029 = vmatpush1.bf16.msra.mxu0 %v9641_v41  ;;  %v9712_v41 = vld [vmem:[%s11298_s28 + $0x181c] ss:$56 sps:$4 sm:$0xff]  }
 0x545   : > { %6873 = vmatpush1.bf16.msra.mxu1 %v9644_v42  ;;  %7030 = vmatprep.subr.bf16.mxu0 %v9649_v43  ;;  %v9707_v42 = vld [vmem:[%s11298_s28 + $0x1660] ss:$56 sps:$4 sm:$0xff]  }
 0x546   : > { %6874 = vmatprep.subr.bf16.mxu1 %v9652_v44  ;;  %v9710_v43 = vld [vmem:[%s11298_s28 + $0x1818] ss:$56 sps:$4 sm:$0xff]   ;;  %v9715_v44 = vld [vmem:[%s11298_s28 + $0x16d4] ss:$56 sps:$4 sm:$0xff]  }
 0x548   : > { %7031 = vmatpush1.bf16.msra.mxu0 %v9647_v45  ;;  %v2048_v45 = vld [vmem:[%s11751_s23] sm:$0xff] }
 0x549   : > { %6875 = vmatpush1.bf16.msra.mxu1 %v9650_v47  ;;  %7032 = vmatprep.subr.bf16.mxu0 %v9655_v48  ;;  %v9718_v47 = vld [vmem:[%s11298_s28 + $0x188c] ss:$56 sps:$4 sm:$0xff]   ;;  %v9713_v48 = vld [vmem:[%s11298_s28 + $0x16d0] ss:$56 sps:$4 sm:$0xff]  }
 0x54a   : > { %6876 = vmatprep.subr.bf16.mxu1 %v9658_v50  ;;  %v2055_v50 = vrot.slane %v2048_v45, %v11386_v1 }
 0x54c   : > { %7033 = vmatpush1.bf16.msra.mxu0 %v9653_v51  ;;  %v9716_v51 = vld [vmem:[%s11298_s28 + $0x1888] ss:$56 sps:$4 sm:$0xff]  }
 0x54d   : > { %6877 = vmatpush1.bf16.msra.mxu1 %v9656_v10  ;;  %7034 = vmatprep.subr.bf16.mxu0 %v9661_v53  ;;  %v9721_v10 = vld [vmem:[%s11298_s28 + $0x1744] ss:$56 sps:$4 sm:$0xff]   ;;  %v2059_v53 = vrot.slane %v2048_v45, %v11391_v3 }
 0x54e   : > { %6878 = vmatprep.subr.bf16.mxu1 %v9664_v56  ;;  %v9724_v56 = vld [vmem:[%s11298_s28 + $0x18fc] ss:$56 sps:$4 sm:$0xff]   ;;  %v9772_v45 = vld [vmem:[%s11298_s28 + $0x8c] ss:$56 sps:$4 sm:$0xff]  }
 0x550   : > { %7035 = vmatpush1.bf16.msra.mxu0 %v9659_v57  ;;  %v9719_v57 = vld [vmem:[%s11298_s28 + $0x1740] ss:$56 sps:$4 sm:$0xff]  }
 0x551   : > { %6879 = vmatpush1.bf16.msra.mxu1 %v9662_v58  ;;  %7036 = vmatprep.subr.bf16.mxu0 %v9667_v59  ;;  %v9722_v59 = vld [vmem:[%s11298_s28 + $0x18f8] ss:$56 sps:$4 sm:$0xff]  }
 0x552   : > { %6889 = vmatprep.subr.bf16.mxu1 %v9670_v6  ;;  %v9727_v6 = vld [vmem:[%s11298_s28 + $0x17b4] ss:$56 sps:$4 sm:$0xff]  }
 0x554   : > { %6881 = vmatmul.mubr.bf16.vlgmr.msra.gmra.mrb[12].mxu1 %v11441_v49  ;;  %7037 = vmatpush1.bf16.msra.mxu0 %v9665_v60 }
 0x555   : > { %6890 = vmatpush1.bf16.msra.mxu1 %v9668_v61  ;;  %6921 = vmatprep.mubr.bf16.mxu1 %v11446_v52 }
 0x556   : > { %7038 = vmatprep.subr.bf16.mxu0 %v9673_v62  ;;  %6891 = vmatprep.subr.bf16.mxu1 %v9676_v63  ;;  %v9730_v62 = vld [vmem:[%s11298_s28 + $0x196c] ss:$56 sps:$4 sm:$0xff]  }
 0x558   : > { %7039 = vmatpush1.bf16.msra.mxu0 %v9671_v5 }
 0x559   : > { %6892 = vmatpush1.bf16.msra.mxu1 %v9674_v2  ;;  %7040 = vmatprep.subr.bf16.mxu0 %v9679_v7 }
 0x55a   : > { %6893 = vmatprep.subr.bf16.mxu1 %v9682_v8  ;;  %v9725_v8 = vld [vmem:[%s11298_s28 + $0x17b0] ss:$56 sps:$4 sm:$0xff]  }
 0x55c   : > { %7041 = vmatpush1.bf16.msra.mxu0 %v9677_v9 }
 0x55d   : > { %6894 = vmatpush1.bf16.msra.mxu1 %v9680_v11  ;;  %7042 = vmatprep.subr.bf16.mxu0 %v9685_v12  ;;  %v9728_v11 = vld [vmem:[%s11298_s28 + $0x1968] ss:$56 sps:$4 sm:$0xff]   ;;  %v9733_v12 = vld [vmem:[%s11298_s28 + $0x1824] ss:$56 sps:$4 sm:$0xff]  }
 0x55e   : > { %6895 = vmatprep.subr.bf16.mxu1 %v9688_v13  ;;  %v9736_v13 = vld [vmem:[%s11298_s28 + $0x19dc] ss:$56 sps:$4 sm:$0xff]  }
 0x560   : > { %7043 = vmatpush1.bf16.msra.mxu0 %v9683_v35  ;;  %v9731_v35 = vld [vmem:[%s11298_s28 + $0x1820] ss:$56 sps:$4 sm:$0xff]  }
 0x561   : > { %6896 = vmatpush1.bf16.msra.mxu1 %v9686_v15  ;;  %7053 = vmatprep.subr.bf16.mxu0 %v9691_v16  ;;  %v9734_v15 = vld [vmem:[%s11298_s28 + $0x19d8] ss:$56 sps:$4 sm:$0xff]   ;;  %v9739_v16 = vld [vmem:[%s11298_s28 + $0x1894] ss:$56 sps:$4 sm:$0xff]  }
 0x562   : > { %6897 = vmatprep.subr.bf16.mxu1 %v9694_v17  ;;  %v9742_v17 = vld [vmem:[%s11298_s28 + $0x1a4c] ss:$56 sps:$4 sm:$0xff]  }
 0x563   : > { %7045 = vmatmul.mubr.bf16.vlgmr.msra.gmra.mrb[12].mxu0 %v11441_v49 }
 0x564   : > { %7054 = vmatpush1.bf16.msra.mxu0 %v9689_v18  ;;  %7085 = vmatprep.mubr.bf16.mxu0 %v11446_v52  ;;  %v9737_v18 = vld [vmem:[%s11298_s28 + $0x1890] ss:$56 sps:$4 sm:$0xff]  }
 0x565   : > { %6898 = vmatpush1.bf16.msra.mxu1 %v9692_v20  ;;  %7055 = vmatprep.subr.bf16.mxu0 %v9697_v22  ;;  %v9740_v20 = vld [vmem:[%s11298_s28 + $0x1a48] ss:$56 sps:$4 sm:$0xff]   ;;  %v9745_v22 = vld [vmem:[%s11298_s28 + $0x1904] ss:$56 sps:$4 sm:$0xff]  }
 0x566   : > { %v6677_v32 = vpop.f32.mrb[8].mxu1  ;;  %6899 = vmatprep.subr.bf16.mxu1 %v9700_v25  ;;  %v9748_v25 = vld [vmem:[%s11298_s28 + $0x1abc] ss:$56 sps:$4 sm:$0xff]  }
 0x567   : > { %v6679_v34 = vpop.f32.mrb[9].mxu1  ;;  %v8960_v58 = vadd.f32 %v6677_v32, %v2055_v50  ;;  %v9754_v32 = vld [vmem:[%s11298_s28 + $0x1b2c] ss:$56 sps:$4 sm:$0xff]  }
 0x568   : > { %7056 = vmatpush1.bf16.msra.mxu0 %v9695_v28  ;;  %v6681_v36 = vpop.f32.mrb[10].mxu1  ;;  %v8962_v60 = vadd.f32 %v6679_v34, %v2059_v53  ;;  %v9743_v28 = vld [vmem:[%s11298_s28 + $0x1900] ss:$56 sps:$4 sm:$0xff]   ;;  %v9775_v50 = vld [vmem:[%s11298_s28 + $0x1b34] ss:$56 sps:$4 sm:$0xff]  }
 0x569   : > { %6900 = vmatpush1.bf16.msra.mxu1 %v9698_v29  ;;  %v6682_v38 = vpop.f32.mrb[11].mxu1  ;;  %7057 = vmatprep.subr.bf16.mxu0 %v9703_v30  ;;  %v9746_v29 = vld [vmem:[%s11298_s28 + $0x1ab8] ss:$56 sps:$4 sm:$0xff]   ;;  %v9751_v30 = vld [vmem:[%s11298_s28 + $0x1974] ss:$56 sps:$4 sm:$0xff]  }
 0x56a   : > { %6901 = vmatprep.subr.bf16.mxu1 %v9706_v33  ;;  %v9749_v33 = vld [vmem:[%s11298_s28 + $0x1970] ss:$56 sps:$4 sm:$0xff]   ;;  %v9757_v36 = vld [vmem:[%s11298_s28 + $0x19e4] ss:$56 sps:$4 sm:$0xff]   ;;  %v9755_v38 = vld [vmem:[%s11298_s28 + $0x19e0] ss:$56 sps:$4 sm:$0xff]  }
 0x56b   : > { %v9752_v34 = vld [vmem:[%s11298_s28 + $0x1b28] ss:$56 sps:$4 sm:$0xff]   ;;  %v9776_v53 = vld [vmem:[%s11298_s28 + $0xf8] ss:$56 sps:$4 sm:$0xff]  }
 0x56c   : > { %7058 = vmatpush1.bf16.msra.mxu0 %v9701_v37  ;;  %v9760_v37 = vld [vmem:[%s11298_s28 + $0x1b9c] ss:$56 sps:$4 sm:$0xff]  }
 0x56d   : > { %6902 = vmatpush1.bf16.msra.mxu1 %v9704_v39  ;;  %7059 = vmatprep.subr.bf16.mxu0 %v9709_v40  ;;  %v9758_v39 = vld [vmem:[%s11298_s28 + $0x1b98] ss:$56 sps:$4 sm:$0xff]   ;;  %v9763_v40 = vld [vmem:[%s11298_s28 + $0x1a54] ss:$56 sps:$4 sm:$0xff]  }
 0x56e   : > { %6903 = vmatprep.subr.bf16.mxu1 %v9712_v41  ;;  %v9766_v41 = vld [vmem:[%s11298_s28 + $0x1c] ss:$56 sps:$4 sm:$0xff]  }
 0x570   : > { %7060 = vmatpush1.bf16.msra.mxu0 %v9707_v42  ;;  %v9761_v42 = vld [vmem:[%s11298_s28 + $0x1a50] ss:$56 sps:$4 sm:$0xff]  }
 0x571   : > { %6904 = vmatpush1.bf16.msra.mxu1 %v9710_v43  ;;  %7061 = vmatprep.subr.bf16.mxu0 %v9715_v44  ;;  %v9764_v43 = vld [vmem:[%s11298_s28 + $0x18] ss:$56 sps:$4 sm:$0xff]   ;;  %v9769_v44 = vld [vmem:[%s11298_s28 + $0x1ac4] ss:$56 sps:$4 sm:$0xff]  }
 0x572   : > { %6905 = vmatprep.subr.bf16.mxu1 %v9718_v47  ;;  %v9767_v47 = vld [vmem:[%s11298_s28 + $0x1ac0] ss:$56 sps:$4 sm:$0xff]  }
 0x574   : > { %7062 = vmatpush1.bf16.msra.mxu0 %v9713_v48  ;;  %v9770_v48 = vld [vmem:[%s11298_s28 + $0x88] ss:$56 sps:$4 sm:$0xff]  }
 0x575   : > { %6906 = vmatpush1.bf16.msra.mxu1 %v9716_v51  ;;  %7063 = vmatprep.subr.bf16.mxu0 %v9721_v10  ;;  %v9778_v51 = vld [vmem:[%s11298_s28 + $0xfc] ss:$56 sps:$4 sm:$0xff]   ;;  %v9773_v10 = vld [vmem:[%s11298_s28 + $0x1b30] ss:$56 sps:$4 sm:$0xff]  }
 0x576   : > { %v6759_v61 = vpop.f32.mrb[8].mxu0  ;;  %6907 = vmatprep.subr.bf16.mxu1 %v9724_v56  ;;  %v9781_v56 = vld [vmem:[%s11298_s28 + $0x1ba4] ss:$56 sps:$4 sm:$0xff]  }
 0x577   : > { %v8961_v63 = vadd.f32 %v8960_v58, %v6759_v61  ;;  %v6761_v5 = vpop.f32.mrb[9].mxu0  ;;  %v9779_v58 = vld [vmem:[%s11298_s28 + $0x1ba0] ss:$56 sps:$4 sm:$0xff]  }
 0x578   : > { %v8963_v2 = vadd.f32 %v8962_v60, %v6761_v5  ;;  %v6763_v7 = vpop.f32.mrb[10].mxu0  ;;  %7064 = vmatpush1.bf16.msra.mxu0 %v9719_v57  ;;  %v9784_v57 = vld [vmem:[%s11298_s28 + $0x16c] ss:$56 sps:$4 sm:$0xff]   ;;  %v9790_v60 = vld [vmem:[%s11298_s28 + $0x1dc] ss:$56 sps:$4 sm:$0xff]  }
 0x579   : > { %7750 = vst [vmem:[%s11767_s29] sm:$0xff] %v8961_v63  ;;  %v6764_v9 = vpop.f32.mrb[11].mxu0  ;;  %6908 = vmatpush1.bf16.msra.mxu1 %v9722_v59  ;;  %7065 = vmatprep.subr.bf16.mxu0 %v9727_v6  ;;  %v9782_v59 = vld [vmem:[%s11298_s28 + $0x168] ss:$56 sps:$4 sm:$0xff]   ;;  %v9787_v6 = vld [vmem:[%s11298_s28 + $0x24] ss:$56 sps:$4 sm:$0xff]  }
 0x57a   : > { %7751 = vst [vmem:[%s11767_s29 + $0x8] sm:$0xff] %v8963_v2  ;;  %6909 = vmatprep.subr.bf16.mxu1 %v9730_v62  ;;  %v9785_v61 = vld [vmem:[%s11298_s28 + $0x20] ss:$56 sps:$4 sm:$0xff]   ;;  %v9793_v63 = vld [vmem:[%s11298_s28 + $0x94] ss:$56 sps:$4 sm:$0xff]  }
 0x57b   : > { %v9788_v62 = vld [vmem:[%s11298_s28 + $0x1d8] ss:$56 sps:$4 sm:$0xff]   ;;  %v9796_v5 = vld [vmem:[%s11298_s28 + $0x24c] ss:$56 sps:$4 sm:$0xff]   ;;  %v9794_v7 = vld [vmem:[%s11298_s28 + $0x248] ss:$56 sps:$4 sm:$0xff]  }
 0x57c   : > { %7066 = vmatpush1.bf16.msra.mxu0 %v9725_v8  ;;  %v9791_v2 = vld [vmem:[%s11298_s28 + $0x90] ss:$56 sps:$4 sm:$0xff]   ;;  %v9799_v8 = vld [vmem:[%s11298_s28 + $0x104] ss:$56 sps:$4 sm:$0xff]  }
 0x57d   : > { %6910 = vmatpush1.bf16.msra.mxu1 %v9728_v11  ;;  %7067 = vmatprep.subr.bf16.mxu0 %v9733_v12  ;;  %v9802_v9 = vld [vmem:[%s11298_s28 + $0x2bc] ss:$56 sps:$4 sm:$0xff]   ;;  %v9797_v11 = vld [vmem:[%s11298_s28 + $0x100] ss:$56 sps:$4 sm:$0xff]  }
 0x57e   : > { %6911 = vmatprep.subr.bf16.mxu1 %v9736_v13  ;;  %v9800_v12 = vld [vmem:[%s11298_s28 + $0x2b8] ss:$56 sps:$4 sm:$0xff]   ;;  %v9805_v13 = vld [vmem:[%s11298_s28 + $0x174] ss:$56 sps:$4 sm:$0xff]  }
 0x580   : > { %7068 = vmatpush1.bf16.msra.mxu0 %v9731_v35  ;;  %v9808_v35 = vld [vmem:[%s11298_s28 + $0x32c] ss:$56 sps:$4 sm:$0xff]  }
 0x581   : > { %6912 = vmatpush1.bf16.msra.mxu1 %v9734_v15  ;;  %7069 = vmatprep.subr.bf16.mxu0 %v9739_v16  ;;  %v9803_v15 = vld [vmem:[%s11298_s28 + $0x170] ss:$56 sps:$4 sm:$0xff]  }
 0x582   : > { %6913 = vmatprep.subr.bf16.mxu1 %v9742_v17  ;;  %v9806_v16 = vld [vmem:[%s11298_s28 + $0x328] ss:$56 sps:$4 sm:$0xff]   ;;  %v9811_v17 = vld [vmem:[%s11298_s28 + $0x1e4] ss:$56 sps:$4 sm:$0xff]  }
 0x584   : > { %7070 = vmatpush1.bf16.msra.mxu0 %v9737_v18  ;;  %v9814_v18 = vld [vmem:[%s11298_s28 + $0x39c] ss:$56 sps:$4 sm:$0xff]  }
 0x585   : > { %6914 = vmatpush1.bf16.msra.mxu1 %v9740_v20  ;;  %7071 = vmatprep.subr.bf16.mxu0 %v9745_v22  ;;  %v9809_v20 = vld [vmem:[%s11298_s28 + $0x1e0] ss:$56 sps:$4 sm:$0xff]  }
 0x586   : > { %6915 = vmatprep.subr.bf16.mxu1 %v9748_v25  ;;  %v9812_v22 = vld [vmem:[%s11298_s28 + $0x398] ss:$56 sps:$4 sm:$0xff]   ;;  %v9817_v25 = vld [vmem:[%s11298_s28 + $0x254] ss:$56 sps:$4 sm:$0xff]  }
 0x588   : > { %7072 = vmatpush1.bf16.msra.mxu0 %v9743_v28  ;;  %v9820_v28 = vld [vmem:[%s11298_s28 + $0x40c] ss:$56 sps:$4 sm:$0xff]  }
 0x589   : > { %6916 = vmatpush1.bf16.msra.mxu1 %v9746_v29  ;;  %7073 = vmatprep.subr.bf16.mxu0 %v9751_v30  ;;  %v9815_v29 = vld [vmem:[%s11298_s28 + $0x250] ss:$56 sps:$4 sm:$0xff]  }
 0x58a   : > { %6917 = vmatprep.subr.bf16.mxu1 %v9754_v32  ;;  %v9818_v30 = vld [vmem:[%s11298_s28 + $0x408] ss:$56 sps:$4 sm:$0xff]   ;;  %v9823_v32 = vld [vmem:[%s11298_s28 + $0x2c4] ss:$56 sps:$4 sm:$0xff]  }
 0x58c   : > { %7074 = vmatpush1.bf16.msra.mxu0 %v9749_v33  ;;  %v9826_v33 = vld [vmem:[%s11298_s28 + $0x47c] ss:$56 sps:$4 sm:$0xff]  }
 0x58d   : > { %6918 = vmatpush1.bf16.msra.mxu1 %v9752_v34  ;;  %7075 = vmatprep.subr.bf16.mxu0 %v9757_v36  ;;  %v9821_v34 = vld [vmem:[%s11298_s28 + $0x2c0] ss:$56 sps:$4 sm:$0xff]  }
 0x58e   : > { %6919 = vmatprep.subr.bf16.mxu1 %v9760_v37  ;;  %v9824_v36 = vld [vmem:[%s11298_s28 + $0x478] ss:$56 sps:$4 sm:$0xff]   ;;  %v9829_v37 = vld [vmem:[%s11298_s28 + $0x334] ss:$56 sps:$4 sm:$0xff]  }
 0x590   : > { %7076 = vmatpush1.bf16.msra.mxu0 %v9755_v38  ;;  %v9832_v38 = vld [vmem:[%s11298_s28 + $0x4ec] ss:$56 sps:$4 sm:$0xff]  }
 0x591   : > { %6920 = vmatpush1.bf16.msra.mxu1 %v9758_v39  ;;  %7077 = vmatprep.subr.bf16.mxu0 %v9763_v40  ;;  %v9827_v39 = vld [vmem:[%s11298_s28 + $0x330] ss:$56 sps:$4 sm:$0xff]  }
 0x592   : > { %7094 = vmatprep.subr.bf16.mxu1 %v9766_v41  ;;  %v9830_v40 = vld [vmem:[%s11298_s28 + $0x4e8] ss:$56 sps:$4 sm:$0xff]   ;;  %v9835_v41 = vld [vmem:[%s11298_s28 + $0x3a4] ss:$56 sps:$4 sm:$0xff]  }
 0x594   : > { %6922 = vmatmul.mubr.bf16.vlgmr.msra.gmra.mrb[12].mxu1 %v11526_v14  ;;  %7078 = vmatpush1.bf16.msra.mxu0 %v9761_v42  ;;  %v9838_v42 = vld [vmem:[%s11298_s28 + $0x55c] ss:$56 sps:$4 sm:$0xff]  }
 0x595   : > { %7095 = vmatpush1.bf16.msra.mxu1 %v9764_v43  ;;  %7126 = vmatprep.mubr.bf16.mxu1 %v11404_v19  ;;  %v9833_v43 = vld [vmem:[%s11298_s28 + $0x3a0] ss:$56 sps:$4 sm:$0xff]  }
 0x596   : > { %7079 = vmatprep.subr.bf16.mxu0 %v9769_v44  ;;  %7096 = vmatprep.subr.bf16.mxu1 %v9772_v45  ;;  %v9836_v44 = vld [vmem:[%s11298_s28 + $0x558] ss:$56 sps:$4 sm:$0xff]   ;;  %v9841_v45 = vld [vmem:[%s11298_s28 + $0x414] ss:$56 sps:$4 sm:$0xff]  }
 0x598   : > { %7080 = vmatpush1.bf16.msra.mxu0 %v9767_v47  ;;  %v9844_v47 = vld [vmem:[%s11298_s28 + $0x5cc] ss:$56 sps:$4 sm:$0xff]  }
 0x599   : > { %7097 = vmatpush1.bf16.msra.mxu1 %v9770_v48  ;;  %7081 = vmatprep.subr.bf16.mxu0 %v9775_v50  ;;  %v9839_v48 = vld [vmem:[%s11298_s28 + $0x410] ss:$56 sps:$4 sm:$0xff]  }
 0x59a   : > { %7098 = vmatprep.subr.bf16.mxu1 %v9778_v51  ;;  %v9842_v50 = vld [vmem:[%s11298_s28 + $0x5c8] ss:$56 sps:$4 sm:$0xff]   ;;  %v9847_v51 = vld [vmem:[%s11298_s28 + $0x484] ss:$56 sps:$4 sm:$0xff]  }
 0x59c   : > { %7082 = vmatpush1.bf16.msra.mxu0 %v9773_v10  ;;  %v9850_v10 = vld [vmem:[%s11298_s28 + $0x63c] ss:$56 sps:$4 sm:$0xff]  }
 0x59d   : > { %7099 = vmatpush1.bf16.msra.mxu1 %v9776_v53  ;;  %7083 = vmatprep.subr.bf16.mxu0 %v9781_v56  ;;  %v9845_v53 = vld [vmem:[%s11298_s28 + $0x480] ss:$56 sps:$4 sm:$0xff]  }
 0x59e   : > { %7100 = vmatprep.subr.bf16.mxu1 %v9784_v57  ;;  %v9848_v56 = vld [vmem:[%s11298_s28 + $0x638] ss:$56 sps:$4 sm:$0xff]   ;;  %v9853_v57 = vld [vmem:[%s11298_s28 + $0x4f4] ss:$56 sps:$4 sm:$0xff]  }
 0x5a0   : > { %7084 = vmatpush1.bf16.msra.mxu0 %v9779_v58  ;;  %v9856_v58 = vld [vmem:[%s11298_s28 + $0x6ac] ss:$56 sps:$4 sm:$0xff]  }
 0x5a1   : > { %7101 = vmatpush1.bf16.msra.mxu1 %v9782_v59  ;;  %7258 = vmatprep.subr.bf16.mxu0 %v9787_v6  ;;  %v9851_v59 = vld [vmem:[%s11298_s28 + $0x4f0] ss:$56 sps:$4 sm:$0xff]  }
 0x5a2   : > { %7102 = vmatprep.subr.bf16.mxu1 %v9790_v60  ;;  %v9854_v6 = vld [vmem:[%s11298_s28 + $0x6a8] ss:$56 sps:$4 sm:$0xff]   ;;  %v9859_v60 = vld [vmem:[%s11298_s28 + $0x564] ss:$56 sps:$4 sm:$0xff]  }
 0x5a3   : > { %7086 = vmatmul.mubr.bf16.vlgmr.msra.gmra.mrb[12].mxu0 %v11526_v14 }
 0x5a4   : > { %7259 = vmatpush1.bf16.msra.mxu0 %v9785_v61  ;;  %7290 = vmatprep.mubr.bf16.mxu0 %v11404_v19  ;;  %v9862_v61 = vld [vmem:[%s11298_s28 + $0x71c] ss:$56 sps:$4 sm:$0xff]  }
 0x5a5   : > { %7103 = vmatpush1.bf16.msra.mxu1 %v9788_v62  ;;  %7260 = vmatprep.subr.bf16.mxu0 %v9793_v63  ;;  %v9857_v62 = vld [vmem:[%s11298_s28 + $0x560] ss:$56 sps:$4 sm:$0xff]  }
 0x5a6   : > { %7104 = vmatprep.subr.bf16.mxu1 %v9796_v5  ;;  %v9860_v63 = vld [vmem:[%s11298_s28 + $0x718] ss:$56 sps:$4 sm:$0xff]   ;;  %v9865_v5 = vld [vmem:[%s11298_s28 + $0x5d4] ss:$56 sps:$4 sm:$0xff]  }
 0x5a8   : > { %7261 = vmatpush1.bf16.msra.mxu0 %v9791_v2  ;;  %v9868_v2 = vld [vmem:[%s11298_s28 + $0x78c] ss:$56 sps:$4 sm:$0xff]  }
 0x5a9   : > { %7105 = vmatpush1.bf16.msra.mxu1 %v9794_v7  ;;  %7262 = vmatprep.subr.bf16.mxu0 %v9799_v8  ;;  %v9863_v7 = vld [vmem:[%s11298_s28 + $0x5d0] ss:$56 sps:$4 sm:$0xff]  }
 0x5aa   : > { %7106 = vmatprep.subr.bf16.mxu1 %v9802_v9  ;;  %v9866_v8 = vld [vmem:[%s11298_s28 + $0x788] ss:$56 sps:$4 sm:$0xff]   ;;  %v9871_v9 = vld [vmem:[%s11298_s28 + $0x644] ss:$56 sps:$4 sm:$0xff]  }
 0x5ac   : > { %7263 = vmatpush1.bf16.msra.mxu0 %v9797_v11  ;;  %v9874_v11 = vld [vmem:[%s11298_s28 + $0x7fc] ss:$56 sps:$4 sm:$0xff]  }
 0x5ad   : > { %7107 = vmatpush1.bf16.msra.mxu1 %v9800_v12  ;;  %7264 = vmatprep.subr.bf16.mxu0 %v9805_v13  ;;  %v9869_v12 = vld [vmem:[%s11298_s28 + $0x640] ss:$56 sps:$4 sm:$0xff]  }
 0x5ae   : > { %7108 = vmatprep.subr.bf16.mxu1 %v9808_v35  ;;  %v9872_v13 = vld [vmem:[%s11298_s28 + $0x7f8] ss:$56 sps:$4 sm:$0xff]   ;;  %v9877_v35 = vld [vmem:[%s11298_s28 + $0x6b4] ss:$56 sps:$4 sm:$0xff]  }
 0x5b0   : > { %7265 = vmatpush1.bf16.msra.mxu0 %v9803_v15  ;;  %v9880_v15 = vld [vmem:[%s11298_s28 + $0x86c] ss:$56 sps:$4 sm:$0xff]  }
 0x5b1   : > { %7109 = vmatpush1.bf16.msra.mxu1 %v9806_v16  ;;  %7266 = vmatprep.subr.bf16.mxu0 %v9811_v17  ;;  %v9875_v16 = vld [vmem:[%s11298_s28 + $0x6b0] ss:$56 sps:$4 sm:$0xff]  }
 0x5b2   : > { %7110 = vmatprep.subr.bf16.mxu1 %v9814_v18  ;;  %v9878_v17 = vld [vmem:[%s11298_s28 + $0x868] ss:$56 sps:$4 sm:$0xff]   ;;  %v9883_v18 = vld [vmem:[%s11298_s28 + $0x724] ss:$56 sps:$4 sm:$0xff]  }
 0x5b4   : > { %7267 = vmatpush1.bf16.msra.mxu0 %v9809_v20  ;;  %v9886_v20 = vld [vmem:[%s11298_s28 + $0x8dc] ss:$56 sps:$4 sm:$0xff]  }
 0x5b5   : > { %7111 = vmatpush1.bf16.msra.mxu1 %v9812_v22  ;;  %7268 = vmatprep.subr.bf16.mxu0 %v9817_v25  ;;  %v9881_v22 = vld [vmem:[%s11298_s28 + $0x720] ss:$56 sps:$4 sm:$0xff]  }
 0x5b6   : > { %7112 = vmatprep.subr.bf16.mxu1 %v9820_v28  ;;  %v9884_v25 = vld [vmem:[%s11298_s28 + $0x8d8] ss:$56 sps:$4 sm:$0xff]   ;;  %v9889_v28 = vld [vmem:[%s11298_s28 + $0x794] ss:$56 sps:$4 sm:$0xff]  }
 0x5b8   : > { %7269 = vmatpush1.bf16.msra.mxu0 %v9815_v29  ;;  %v9892_v29 = vld [vmem:[%s11298_s28 + $0x94c] ss:$56 sps:$4 sm:$0xff]  }
 0x5b9   : > { %7113 = vmatpush1.bf16.msra.mxu1 %v9818_v30  ;;  %7270 = vmatprep.subr.bf16.mxu0 %v9823_v32  ;;  %v9887_v30 = vld [vmem:[%s11298_s28 + $0x790] ss:$56 sps:$4 sm:$0xff]  }
 0x5ba   : > { %7114 = vmatprep.subr.bf16.mxu1 %v9826_v33  ;;  %v9890_v32 = vld [vmem:[%s11298_s28 + $0x948] ss:$56 sps:$4 sm:$0xff]   ;;  %v9895_v33 = vld [vmem:[%s11298_s28 + $0x804] ss:$56 sps:$4 sm:$0xff]  }
 0x5bc   : > { %7271 = vmatpush1.bf16.msra.mxu0 %v9821_v34  ;;  %v9898_v34 = vld [vmem:[%s11298_s28 + $0x9bc] ss:$56 sps:$4 sm:$0xff]  }
 0x5bd   : > { %7115 = vmatpush1.bf16.msra.mxu1 %v9824_v36  ;;  %7272 = vmatprep.subr.bf16.mxu0 %v9829_v37  ;;  %v9893_v36 = vld [vmem:[%s11298_s28 + $0x800] ss:$56 sps:$4 sm:$0xff]  }
 0x5be   : > { %7116 = vmatprep.subr.bf16.mxu1 %v9832_v38  ;;  %v9896_v37 = vld [vmem:[%s11298_s28 + $0x9b8] ss:$56 sps:$4 sm:$0xff]   ;;  %v9901_v38 = vld [vmem:[%s11298_s28 + $0x874] ss:$56 sps:$4 sm:$0xff]  }
 0x5c0   : > { %7273 = vmatpush1.bf16.msra.mxu0 %v9827_v39  ;;  %v9904_v39 = vld [vmem:[%s11298_s28 + $0xa2c] ss:$56 sps:$4 sm:$0xff]  }
 0x5c1   : > { %7117 = vmatpush1.bf16.msra.mxu1 %v9830_v40  ;;  %7274 = vmatprep.subr.bf16.mxu0 %v9835_v41  ;;  %v9899_v40 = vld [vmem:[%s11298_s28 + $0x870] ss:$56 sps:$4 sm:$0xff]  }
 0x5c2   : > { %7118 = vmatprep.subr.bf16.mxu1 %v9838_v42  ;;  %v9902_v41 = vld [vmem:[%s11298_s28 + $0xa28] ss:$56 sps:$4 sm:$0xff]   ;;  %v9907_v42 = vld [vmem:[%s11298_s28 + $0x8e4] ss:$56 sps:$4 sm:$0xff]  }
 0x5c4   : > { %7275 = vmatpush1.bf16.msra.mxu0 %v9833_v43  ;;  %v9910_v43 = vld [vmem:[%s11298_s28 + $0xa9c] ss:$56 sps:$4 sm:$0xff]  }
 0x5c5   : > { %7119 = vmatpush1.bf16.msra.mxu1 %v9836_v44  ;;  %7276 = vmatprep.subr.bf16.mxu0 %v9841_v45  ;;  %v9905_v44 = vld [vmem:[%s11298_s28 + $0x8e0] ss:$56 sps:$4 sm:$0xff]  }
 0x5c6   : > { %7120 = vmatprep.subr.bf16.mxu1 %v9844_v47  ;;  %v9908_v45 = vld [vmem:[%s11298_s28 + $0xa98] ss:$56 sps:$4 sm:$0xff]   ;;  %v9913_v47 = vld [vmem:[%s11298_s28 + $0x954] ss:$56 sps:$4 sm:$0xff]  }
 0x5c8   : > { %7277 = vmatpush1.bf16.msra.mxu0 %v9839_v48  ;;  %v9916_v48 = vld [vmem:[%s11298_s28 + $0xb0c] ss:$56 sps:$4 sm:$0xff]  }
 0x5c9   : > { %7121 = vmatpush1.bf16.msra.mxu1 %v9842_v50  ;;  %7278 = vmatprep.subr.bf16.mxu0 %v9847_v51  ;;  %v9911_v50 = vld [vmem:[%s11298_s28 + $0x950] ss:$56 sps:$4 sm:$0xff]  }
 0x5ca   : > { %7122 = vmatprep.subr.bf16.mxu1 %v9850_v10  ;;  %v9914_v51 = vld [vmem:[%s11298_s28 + $0xb08] ss:$56 sps:$4 sm:$0xff]   ;;  %v9919_v10 = vld [vmem:[%s11298_s28 + $0x9c4] ss:$56 sps:$4 sm:$0xff]  }
 0x5cc   : > { %7279 = vmatpush1.bf16.msra.mxu0 %v9845_v53  ;;  %v9922_v53 = vld [vmem:[%s11298_s28 + $0xb7c] ss:$56 sps:$4 sm:$0xff]  }
 0x5cd   : > { %7123 = vmatpush1.bf16.msra.mxu1 %v9848_v56  ;;  %7280 = vmatprep.subr.bf16.mxu0 %v9853_v57  ;;  %v9917_v56 = vld [vmem:[%s11298_s28 + $0x9c0] ss:$56 sps:$4 sm:$0xff]  }
 0x5ce   : > { %7124 = vmatprep.subr.bf16.mxu1 %v9856_v58  ;;  %v9920_v57 = vld [vmem:[%s11298_s28 + $0xb78] ss:$56 sps:$4 sm:$0xff]   ;;  %v9925_v58 = vld [vmem:[%s11298_s28 + $0xa34] ss:$56 sps:$4 sm:$0xff]  }
 0x5d0   : > { %7281 = vmatpush1.bf16.msra.mxu0 %v9851_v59  ;;  %v9928_v59 = vld [vmem:[%s11298_s28 + $0xbec] ss:$56 sps:$4 sm:$0xff]  }
 0x5d1   : > { %7125 = vmatpush1.bf16.msra.mxu1 %v9854_v6  ;;  %7282 = vmatprep.subr.bf16.mxu0 %v9859_v60  ;;  %v9923_v6 = vld [vmem:[%s11298_s28 + $0xa30] ss:$56 sps:$4 sm:$0xff]  }
 0x5d2   : > { %7135 = vmatprep.subr.bf16.mxu1 %v9862_v61  ;;  %v9926_v60 = vld [vmem:[%s11298_s28 + $0xbe8] ss:$56 sps:$4 sm:$0xff]   ;;  %v9931_v61 = vld [vmem:[%s11298_s28 + $0xaa4] ss:$56 sps:$4 sm:$0xff]  }
 0x5d4   : > { %7127 = vmatmul.mubr.bf16.vlgmr.msra.gmra.mrb[16].mxu1 %v11407_v21  ;;  %7283 = vmatpush1.bf16.msra.mxu0 %v9857_v62  ;;  %v9934_v62 = vld [vmem:[%s11298_s28 + $0xc5c] ss:$56 sps:$4 sm:$0xff]  }
 0x5d5   : > { %7136 = vmatpush1.bf16.msra.mxu1 %v9860_v63  ;;  %7167 = vmatprep.mubr.bf16.mxu1 %v11410_v23  ;;  %v9929_v63 = vld [vmem:[%s11298_s28 + $0xaa0] ss:$56 sps:$4 sm:$0xff]  }
 0x5d6   : > { %7284 = vmatprep.subr.bf16.mxu0 %v9865_v5  ;;  %7137 = vmatprep.subr.bf16.mxu1 %v9868_v2  ;;  %v9932_v5 = vld [vmem:[%s11298_s28 + $0xc58] ss:$56 sps:$4 sm:$0xff]   ;;  %v9937_v2 = vld [vmem:[%s11298_s28 + $0xb14] ss:$56 sps:$4 sm:$0xff]  }
 0x5d8   : > { %7285 = vmatpush1.bf16.msra.mxu0 %v9863_v7  ;;  %v9940_v7 = vld [vmem:[%s11298_s28 + $0xccc] ss:$56 sps:$4 sm:$0xff]  }
 0x5d9   : > { %7138 = vmatpush1.bf16.msra.mxu1 %v9866_v8  ;;  %7286 = vmatprep.subr.bf16.mxu0 %v9871_v9  ;;  %v9935_v8 = vld [vmem:[%s11298_s28 + $0xb10] ss:$56 sps:$4 sm:$0xff]  }
 0x5da   : > { %7139 = vmatprep.subr.bf16.mxu1 %v9874_v11  ;;  %v9938_v9 = vld [vmem:[%s11298_s28 + $0xcc8] ss:$56 sps:$4 sm:$0xff]   ;;  %v9943_v11 = vld [vmem:[%s11298_s28 + $0xb84] ss:$56 sps:$4 sm:$0xff]  }
 0x5dc   : > { %7287 = vmatpush1.bf16.msra.mxu0 %v9869_v12  ;;  %v9946_v12 = vld [vmem:[%s11298_s28 + $0xd3c] ss:$56 sps:$4 sm:$0xff]  }
 0x5dd   : > { %7140 = vmatpush1.bf16.msra.mxu1 %v9872_v13  ;;  %7288 = vmatprep.subr.bf16.mxu0 %v9877_v35  ;;  %v9941_v13 = vld [vmem:[%s11298_s28 + $0xb80] ss:$56 sps:$4 sm:$0xff]  }
 0x5de   : > { %7141 = vmatprep.subr.bf16.mxu1 %v9880_v15  ;;  %v9944_v35 = vld [vmem:[%s11298_s28 + $0xd38] ss:$56 sps:$4 sm:$0xff]   ;;  %v9949_v15 = vld [vmem:[%s11298_s28 + $0xbf4] ss:$56 sps:$4 sm:$0xff]  }
 0x5e0   : > { %7289 = vmatpush1.bf16.msra.mxu0 %v9875_v16  ;;  %v9952_v16 = vld [vmem:[%s11298_s28 + $0xdac] ss:$56 sps:$4 sm:$0xff]  }
 0x5e1   : > { %7142 = vmatpush1.bf16.msra.mxu1 %v9878_v17  ;;  %7299 = vmatprep.subr.bf16.mxu0 %v9883_v18  ;;  %v9947_v17 = vld [vmem:[%s11298_s28 + $0xbf0] ss:$56 sps:$4 sm:$0xff]  }
 0x5e2   : > { %7143 = vmatprep.subr.bf16.mxu1 %v9886_v20  ;;  %v9950_v18 = vld [vmem:[%s11298_s28 + $0xda8] ss:$56 sps:$4 sm:$0xff]   ;;  %v9955_v20 = vld [vmem:[%s11298_s28 + $0xc64] ss:$56 sps:$4 sm:$0xff]  }
 0x5e3   : > { %7291 = vmatmul.mubr.bf16.vlgmr.msra.gmra.mrb[16].mxu0 %v11407_v21 }
 0x5e4   : > { %7300 = vmatpush1.bf16.msra.mxu0 %v9881_v22  ;;  %7331 = vmatprep.mubr.bf16.mxu0 %v11410_v23  ;;  %v9958_v22 = vld [vmem:[%s11298_s28 + $0xe1c] ss:$56 sps:$4 sm:$0xff]  }
 0x5e5   : > { %7144 = vmatpush1.bf16.msra.mxu1 %v9884_v25  ;;  %7301 = vmatprep.subr.bf16.mxu0 %v9889_v28  ;;  %v9953_v25 = vld [vmem:[%s11298_s28 + $0xc60] ss:$56 sps:$4 sm:$0xff]  }
 0x5e6   : > { %7145 = vmatprep.subr.bf16.mxu1 %v9892_v29  ;;  %v9956_v28 = vld [vmem:[%s11298_s28 + $0xe18] ss:$56 sps:$4 sm:$0xff]   ;;  %v9961_v29 = vld [vmem:[%s11298_s28 + $0xcd4] ss:$56 sps:$4 sm:$0xff]  }
 0x5e8   : > { %7302 = vmatpush1.bf16.msra.mxu0 %v9887_v30  ;;  %v9964_v30 = vld [vmem:[%s11298_s28 + $0xe8c] ss:$56 sps:$4 sm:$0xff]  }
 0x5e9   : > { %7146 = vmatpush1.bf16.msra.mxu1 %v9890_v32  ;;  %7303 = vmatprep.subr.bf16.mxu0 %v9895_v33  ;;  %v9959_v32 = vld [vmem:[%s11298_s28 + $0xcd0] ss:$56 sps:$4 sm:$0xff]  }
 0x5ea   : > { %7147 = vmatprep.subr.bf16.mxu1 %v9898_v34  ;;  %v9962_v33 = vld [vmem:[%s11298_s28 + $0xe88] ss:$56 sps:$4 sm:$0xff]   ;;  %v9967_v34 = vld [vmem:[%s11298_s28 + $0xd44] ss:$56 sps:$4 sm:$0xff]  }
 0x5ec   : > { %7304 = vmatpush1.bf16.msra.mxu0 %v9893_v36  ;;  %v9970_v36 = vld [vmem:[%s11298_s28 + $0xefc] ss:$56 sps:$4 sm:$0xff]  }
 0x5ed   : > { %7148 = vmatpush1.bf16.msra.mxu1 %v9896_v37  ;;  %7305 = vmatprep.subr.bf16.mxu0 %v9901_v38  ;;  %v9965_v37 = vld [vmem:[%s11298_s28 + $0xd40] ss:$56 sps:$4 sm:$0xff]  }
 0x5ee   : > { %7149 = vmatprep.subr.bf16.mxu1 %v9904_v39  ;;  %v9968_v38 = vld [vmem:[%s11298_s28 + $0xef8] ss:$56 sps:$4 sm:$0xff]   ;;  %v9973_v39 = vld [vmem:[%s11298_s28 + $0xdb4] ss:$56 sps:$4 sm:$0xff]  }
 0x5f0   : > { %7306 = vmatpush1.bf16.msra.mxu0 %v9899_v40  ;;  %v9976_v40 = vld [vmem:[%s11298_s28 + $0xf6c] ss:$56 sps:$4 sm:$0xff]  }
 0x5f1   : > { %7150 = vmatpush1.bf16.msra.mxu1 %v9902_v41  ;;  %7307 = vmatprep.subr.bf16.mxu0 %v9907_v42  ;;  %v9971_v41 = vld [vmem:[%s11298_s28 + $0xdb0] ss:$56 sps:$4 sm:$0xff]  }
 0x5f2   : > { %7151 = vmatprep.subr.bf16.mxu1 %v9910_v43  ;;  %v9974_v42 = vld [vmem:[%s11298_s28 + $0xf68] ss:$56 sps:$4 sm:$0xff]   ;;  %v9979_v43 = vld [vmem:[%s11298_s28 + $0xe24] ss:$56 sps:$4 sm:$0xff]  }
 0x5f4   : > { %7308 = vmatpush1.bf16.msra.mxu0 %v9905_v44  ;;  %v9982_v44 = vld [vmem:[%s11298_s28 + $0xfdc] ss:$56 sps:$4 sm:$0xff]  }
 0x5f5   : > { %7152 = vmatpush1.bf16.msra.mxu1 %v9908_v45  ;;  %7309 = vmatprep.subr.bf16.mxu0 %v9913_v47  ;;  %v9977_v45 = vld [vmem:[%s11298_s28 + $0xe20] ss:$56 sps:$4 sm:$0xff]  }
 0x5f6   : > { %7153 = vmatprep.subr.bf16.mxu1 %v9916_v48  ;;  %v9980_v47 = vld [vmem:[%s11298_s28 + $0xfd8] ss:$56 sps:$4 sm:$0xff]   ;;  %v9985_v48 = vld [vmem:[%s11298_s28 + $0xe94] ss:$56 sps:$4 sm:$0xff]  }
 0x5f8   : > { %7310 = vmatpush1.bf16.msra.mxu0 %v9911_v50  ;;  %v9988_v50 = vld [vmem:[%s11298_s28 + $0x104c] ss:$56 sps:$4 sm:$0xff]  }
 0x5f9   : > { %7154 = vmatpush1.bf16.msra.mxu1 %v9914_v51  ;;  %7311 = vmatprep.subr.bf16.mxu0 %v9919_v10  ;;  %v9983_v51 = vld [vmem:[%s11298_s28 + $0xe90] ss:$56 sps:$4 sm:$0xff]  }
 0x5fa   : > { %7155 = vmatprep.subr.bf16.mxu1 %v9922_v53  ;;  %v9986_v10 = vld [vmem:[%s11298_s28 + $0x1048] ss:$56 sps:$4 sm:$0xff]   ;;  %v9991_v53 = vld [vmem:[%s11298_s28 + $0xf04] ss:$56 sps:$4 sm:$0xff]  }
 0x5fc   : > { %7312 = vmatpush1.bf16.msra.mxu0 %v9917_v56  ;;  %v9994_v56 = vld [vmem:[%s11298_s28 + $0x10bc] ss:$56 sps:$4 sm:$0xff]  }
 0x5fd   : > { %7156 = vmatpush1.bf16.msra.mxu1 %v9920_v57  ;;  %7313 = vmatprep.subr.bf16.mxu0 %v9925_v58  ;;  %v9989_v57 = vld [vmem:[%s11298_s28 + $0xf00] ss:$56 sps:$4 sm:$0xff]  }
 0x5fe   : > { %7157 = vmatprep.subr.bf16.mxu1 %v9928_v59  ;;  %v9992_v58 = vld [vmem:[%s11298_s28 + $0x10b8] ss:$56 sps:$4 sm:$0xff]   ;;  %v9997_v59 = vld [vmem:[%s11298_s28 + $0xf74] ss:$56 sps:$4 sm:$0xff]  }
 0x600   : > { %7314 = vmatpush1.bf16.msra.mxu0 %v9923_v6  ;;  %v10000_v6 = vld [vmem:[%s11298_s28 + $0x112c] ss:$56 sps:$4 sm:$0xff]  }
 0x601   : > { %7158 = vmatpush1.bf16.msra.mxu1 %v9926_v60  ;;  %7315 = vmatprep.subr.bf16.mxu0 %v9931_v61  ;;  %v9995_v60 = vld [vmem:[%s11298_s28 + $0xf70] ss:$56 sps:$4 sm:$0xff]  }
 0x602   : > { %7159 = vmatprep.subr.bf16.mxu1 %v9934_v62  ;;  %v9998_v61 = vld [vmem:[%s11298_s28 + $0x1128] ss:$56 sps:$4 sm:$0xff]   ;;  %v10003_v62 = vld [vmem:[%s11298_s28 + $0xfe4] ss:$56 sps:$4 sm:$0xff]  }
 0x604   : > { %7316 = vmatpush1.bf16.msra.mxu0 %v9929_v63  ;;  %v10006_v63 = vld [vmem:[%s11298_s28 + $0x119c] ss:$56 sps:$4 sm:$0xff]  }
 0x605   : > { %7160 = vmatpush1.bf16.msra.mxu1 %v9932_v5  ;;  %7317 = vmatprep.subr.bf16.mxu0 %v9937_v2  ;;  %v10001_v5 = vld [vmem:[%s11298_s28 + $0xfe0] ss:$56 sps:$4 sm:$0xff]  }
 0x606   : > { %7161 = vmatprep.subr.bf16.mxu1 %v9940_v7  ;;  %v10004_v2 = vld [vmem:[%s11298_s28 + $0x1198] ss:$56 sps:$4 sm:$0xff]   ;;  %v10009_v7 = vld [vmem:[%s11298_s28 + $0x1054] ss:$56 sps:$4 sm:$0xff]  }
 0x608   : > { %7318 = vmatpush1.bf16.msra.mxu0 %v9935_v8  ;;  %v10012_v8 = vld [vmem:[%s11298_s28 + $0x120c] ss:$56 sps:$4 sm:$0xff]  }
 0x609   : > { %7162 = vmatpush1.bf16.msra.mxu1 %v9938_v9  ;;  %7319 = vmatprep.subr.bf16.mxu0 %v9943_v11  ;;  %v10007_v9 = vld [vmem:[%s11298_s28 + $0x1050] ss:$56 sps:$4 sm:$0xff]  }
 0x60a   : > { %7163 = vmatprep.subr.bf16.mxu1 %v9946_v12  ;;  %v10010_v11 = vld [vmem:[%s11298_s28 + $0x1208] ss:$56 sps:$4 sm:$0xff]   ;;  %v10015_v12 = vld [vmem:[%s11298_s28 + $0x10c4] ss:$56 sps:$4 sm:$0xff]  }
 0x60c   : > { %7320 = vmatpush1.bf16.msra.mxu0 %v9941_v13  ;;  %v10018_v13 = vld [vmem:[%s11298_s28 + $0x127c] ss:$56 sps:$4 sm:$0xff]  }
 0x60d   : > { %7164 = vmatpush1.bf16.msra.mxu1 %v9944_v35  ;;  %7321 = vmatprep.subr.bf16.mxu0 %v9949_v15  ;;  %v10013_v35 = vld [vmem:[%s11298_s28 + $0x10c0] ss:$56 sps:$4 sm:$0xff]  }
 0x60e   : > { %7165 = vmatprep.subr.bf16.mxu1 %v9952_v16  ;;  %v10016_v15 = vld [vmem:[%s11298_s28 + $0x1278] ss:$56 sps:$4 sm:$0xff]   ;;  %v10021_v16 = vld [vmem:[%s11298_s28 + $0x1134] ss:$56 sps:$4 sm:$0xff]  }
 0x610   : > { %7322 = vmatpush1.bf16.msra.mxu0 %v9947_v17  ;;  %v10024_v17 = vld [vmem:[%s11298_s28 + $0x12ec] ss:$56 sps:$4 sm:$0xff]  }
 0x611   : > { %7166 = vmatpush1.bf16.msra.mxu1 %v9950_v18  ;;  %7323 = vmatprep.subr.bf16.mxu0 %v9955_v20  ;;  %v10019_v18 = vld [vmem:[%s11298_s28 + $0x1130] ss:$56 sps:$4 sm:$0xff]  }
 0x612   : > { %7176 = vmatprep.subr.bf16.mxu1 %v9958_v22  ;;  %v10022_v20 = vld [vmem:[%s11298_s28 + $0x12e8] ss:$56 sps:$4 sm:$0xff]   ;;  %v10027_v22 = vld [vmem:[%s11298_s28 + $0x11a4] ss:$56 sps:$4 sm:$0xff]  }
 0x614   : > { %7168 = vmatmul.mubr.bf16.vlgmr.msra.gmra.mrb[16].mxu1 %v11502_v54  ;;  %7324 = vmatpush1.bf16.msra.mxu0 %v9953_v25  ;;  %v10030_v25 = vld [vmem:[%s11298_s28 + $0x135c] ss:$56 sps:$4 sm:$0xff]  }
 0x615   : > { %7177 = vmatpush1.bf16.msra.mxu1 %v9956_v28  ;;  %7208 = vmatprep.mubr.bf16.mxu1 %v11437_v46  ;;  %v10025_v28 = vld [vmem:[%s11298_s28 + $0x11a0] ss:$56 sps:$4 sm:$0xff]  }
 0x616   : > { %7325 = vmatprep.subr.bf16.mxu0 %v9961_v29  ;;  %7178 = vmatprep.subr.bf16.mxu1 %v9964_v30  ;;  %v10028_v29 = vld [vmem:[%s11298_s28 + $0x1358] ss:$56 sps:$4 sm:$0xff]   ;;  %v10033_v30 = vld [vmem:[%s11298_s28 + $0x1214] ss:$56 sps:$4 sm:$0xff]  }
 0x618   : > { %7326 = vmatpush1.bf16.msra.mxu0 %v9959_v32  ;;  %v10036_v32 = vld [vmem:[%s11298_s28 + $0x13cc] ss:$56 sps:$4 sm:$0xff]  }
 0x619   : > { %7179 = vmatpush1.bf16.msra.mxu1 %v9962_v33  ;;  %7327 = vmatprep.subr.bf16.mxu0 %v9967_v34  ;;  %v10031_v33 = vld [vmem:[%s11298_s28 + $0x1210] ss:$56 sps:$4 sm:$0xff]  }
 0x61a   : > { %7180 = vmatprep.subr.bf16.mxu1 %v9970_v36  ;;  %v10034_v34 = vld [vmem:[%s11298_s28 + $0x13c8] ss:$56 sps:$4 sm:$0xff]   ;;  %v10039_v36 = vld [vmem:[%s11298_s28 + $0x1284] ss:$56 sps:$4 sm:$0xff]  }
 0x61c   : > { %7328 = vmatpush1.bf16.msra.mxu0 %v9965_v37  ;;  %v10042_v37 = vld [vmem:[%s11298_s28 + $0x143c] ss:$56 sps:$4 sm:$0xff]  }
 0x61d   : > { %7181 = vmatpush1.bf16.msra.mxu1 %v9968_v38  ;;  %7329 = vmatprep.subr.bf16.mxu0 %v9973_v39  ;;  %v10037_v38 = vld [vmem:[%s11298_s28 + $0x1280] ss:$56 sps:$4 sm:$0xff]  }
 0x61e   : > { %7182 = vmatprep.subr.bf16.mxu1 %v9976_v40  ;;  %v10040_v39 = vld [vmem:[%s11298_s28 + $0x1438] ss:$56 sps:$4 sm:$0xff]   ;;  %v10045_v40 = vld [vmem:[%s11298_s28 + $0x12f4] ss:$56 sps:$4 sm:$0xff]  }
 0x620   : > { %7330 = vmatpush1.bf16.msra.mxu0 %v9971_v41  ;;  %v10048_v41 = vld [vmem:[%s11298_s28 + $0x14ac] ss:$56 sps:$4 sm:$0xff]  }
 0x621   : > { %7183 = vmatpush1.bf16.msra.mxu1 %v9974_v42  ;;  %7340 = vmatprep.subr.bf16.mxu0 %v9979_v43  ;;  %v10043_v42 = vld [vmem:[%s11298_s28 + $0x12f0] ss:$56 sps:$4 sm:$0xff]  }
 0x622   : > { %7184 = vmatprep.subr.bf16.mxu1 %v9982_v44  ;;  %v10046_v43 = vld [vmem:[%s11298_s28 + $0x14a8] ss:$56 sps:$4 sm:$0xff]   ;;  %v10051_v44 = vld [vmem:[%s11298_s28 + $0x1364] ss:$56 sps:$4 sm:$0xff]  }
 0x623   : > { %7332 = vmatmul.mubr.bf16.vlgmr.msra.gmra.mrb[16].mxu0 %v11502_v54 }
 0x624   : > { %7341 = vmatpush1.bf16.msra.mxu0 %v9977_v45  ;;  %7372 = vmatprep.mubr.bf16.mxu0 %v11437_v46  ;;  %v10054_v45 = vld [vmem:[%s11298_s28 + $0x151c] ss:$56 sps:$4 sm:$0xff]  }
 0x625   : > { %7185 = vmatpush1.bf16.msra.mxu1 %v9980_v47  ;;  %7342 = vmatprep.subr.bf16.mxu0 %v9985_v48  ;;  %v10049_v47 = vld [vmem:[%s11298_s28 + $0x1360] ss:$56 sps:$4 sm:$0xff]  }
 0x626   : > { %7186 = vmatprep.subr.bf16.mxu1 %v9988_v50  ;;  %v10052_v48 = vld [vmem:[%s11298_s28 + $0x1518] ss:$56 sps:$4 sm:$0xff]   ;;  %v10057_v50 = vld [vmem:[%s11298_s28 + $0x13d4] ss:$56 sps:$4 sm:$0xff]  }
 0x628   : > { %7343 = vmatpush1.bf16.msra.mxu0 %v9983_v51  ;;  %v10060_v51 = vld [vmem:[%s11298_s28 + $0x158c] ss:$56 sps:$4 sm:$0xff]  }
 0x629   : > { %7187 = vmatpush1.bf16.msra.mxu1 %v9986_v10  ;;  %7344 = vmatprep.subr.bf16.mxu0 %v9991_v53  ;;  %v10055_v10 = vld [vmem:[%s11298_s28 + $0x13d0] ss:$56 sps:$4 sm:$0xff]  }
 0x62a   : > { %7188 = vmatprep.subr.bf16.mxu1 %v9994_v56  ;;  %v10058_v53 = vld [vmem:[%s11298_s28 + $0x1588] ss:$56 sps:$4 sm:$0xff]   ;;  %v10063_v56 = vld [vmem:[%s11298_s28 + $0x1444] ss:$56 sps:$4 sm:$0xff]  }
 0x62c   : > { %7345 = vmatpush1.bf16.msra.mxu0 %v9989_v57  ;;  %v10066_v57 = vld [vmem:[%s11298_s28 + $0x15fc] ss:$56 sps:$4 sm:$0xff]  }
 0x62d   : > { %7189 = vmatpush1.bf16.msra.mxu1 %v9992_v58  ;;  %7346 = vmatprep.subr.bf16.mxu0 %v9997_v59  ;;  %v10061_v58 = vld [vmem:[%s11298_s28 + $0x1440] ss:$56 sps:$4 sm:$0xff]  }
 0x62e   : > { %7190 = vmatprep.subr.bf16.mxu1 %v10000_v6  ;;  %v10064_v59 = vld [vmem:[%s11298_s28 + $0x15f8] ss:$56 sps:$4 sm:$0xff]   ;;  %v10069_v6 = vld [vmem:[%s11298_s28 + $0x14b4] ss:$56 sps:$4 sm:$0xff]  }
 0x630   : > { %7347 = vmatpush1.bf16.msra.mxu0 %v9995_v60  ;;  %v10072_v60 = vld [vmem:[%s11298_s28 + $0x166c] ss:$56 sps:$4 sm:$0xff]  }
 0x631   : > { %7191 = vmatpush1.bf16.msra.mxu1 %v9998_v61  ;;  %7348 = vmatprep.subr.bf16.mxu0 %v10003_v62  ;;  %v10067_v61 = vld [vmem:[%s11298_s28 + $0x14b0] ss:$56 sps:$4 sm:$0xff]  }
 0x632   : > { %7192 = vmatprep.subr.bf16.mxu1 %v10006_v63  ;;  %v10070_v62 = vld [vmem:[%s11298_s28 + $0x1668] ss:$56 sps:$4 sm:$0xff]   ;;  %v10075_v63 = vld [vmem:[%s11298_s28 + $0x1524] ss:$56 sps:$4 sm:$0xff]  }
 0x634   : > { %7349 = vmatpush1.bf16.msra.mxu0 %v10001_v5  ;;  %v10078_v5 = vld [vmem:[%s11298_s28 + $0x16dc] ss:$56 sps:$4 sm:$0xff]  }
 0x635   : > { %7193 = vmatpush1.bf16.msra.mxu1 %v10004_v2  ;;  %7350 = vmatprep.subr.bf16.mxu0 %v10009_v7  ;;  %v10073_v2 = vld [vmem:[%s11298_s28 + $0x1520] ss:$56 sps:$4 sm:$0xff]  }
 0x636   : > { %7194 = vmatprep.subr.bf16.mxu1 %v10012_v8  ;;  %v10076_v7 = vld [vmem:[%s11298_s28 + $0x16d8] ss:$56 sps:$4 sm:$0xff]   ;;  %v10081_v8 = vld [vmem:[%s11298_s28 + $0x1594] ss:$56 sps:$4 sm:$0xff]  }
 0x638   : > { %7351 = vmatpush1.bf16.msra.mxu0 %v10007_v9  ;;  %v10084_v9 = vld [vmem:[%s11298_s28 + $0x174c] ss:$56 sps:$4 sm:$0xff]  }
 0x639   : > { %7195 = vmatpush1.bf16.msra.mxu1 %v10010_v11  ;;  %7352 = vmatprep.subr.bf16.mxu0 %v10015_v12  ;;  %v10541_v11 = vld [vmem:[%s11751_s23] sm:$0xff] }
 0x63a   : > { %7196 = vmatprep.subr.bf16.mxu1 %v10018_v13  ;;  %v2063_v12 = vrot.slane %v10541_v11, %v11481_v31  ;;  %v10079_v13 = vld [vmem:[%s11298_s28 + $0x1590] ss:$56 sps:$4 sm:$0xff]  }
 0x63c   : > { %7353 = vmatpush1.bf16.msra.mxu0 %v10013_v35  ;;  %v2067_v35 = vrot.slane %v10541_v11, %v11394_v4 }
 0x63d   : > { %7197 = vmatpush1.bf16.msra.mxu1 %v10016_v15  ;;  %7354 = vmatprep.subr.bf16.mxu0 %v10021_v16  ;;  %v10082_v15 = vld [vmem:[%s11298_s28 + $0x1748] ss:$56 sps:$4 sm:$0xff]   ;;  %v10087_v16 = vld [vmem:[%s11298_s28 + $0x1604] ss:$56 sps:$4 sm:$0xff]  }
 0x63e   : > { %7198 = vmatprep.subr.bf16.mxu1 %v10024_v17  ;;  %v10090_v17 = vld [vmem:[%s11298_s28 + $0x17bc] ss:$56 sps:$4 sm:$0xff]  }
 0x640   : > { %7355 = vmatpush1.bf16.msra.mxu0 %v10019_v18 }
 0x641   : > { %7199 = vmatpush1.bf16.msra.mxu1 %v10022_v20  ;;  %7356 = vmatprep.subr.bf16.mxu0 %v10027_v22 }
 0x642   : > { %7200 = vmatprep.subr.bf16.mxu1 %v10030_v25  ;;  %v10085_v25 = vld [vmem:[%s11298_s28 + $0x1600] ss:$56 sps:$4 sm:$0xff]  }
 0x644   : > { %7357 = vmatpush1.bf16.msra.mxu0 %v10025_v28 }
 0x645   : > { %7201 = vmatpush1.bf16.msra.mxu1 %v10028_v29  ;;  %7358 = vmatprep.subr.bf16.mxu0 %v10033_v30  ;;  %v10088_v30 = vld [vmem:[%s11298_s28 + $0x17b8] ss:$56 sps:$4 sm:$0xff]  }
 0x646   : > { %7202 = vmatprep.subr.bf16.mxu1 %v10036_v32  ;;  %v10093_v32 = vld [vmem:[%s11298_s28 + $0x1674] ss:$56 sps:$4 sm:$0xff]  }
 0x648   : > { %7359 = vmatpush1.bf16.msra.mxu0 %v10031_v33 }
 0x649   : > { %7203 = vmatpush1.bf16.msra.mxu1 %v10034_v34  ;;  %7360 = vmatprep.subr.bf16.mxu0 %v10039_v36  ;;  %v10096_v34 = vld [vmem:[%s11298_s28 + $0x182c] ss:$56 sps:$4 sm:$0xff]   ;;  %v10091_v36 = vld [vmem:[%s11298_s28 + $0x1670] ss:$56 sps:$4 sm:$0xff]  }
 0x64a   : > { %7204 = vmatprep.subr.bf16.mxu1 %v10042_v37  ;;  %v10094_v37 = vld [vmem:[%s11298_s28 + $0x1828] ss:$56 sps:$4 sm:$0xff]  }
 0x64c   : > { %7361 = vmatpush1.bf16.msra.mxu0 %v10037_v38  ;;  %v10099_v38 = vld [vmem:[%s11298_s28 + $0x16e4] ss:$56 sps:$4 sm:$0xff]  }
 0x64d   : > { %7205 = vmatpush1.bf16.msra.mxu1 %v10040_v39  ;;  %7362 = vmatprep.subr.bf16.mxu0 %v10045_v40  ;;  %v10102_v39 = vld [vmem:[%s11298_s28 + $0x189c] ss:$56 sps:$4 sm:$0xff]   ;;  %v10097_v40 = vld [vmem:[%s11298_s28 + $0x16e0] ss:$56 sps:$4 sm:$0xff]  }
 0x64e   : > { %7206 = vmatprep.subr.bf16.mxu1 %v10048_v41  ;;  %v10100_v41 = vld [vmem:[%s11298_s28 + $0x1898] ss:$56 sps:$4 sm:$0xff]  }
 0x650   : > { %7363 = vmatpush1.bf16.msra.mxu0 %v10043_v42  ;;  %v10105_v42 = vld [vmem:[%s11298_s28 + $0x1754] ss:$56 sps:$4 sm:$0xff]  }
 0x651   : > { %7207 = vmatpush1.bf16.msra.mxu1 %v10046_v43  ;;  %7364 = vmatprep.subr.bf16.mxu0 %v10051_v44  ;;  %v10108_v43 = vld [vmem:[%s11298_s28 + $0x190c] ss:$56 sps:$4 sm:$0xff]   ;;  %v2071_v44 = vrot.slane %v10541_v11, %v11415_v24 }
 0x652   : > { %7217 = vmatprep.subr.bf16.mxu1 %v10054_v45  ;;  %v2075_v45 = vrot.slane %v10541_v11, %v11420_v26  ;;  %v10129_v11 = vld [vmem:[%s11298_s28 + $0x1914] ss:$56 sps:$4 sm:$0xff]  }
 0x654   : > { %7209 = vmatmul.mubr.bf16.vlgmr.msra.gmra.mrb[16].mxu1 %v11441_v49  ;;  %7365 = vmatpush1.bf16.msra.mxu0 %v10049_v47  ;;  %v10103_v47 = vld [vmem:[%s11298_s28 + $0x1750] ss:$56 sps:$4 sm:$0xff]  }
 0x655   : > { %7218 = vmatpush1.bf16.msra.mxu1 %v10052_v48  ;;  %7249 = vmatprep.mubr.bf16.mxu1 %v11446_v52  ;;  %v10106_v48 = vld [vmem:[%s11298_s28 + $0x1908] ss:$56 sps:$4 sm:$0xff]  }
 0x656   : > { %7366 = vmatprep.subr.bf16.mxu0 %v10057_v50  ;;  %7219 = vmatprep.subr.bf16.mxu1 %v10060_v51  ;;  %v10111_v50 = vld [vmem:[%s11298_s28 + $0x17c4] ss:$56 sps:$4 sm:$0xff]  }
 0x658   : > { %7367 = vmatpush1.bf16.msra.mxu0 %v10055_v10  ;;  %v10114_v10 = vld [vmem:[%s11298_s28 + $0x197c] ss:$56 sps:$4 sm:$0xff]  }
 0x659   : > { %7220 = vmatpush1.bf16.msra.mxu1 %v10058_v53  ;;  %7368 = vmatprep.subr.bf16.mxu0 %v10063_v56 }
 0x65a   : > { %7221 = vmatprep.subr.bf16.mxu1 %v10066_v57 }
 0x65c   : > { %7369 = vmatpush1.bf16.msra.mxu0 %v10061_v58 }
 0x65d   : > { %7222 = vmatpush1.bf16.msra.mxu1 %v10064_v59  ;;  %7370 = vmatprep.subr.bf16.mxu0 %v10069_v6  ;;  %v10109_v59 = vld [vmem:[%s11298_s28 + $0x17c0] ss:$56 sps:$4 sm:$0xff]  }
 0x65e   : > { %7223 = vmatprep.subr.bf16.mxu1 %v10072_v60  ;;  %v10112_v60 = vld [vmem:[%s11298_s28 + $0x1978] ss:$56 sps:$4 sm:$0xff]  }
 0x660   : > { %7371 = vmatpush1.bf16.msra.mxu0 %v10067_v61  ;;  %v10117_v61 = vld [vmem:[%s11298_s28 + $0x1834] ss:$56 sps:$4 sm:$0xff]  }
 0x661   : > { %7224 = vmatpush1.bf16.msra.mxu1 %v10070_v62  ;;  %7381 = vmatprep.subr.bf16.mxu0 %v10075_v63  ;;  %v10120_v62 = vld [vmem:[%s11298_s28 + $0x19ec] ss:$56 sps:$4 sm:$0xff]   ;;  %v10115_v63 = vld [vmem:[%s11298_s28 + $0x1830] ss:$56 sps:$4 sm:$0xff]  }
 0x662   : > { %7225 = vmatprep.subr.bf16.mxu1 %v10078_v5  ;;  %v10118_v5 = vld [vmem:[%s11298_s28 + $0x19e8] ss:$56 sps:$4 sm:$0xff]  }
 0x663   : > { %7373 = vmatmul.mubr.bf16.vlgmr.msra.gmra.mrb[16].mxu0 %v11441_v49 }
 0x664   : > { %7382 = vmatpush1.bf16.msra.mxu0 %v10073_v2  ;;  %7413 = vmatprep.mubr.bf16.mxu0 %v11446_v52  ;;  %v10123_v2 = vld [vmem:[%s11298_s28 + $0x18a4] ss:$56 sps:$4 sm:$0xff]  }
 0x665   : > { %7226 = vmatpush1.bf16.msra.mxu1 %v10076_v7  ;;  %7383 = vmatprep.subr.bf16.mxu0 %v10081_v8  ;;  %v10126_v7 = vld [vmem:[%s11298_s28 + $0x1a5c] ss:$56 sps:$4 sm:$0xff]   ;;  %v10121_v8 = vld [vmem:[%s11298_s28 + $0x18a0] ss:$56 sps:$4 sm:$0xff]  }
 0x666   : > { %7227 = vmatprep.subr.bf16.mxu1 %v10084_v9  ;;  %v10124_v9 = vld [vmem:[%s11298_s28 + $0x1a58] ss:$56 sps:$4 sm:$0xff]  }
 0x667   : > { %v6923_v18 = vpop.f32.mrb[12].mxu1 }
 0x668   : > { %v8964_v20 = vadd.f32 %v6923_v18, %v2063_v12  ;;  %v6925_v22 = vpop.f32.mrb[13].mxu1  ;;  %7384 = vmatpush1.bf16.msra.mxu0 %v10079_v13  ;;  %v10132_v12 = vld [vmem:[%s11298_s28 + $0x1acc] ss:$56 sps:$4 sm:$0xff]   ;;  %v10127_v13 = vld [vmem:[%s11298_s28 + $0x1910] ss:$56 sps:$4 sm:$0xff]  }
 0x669   : > { %v8965_v28 = vadd.f32 %v6925_v22, %v2067_v35  ;;  %v6927_v29 = vpop.f32.mrb[14].mxu1  ;;  %7228 = vmatpush1.bf16.msra.mxu1 %v10082_v15  ;;  %7385 = vmatprep.subr.bf16.mxu0 %v10087_v16  ;;  %v10130_v35 = vld [vmem:[%s11298_s28 + $0x1ac8] ss:$56 sps:$4 sm:$0xff]   ;;  %v10135_v15 = vld [vmem:[%s11298_s28 + $0x1984] ss:$56 sps:$4 sm:$0xff]  }
 0x66a   : > { %7752 = vst [vmem:[%s11767_s29 + $0x10] sm:$0xff] %v8964_v20  ;;  %v6928_v33 = vpop.f32.mrb[15].mxu1  ;;  %7229 = vmatprep.subr.bf16.mxu1 %v10090_v17  ;;  %v10138_v16 = vld [vmem:[%s11298_s28 + $0x1b3c] ss:$56 sps:$4 sm:$0xff]   ;;  %v10133_v17 = vld [vmem:[%s11298_s28 + $0x1980] ss:$56 sps:$4 sm:$0xff]  }
 0x66b   : > { %7753 = vst [vmem:[%s11767_s29 + $0x18] sm:$0xff] %v8965_v28  ;;  %v10136_v18 = vld [vmem:[%s11298_s28 + $0x1b38] ss:$56 sps:$4 sm:$0xff]   ;;  %v10141_v20 = vld [vmem:[%s11298_s28 + $0x19f4] ss:$56 sps:$4 sm:$0xff]  }
 0x66c   : > { %7386 = vmatpush1.bf16.msra.mxu0 %v10085_v25  ;;  %v10144_v22 = vld [vmem:[%s11298_s28 + $0x1bac] ss:$56 sps:$4 sm:$0xff]   ;;  %v10139_v25 = vld [vmem:[%s11298_s28 + $0x19f0] ss:$56 sps:$4 sm:$0xff]  }
 0x66d   : > { %7230 = vmatpush1.bf16.msra.mxu1 %v10088_v30  ;;  %7387 = vmatprep.subr.bf16.mxu0 %v10093_v32  ;;  %v10142_v28 = vld [vmem:[%s11298_s28 + $0x1ba8] ss:$56 sps:$4 sm:$0xff]   ;;  %v10147_v29 = vld [vmem:[%s11298_s28 + $0x1a64] ss:$56 sps:$4 sm:$0xff]  }
 0x66e   : > { %7231 = vmatprep.subr.bf16.mxu1 %v10096_v34  ;;  %v10150_v30 = vld [vmem:[%s11298_s28 + $0x2c] ss:$56 sps:$4 sm:$0xff]   ;;  %v10145_v32 = vld [vmem:[%s11298_s28 + $0x1a60] ss:$56 sps:$4 sm:$0xff]  }
 0x66f   : > { %v10148_v33 = vld [vmem:[%s11298_s28 + $0x28] ss:$56 sps:$4 sm:$0xff]   ;;  %v10153_v34 = vld [vmem:[%s11298_s28 + $0x1ad4] ss:$56 sps:$4 sm:$0xff]  }
 0x670   : > { %7388 = vmatpush1.bf16.msra.mxu0 %v10091_v36  ;;  %v10156_v36 = vld [vmem:[%s11298_s28 + $0x9c] ss:$56 sps:$4 sm:$0xff]  }
 0x671   : > { %7232 = vmatpush1.bf16.msra.mxu1 %v10094_v37  ;;  %7389 = vmatprep.subr.bf16.mxu0 %v10099_v38  ;;  %v10151_v37 = vld [vmem:[%s11298_s28 + $0x1ad0] ss:$56 sps:$4 sm:$0xff]  }
 0x672   : > { %7233 = vmatprep.subr.bf16.mxu1 %v10102_v39  ;;  %v10154_v38 = vld [vmem:[%s11298_s28 + $0x98] ss:$56 sps:$4 sm:$0xff]   ;;  %v10159_v39 = vld [vmem:[%s11298_s28 + $0x1b44] ss:$56 sps:$4 sm:$0xff]  }
 0x674   : > { %7390 = vmatpush1.bf16.msra.mxu0 %v10097_v40  ;;  %v10162_v40 = vld [vmem:[%s11298_s28 + $0x10c] ss:$56 sps:$4 sm:$0xff]  }
 0x675   : > { %7234 = vmatpush1.bf16.msra.mxu1 %v10100_v41  ;;  %7391 = vmatprep.subr.bf16.mxu0 %v10105_v42  ;;  %v10157_v41 = vld [vmem:[%s11298_s28 + $0x1b40] ss:$56 sps:$4 sm:$0xff]  }
 0x676   : > { %v7087_v51 = vpop.f32.mrb[12].mxu0  ;;  %7235 = vmatprep.subr.bf16.mxu1 %v10108_v43  ;;  %v10160_v42 = vld [vmem:[%s11298_s28 + $0x108] ss:$56 sps:$4 sm:$0xff]   ;;  %v10165_v43 = vld [vmem:[%s11298_s28 + $0x1bb4] ss:$56 sps:$4 sm:$0xff]  }
 0x677   : > { %v8966_v53 = vadd.f32 %v7087_v51, %v2071_v44  ;;  %v7089_v56 = vpop.f32.mrb[13].mxu0  ;;  %v10168_v44 = vld [vmem:[%s11298_s28 + $0x17c] ss:$56 sps:$4 sm:$0xff]   ;;  %v10169_v51 = vld [vmem:[%s11298_s28 + $0x30] ss:$56 sps:$4 sm:$0xff]  }
 0x678   : > { %v8967_v57 = vadd.f32 %v7089_v56, %v2075_v45  ;;  %v7091_v58 = vpop.f32.mrb[14].mxu0  ;;  %7392 = vmatpush1.bf16.msra.mxu0 %v10103_v47  ;;  %v10163_v45 = vld [vmem:[%s11298_s28 + $0x1bb0] ss:$56 sps:$4 sm:$0xff]   ;;  %v10180_v56 = vld [vmem:[%s11298_s28 + $0x25c] ss:$56 sps:$4 sm:$0xff]  }
 0x679   : > { %7754 = vst [vmem:[%s11767_s29 + $0x20] sm:$0xff] %v8966_v53  ;;  %v7092_v6 = vpop.f32.mrb[15].mxu0  ;;  %7236 = vmatpush1.bf16.msra.mxu1 %v10106_v48  ;;  %7393 = vmatprep.subr.bf16.mxu0 %v10111_v50  ;;  %v10166_v47 = vld [vmem:[%s11298_s28 + $0x178] ss:$56 sps:$4 sm:$0xff]   ;;  %v10171_v48 = vld [vmem:[%s11298_s28 + $0x34] ss:$56 sps:$4 sm:$0xff]  }
 0x67a   : > { %7755 = vst [vmem:[%s11767_s29 + $0x28] sm:$0xff] %v8967_v57  ;;  %7237 = vmatprep.subr.bf16.mxu1 %v10114_v10  ;;  %v10174_v50 = vld [vmem:[%s11298_s28 + $0x1ec] ss:$56 sps:$4 sm:$0xff]   ;;  %v10172_v10 = vld [vmem:[%s11298_s28 + $0x1e8] ss:$56 sps:$4 sm:$0xff]  }
 0x67b   : > { %v10177_v53 = vld [vmem:[%s11298_s28 + $0xa4] ss:$56 sps:$4 sm:$0xff]   ;;  %v10175_v57 = vld [vmem:[%s11298_s28 + $0xa0] ss:$56 sps:$4 sm:$0xff]  }
 0x67c   : > { %7394 = vmatpush1.bf16.msra.mxu0 %v10109_v59  ;;  %v10178_v58 = vld [vmem:[%s11298_s28 + $0x258] ss:$56 sps:$4 sm:$0xff]   ;;  %v10183_v59 = vld [vmem:[%s11298_s28 + $0x114] ss:$56 sps:$4 sm:$0xff]  }
 0x67d   : > { %7238 = vmatpush1.bf16.msra.mxu1 %v10112_v60  ;;  %7395 = vmatprep.subr.bf16.mxu0 %v10117_v61  ;;  %v10186_v6 = vld [vmem:[%s11298_s28 + $0x2cc] ss:$56 sps:$4 sm:$0xff]   ;;  %v10181_v60 = vld [vmem:[%s11298_s28 + $0x110] ss:$56 sps:$4 sm:$0xff]  }
 0x67e   : > { %7239 = vmatprep.subr.bf16.mxu1 %v10120_v62  ;;  %v10184_v61 = vld [vmem:[%s11298_s28 + $0x2c8] ss:$56 sps:$4 sm:$0xff]   ;;  %v10189_v62 = vld [vmem:[%s11298_s28 + $0x184] ss:$56 sps:$4 sm:$0xff]  }
 0x680   : > { %7396 = vmatpush1.bf16.msra.mxu0 %v10115_v63  ;;  %v10187_v63 = vld [vmem:[%s11298_s28 + $0x180] ss:$56 sps:$4 sm:$0xff]  }
 0x681   : > { %7240 = vmatpush1.bf16.msra.mxu1 %v10118_v5  ;;  %7397 = vmatprep.subr.bf16.mxu0 %v10123_v2  ;;  %v10190_v5 = vld [vmem:[%s11298_s28 + $0x338] ss:$56 sps:$4 sm:$0xff]   ;;  %v10195_v2 = vld [vmem:[%s11298_s28 + $0x1f4] ss:$56 sps:$4 sm:$0xff]  }
 0x682   : > { %7241 = vmatprep.subr.bf16.mxu1 %v10126_v7  ;;  %v10198_v7 = vld [vmem:[%s11298_s28 + $0x3ac] ss:$56 sps:$4 sm:$0xff]  }
 0x684   : > { %7398 = vmatpush1.bf16.msra.mxu0 %v10121_v8  ;;  %v10193_v8 = vld [vmem:[%s11298_s28 + $0x1f0] ss:$56 sps:$4 sm:$0xff]  }
 0x685   : > { %7242 = vmatpush1.bf16.msra.mxu1 %v10124_v9  ;;  %7399 = vmatprep.subr.bf16.mxu0 %v10129_v11  ;;  %v10196_v9 = vld [vmem:[%s11298_s28 + $0x3a8] ss:$56 sps:$4 sm:$0xff]   ;;  %v10201_v11 = vld [vmem:[%s11298_s28 + $0x264] ss:$56 sps:$4 sm:$0xff]  }
 0x686   : > { %7243 = vmatprep.subr.bf16.mxu1 %v10132_v12  ;;  %v10204_v12 = vld [vmem:[%s11298_s28 + $0x41c] ss:$56 sps:$4 sm:$0xff]  }
 0x688   : > { %7400 = vmatpush1.bf16.msra.mxu0 %v10127_v13  ;;  %v10199_v13 = vld [vmem:[%s11298_s28 + $0x260] ss:$56 sps:$4 sm:$0xff]  }
 0x689   : > { %7244 = vmatpush1.bf16.msra.mxu1 %v10130_v35  ;;  %7401 = vmatprep.subr.bf16.mxu0 %v10135_v15  ;;  %v10202_v35 = vld [vmem:[%s11298_s28 + $0x418] ss:$56 sps:$4 sm:$0xff]   ;;  %v10207_v15 = vld [vmem:[%s11298_s28 + $0x2d4] ss:$56 sps:$4 sm:$0xff]  }
 0x68a   : > { %7245 = vmatprep.subr.bf16.mxu1 %v10138_v16  ;;  %v10210_v16 = vld [vmem:[%s11298_s28 + $0x48c] ss:$56 sps:$4 sm:$0xff]  }
 0x68c   : > { %7402 = vmatpush1.bf16.msra.mxu0 %v10133_v17  ;;  %v10205_v17 = vld [vmem:[%s11298_s28 + $0x2d0] ss:$56 sps:$4 sm:$0xff]  }
 0x68d   : > { %7246 = vmatpush1.bf16.msra.mxu1 %v10136_v18  ;;  %7403 = vmatprep.subr.bf16.mxu0 %v10141_v20  ;;  %v10208_v18 = vld [vmem:[%s11298_s28 + $0x488] ss:$56 sps:$4 sm:$0xff]   ;;  %v10213_v20 = vld [vmem:[%s11298_s28 + $0x344] ss:$56 sps:$4 sm:$0xff]  }
 0x68e   : > { %7247 = vmatprep.subr.bf16.mxu1 %v10144_v22  ;;  %v10216_v22 = vld [vmem:[%s11298_s28 + $0x4fc] ss:$56 sps:$4 sm:$0xff]  }
 0x690   : > { %7404 = vmatpush1.bf16.msra.mxu0 %v10139_v25  ;;  %v10211_v25 = vld [vmem:[%s11298_s28 + $0x340] ss:$56 sps:$4 sm:$0xff]  }
 0x691   : > { %7248 = vmatpush1.bf16.msra.mxu1 %v10142_v28  ;;  %7405 = vmatprep.subr.bf16.mxu0 %v10147_v29  ;;  %v10214_v28 = vld [vmem:[%s11298_s28 + $0x4f8] ss:$56 sps:$4 sm:$0xff]   ;;  %v10219_v29 = vld [vmem:[%s11298_s28 + $0x3b4] ss:$56 sps:$4 sm:$0xff]  }
 0x692   : > { %7422 = vmatprep.subr.bf16.mxu1 %v10150_v30  ;;  %v10222_v30 = vld [vmem:[%s11298_s28 + $0x56c] ss:$56 sps:$4 sm:$0xff]  }
 0x694   : > { %7250 = vmatmul.mubr.bf16.vlgmr.msra.gmra.mrb[16].mxu1 %v11526_v14  ;;  %7406 = vmatpush1.bf16.msra.mxu0 %v10145_v32  ;;  %v10217_v32 = vld [vmem:[%s11298_s28 + $0x3b0] ss:$56 sps:$4 sm:$0xff]  }
 0x695   : > { %7423 = vmatpush1.bf16.msra.mxu1 %v10148_v33  ;;  %7454 = vmatprep.mubr.bf16.mxu1 %v11404_v19  ;;  %v10220_v33 = vld [vmem:[%s11298_s28 + $0x568] ss:$56 sps:$4 sm:$0xff]  }
 0x696   : > { %7407 = vmatprep.subr.bf16.mxu0 %v10153_v34  ;;  %7424 = vmatprep.subr.bf16.mxu1 %v10156_v36  ;;  %v10225_v34 = vld [vmem:[%s11298_s28 + $0x424] ss:$56 sps:$4 sm:$0xff]  }
 0x697   : > { %v10228_v36 = vld [vmem:[%s11298_s28 + $0x5dc] ss:$56 sps:$4 sm:$0xff]  }
 0x698   : > { %7408 = vmatpush1.bf16.msra.mxu0 %v10151_v37  ;;  %v10223_v37 = vld [vmem:[%s11298_s28 + $0x420] ss:$56 sps:$4 sm:$0xff]  }
 0x699   : > { %7425 = vmatpush1.bf16.msra.mxu1 %v10154_v38  ;;  %7409 = vmatprep.subr.bf16.mxu0 %v10159_v39  ;;  %v10226_v38 = vld [vmem:[%s11298_s28 + $0x5d8] ss:$56 sps:$4 sm:$0xff]   ;;  %v10231_v39 = vld [vmem:[%s11298_s28 + $0x494] ss:$56 sps:$4 sm:$0xff]  }
 0x69a   : > { %7426 = vmatprep.subr.bf16.mxu1 %v10162_v40  ;;  %v10234_v40 = vld [vmem:[%s11298_s28 + $0x64c] ss:$56 sps:$4 sm:$0xff]  }
 0x69c   : > { %7410 = vmatpush1.bf16.msra.mxu0 %v10157_v41  ;;  %v10229_v41 = vld [vmem:[%s11298_s28 + $0x490] ss:$56 sps:$4 sm:$0xff]  }
 0x69d   : > { %7427 = vmatpush1.bf16.msra.mxu1 %v10160_v42  ;;  %7411 = vmatprep.subr.bf16.mxu0 %v10165_v43  ;;  %v10232_v42 = vld [vmem:[%s11298_s28 + $0x648] ss:$56 sps:$4 sm:$0xff]   ;;  %v10237_v43 = vld [vmem:[%s11298_s28 + $0x504] ss:$56 sps:$4 sm:$0xff]  }
 0x69e   : > { %7428 = vmatprep.subr.bf16.mxu1 %v10168_v44  ;;  %v10240_v44 = vld [vmem:[%s11298_s28 + $0x6bc] ss:$56 sps:$4 sm:$0xff]  }
 0x6a0   : > { %7412 = vmatpush1.bf16.msra.mxu0 %v10163_v45  ;;  %v10235_v45 = vld [vmem:[%s11298_s28 + $0x500] ss:$56 sps:$4 sm:$0xff]  }
 0x6a1   : > { %7429 = vmatpush1.bf16.msra.mxu1 %v10166_v47  ;;  %7586 = vmatprep.subr.bf16.mxu0 %v10171_v48  ;;  %v10238_v47 = vld [vmem:[%s11298_s28 + $0x6b8] ss:$56 sps:$4 sm:$0xff]   ;;  %v10243_v48 = vld [vmem:[%s11298_s28 + $0x574] ss:$56 sps:$4 sm:$0xff]  }
 0x6a2   : > { %7430 = vmatprep.subr.bf16.mxu1 %v10174_v50  ;;  %v10246_v50 = vld [vmem:[%s11298_s28 + $0x72c] ss:$56 sps:$4 sm:$0xff]  }
 0x6a3   : > { %7414 = vmatmul.mubr.bf16.vlgmr.msra.gmra.mrb[16].mxu0 %v11526_v14 }
 0x6a4   : > { %7587 = vmatpush1.bf16.msra.mxu0 %v10169_v51  ;;  %7618 = vmatprep.mubr.bf16.mxu0 %v11404_v19  ;;  %v10192_v19 = vld [vmem:[%s11298_s28 + $0x33c] ss:$56 sps:$4 sm:$0xff]   ;;  %v10241_v51 = vld [vmem:[%s11298_s28 + $0x570] ss:$56 sps:$4 sm:$0xff]  }
 0x6a5   : > { %7431 = vmatpush1.bf16.msra.mxu1 %v10172_v10  ;;  %7588 = vmatprep.subr.bf16.mxu0 %v10177_v53  ;;  %v10244_v10 = vld [vmem:[%s11298_s28 + $0x728] ss:$56 sps:$4 sm:$0xff]   ;;  %v10249_v53 = vld [vmem:[%s11298_s28 + $0x5e4] ss:$56 sps:$4 sm:$0xff]  }
 0x6a6   : > { %7432 = vmatprep.subr.bf16.mxu1 %v10180_v56  ;;  %v10252_v56 = vld [vmem:[%s11298_s28 + $0x79c] ss:$56 sps:$4 sm:$0xff]  }
 0x6a8   : > { %7589 = vmatpush1.bf16.msra.mxu0 %v10175_v57  ;;  %v10247_v57 = vld [vmem:[%s11298_s28 + $0x5e0] ss:$56 sps:$4 sm:$0xff]  }
 0x6a9   : > { %7433 = vmatpush1.bf16.msra.mxu1 %v10178_v58  ;;  %7590 = vmatprep.subr.bf16.mxu0 %v10183_v59  ;;  %v10250_v58 = vld [vmem:[%s11298_s28 + $0x798] ss:$56 sps:$4 sm:$0xff]   ;;  %v10255_v59 = vld [vmem:[%s11298_s28 + $0x654] ss:$56 sps:$4 sm:$0xff]  }
 0x6aa   : > { %7434 = vmatprep.subr.bf16.mxu1 %v10186_v6  ;;  %v10258_v6 = vld [vmem:[%s11298_s28 + $0x80c] ss:$56 sps:$4 sm:$0xff]  }
 0x6ac   : > { %7591 = vmatpush1.bf16.msra.mxu0 %v10181_v60  ;;  %v10253_v60 = vld [vmem:[%s11298_s28 + $0x650] ss:$56 sps:$4 sm:$0xff]  }
 0x6ad   : > { %7435 = vmatpush1.bf16.msra.mxu1 %v10184_v61  ;;  %7592 = vmatprep.subr.bf16.mxu0 %v10189_v62  ;;  %v10256_v61 = vld [vmem:[%s11298_s28 + $0x808] ss:$56 sps:$4 sm:$0xff]   ;;  %v10261_v62 = vld [vmem:[%s11298_s28 + $0x6c4] ss:$56 sps:$4 sm:$0xff]  }
 0x6ae   : > { %7436 = vmatprep.subr.bf16.mxu1 %v10192_v19  ;;  %v10264_v19 = vld [vmem:[%s11298_s28 + $0x87c] ss:$56 sps:$4 sm:$0xff]  }
 0x6b0   : > { %7593 = vmatpush1.bf16.msra.mxu0 %v10187_v63  ;;  %v10259_v63 = vld [vmem:[%s11298_s28 + $0x6c0] ss:$56 sps:$4 sm:$0xff]  }
 0x6b1   : > { %7437 = vmatpush1.bf16.msra.mxu1 %v10190_v5  ;;  %7594 = vmatprep.subr.bf16.mxu0 %v10195_v2  ;;  %v10262_v5 = vld [vmem:[%s11298_s28 + $0x878] ss:$56 sps:$4 sm:$0xff]   ;;  %v10267_v2 = vld [vmem:[%s11298_s28 + $0x734] ss:$56 sps:$4 sm:$0xff]  }
 0x6b2   : > { %7438 = vmatprep.subr.bf16.mxu1 %v10198_v7  ;;  %v10270_v7 = vld [vmem:[%s11298_s28 + $0x8ec] ss:$56 sps:$4 sm:$0xff]  }
 0x6b4   : > { %7595 = vmatpush1.bf16.msra.mxu0 %v10193_v8  ;;  %v10265_v8 = vld [vmem:[%s11298_s28 + $0x730] ss:$56 sps:$4 sm:$0xff]  }
 0x6b5   : > { %7439 = vmatpush1.bf16.msra.mxu1 %v10196_v9  ;;  %7596 = vmatprep.subr.bf16.mxu0 %v10201_v11  ;;  %v10268_v9 = vld [vmem:[%s11298_s28 + $0x8e8] ss:$56 sps:$4 sm:$0xff]   ;;  %v10273_v11 = vld [vmem:[%s11298_s28 + $0x7a4] ss:$56 sps:$4 sm:$0xff]  }
 0x6b6   : > { %7440 = vmatprep.subr.bf16.mxu1 %v10204_v12  ;;  %v10276_v12 = vld [vmem:[%s11298_s28 + $0x95c] ss:$56 sps:$4 sm:$0xff]  }
 0x6b8   : > { %7597 = vmatpush1.bf16.msra.mxu0 %v10199_v13  ;;  %v10271_v13 = vld [vmem:[%s11298_s28 + $0x7a0] ss:$56 sps:$4 sm:$0xff]  }
 0x6b9   : > { %7441 = vmatpush1.bf16.msra.mxu1 %v10202_v35  ;;  %7598 = vmatprep.subr.bf16.mxu0 %v10207_v15  ;;  %v10274_v35 = vld [vmem:[%s11298_s28 + $0x958] ss:$56 sps:$4 sm:$0xff]   ;;  %v10279_v15 = vld [vmem:[%s11298_s28 + $0x814] ss:$56 sps:$4 sm:$0xff]  }
 0x6ba   : > { %7442 = vmatprep.subr.bf16.mxu1 %v10210_v16  ;;  %v10282_v16 = vld [vmem:[%s11298_s28 + $0x9cc] ss:$56 sps:$4 sm:$0xff]  }
 0x6bc   : > { %7599 = vmatpush1.bf16.msra.mxu0 %v10205_v17  ;;  %v10277_v17 = vld [vmem:[%s11298_s28 + $0x810] ss:$56 sps:$4 sm:$0xff]  }
 0x6bd   : > { %7443 = vmatpush1.bf16.msra.mxu1 %v10208_v18  ;;  %7600 = vmatprep.subr.bf16.mxu0 %v10213_v20  ;;  %v10285_v18 = vld [vmem:[%s11298_s28 + $0x884] ss:$56 sps:$4 sm:$0xff]   ;;  %v10283_v20 = vld [vmem:[%s11298_s28 + $0x880] ss:$56 sps:$4 sm:$0xff]  }
 0x6be   : > { %7444 = vmatprep.subr.bf16.mxu1 %v10216_v22  ;;  %v10286_v22 = vld [vmem:[%s11298_s28 + $0xa38] ss:$56 sps:$4 sm:$0xff]  }
 0x6c0   : > { %7601 = vmatpush1.bf16.msra.mxu0 %v10211_v25  ;;  %v10291_v25 = vld [vmem:[%s11298_s28 + $0x8f4] ss:$56 sps:$4 sm:$0xff]  }
 0x6c1   : > { %7445 = vmatpush1.bf16.msra.mxu1 %v10214_v28  ;;  %7602 = vmatprep.subr.bf16.mxu0 %v10219_v29  ;;  %v10294_v28 = vld [vmem:[%s11298_s28 + $0xaac] ss:$56 sps:$4 sm:$0xff]   ;;  %v10289_v29 = vld [vmem:[%s11298_s28 + $0x8f0] ss:$56 sps:$4 sm:$0xff]  }
 0x6c2   : > { %7446 = vmatprep.subr.bf16.mxu1 %v10222_v30  ;;  %v10292_v30 = vld [vmem:[%s11298_s28 + $0xaa8] ss:$56 sps:$4 sm:$0xff]  }
 0x6c4   : > { %7603 = vmatpush1.bf16.msra.mxu0 %v10217_v32  ;;  %v10297_v32 = vld [vmem:[%s11298_s28 + $0x964] ss:$56 sps:$4 sm:$0xff]  }
 0x6c5   : > { %7447 = vmatpush1.bf16.msra.mxu1 %v10220_v33  ;;  %7604 = vmatprep.subr.bf16.mxu0 %v10225_v34  ;;  %v10300_v33 = vld [vmem:[%s11298_s28 + $0xb1c] ss:$56 sps:$4 sm:$0xff]   ;;  %v10295_v34 = vld [vmem:[%s11298_s28 + $0x960] ss:$56 sps:$4 sm:$0xff]  }
 0x6c6   : > { %7448 = vmatprep.subr.bf16.mxu1 %v10228_v36  ;;  %v10298_v36 = vld [vmem:[%s11298_s28 + $0xb18] ss:$56 sps:$4 sm:$0xff]  }
 0x6c8   : > { %7605 = vmatpush1.bf16.msra.mxu0 %v10223_v37  ;;  %v10303_v37 = vld [vmem:[%s11298_s28 + $0x9d4] ss:$56 sps:$4 sm:$0xff]  }
 0x6c9   : > { %7449 = vmatpush1.bf16.msra.mxu1 %v10226_v38  ;;  %7606 = vmatprep.subr.bf16.mxu0 %v10231_v39  ;;  %v10306_v38 = vld [vmem:[%s11298_s28 + $0xb8c] ss:$56 sps:$4 sm:$0xff]   ;;  %v10301_v39 = vld [vmem:[%s11298_s28 + $0x9d0] ss:$56 sps:$4 sm:$0xff]  }
 0x6ca   : > { %7450 = vmatprep.subr.bf16.mxu1 %v10234_v40  ;;  %v10304_v40 = vld [vmem:[%s11298_s28 + $0xb88] ss:$56 sps:$4 sm:$0xff]  }
 0x6cc   : > { %7607 = vmatpush1.bf16.msra.mxu0 %v10229_v41  ;;  %v10309_v41 = vld [vmem:[%s11298_s28 + $0xa44] ss:$56 sps:$4 sm:$0xff]  }
 0x6cd   : > { %7451 = vmatpush1.bf16.msra.mxu1 %v10232_v42  ;;  %7608 = vmatprep.subr.bf16.mxu0 %v10237_v43  ;;  %v10312_v42 = vld [vmem:[%s11298_s28 + $0xbfc] ss:$56 sps:$4 sm:$0xff]   ;;  %v10307_v43 = vld [vmem:[%s11298_s28 + $0xa40] ss:$56 sps:$4 sm:$0xff]  }
 0x6ce   : > { %7452 = vmatprep.subr.bf16.mxu1 %v10240_v44  ;;  %v10310_v44 = vld [vmem:[%s11298_s28 + $0xbf8] ss:$56 sps:$4 sm:$0xff]  }
 0x6d0   : > { %7609 = vmatpush1.bf16.msra.mxu0 %v10235_v45  ;;  %v10315_v45 = vld [vmem:[%s11298_s28 + $0xab4] ss:$56 sps:$4 sm:$0xff]  }
 0x6d1   : > { %7453 = vmatpush1.bf16.msra.mxu1 %v10238_v47  ;;  %7610 = vmatprep.subr.bf16.mxu0 %v10243_v48  ;;  %v10318_v47 = vld [vmem:[%s11298_s28 + $0xc6c] ss:$56 sps:$4 sm:$0xff]   ;;  %v10313_v48 = vld [vmem:[%s11298_s28 + $0xab0] ss:$56 sps:$4 sm:$0xff]  }
 0x6d2   : > { %7463 = vmatprep.subr.bf16.mxu1 %v10246_v50  ;;  %v10316_v50 = vld [vmem:[%s11298_s28 + $0xc68] ss:$56 sps:$4 sm:$0xff]  }
 0x6d4   : > { %7455 = vmatmul.mubr.bf16.vlgmr.msra.gmra.mrb[20].mxu1 %v11407_v21  ;;  %7611 = vmatpush1.bf16.msra.mxu0 %v10241_v51  ;;  %v10321_v51 = vld [vmem:[%s11298_s28 + $0xb24] ss:$56 sps:$4 sm:$0xff]  }
 0x6d5   : > { %7464 = vmatpush1.bf16.msra.mxu1 %v10244_v10  ;;  %7495 = vmatprep.mubr.bf16.mxu1 %v11410_v23  ;;  %v10324_v10 = vld [vmem:[%s11298_s28 + $0xcdc] ss:$56 sps:$4 sm:$0xff]  }
 0x6d6   : > { %7612 = vmatprep.subr.bf16.mxu0 %v10249_v53  ;;  %7465 = vmatprep.subr.bf16.mxu1 %v10252_v56  ;;  %v10319_v53 = vld [vmem:[%s11298_s28 + $0xb20] ss:$56 sps:$4 sm:$0xff]  }
 0x6d7   : > { %v10322_v56 = vld [vmem:[%s11298_s28 + $0xcd8] ss:$56 sps:$4 sm:$0xff]  }
 0x6d8   : > { %7613 = vmatpush1.bf16.msra.mxu0 %v10247_v57  ;;  %v10327_v57 = vld [vmem:[%s11298_s28 + $0xb94] ss:$56 sps:$4 sm:$0xff]  }
 0x6d9   : > { %7466 = vmatpush1.bf16.msra.mxu1 %v10250_v58  ;;  %7614 = vmatprep.subr.bf16.mxu0 %v10255_v59  ;;  %v10330_v58 = vld [vmem:[%s11298_s28 + $0xd4c] ss:$56 sps:$4 sm:$0xff]   ;;  %v10325_v59 = vld [vmem:[%s11298_s28 + $0xb90] ss:$56 sps:$4 sm:$0xff]  }
 0x6da   : > { %7467 = vmatprep.subr.bf16.mxu1 %v10258_v6  ;;  %v10328_v6 = vld [vmem:[%s11298_s28 + $0xd48] ss:$56 sps:$4 sm:$0xff]  }
 0x6dc   : > { %7615 = vmatpush1.bf16.msra.mxu0 %v10253_v60  ;;  %v10333_v60 = vld [vmem:[%s11298_s28 + $0xc04] ss:$56 sps:$4 sm:$0xff]  }
 0x6dd   : > { %7468 = vmatpush1.bf16.msra.mxu1 %v10256_v61  ;;  %7616 = vmatprep.subr.bf16.mxu0 %v10261_v62  ;;  %v10336_v61 = vld [vmem:[%s11298_s28 + $0xdbc] ss:$56 sps:$4 sm:$0xff]   ;;  %v10331_v62 = vld [vmem:[%s11298_s28 + $0xc00] ss:$56 sps:$4 sm:$0xff]  }
 0x6de   : > { %7469 = vmatprep.subr.bf16.mxu1 %v10264_v19  ;;  %v10334_v19 = vld [vmem:[%s11298_s28 + $0xdb8] ss:$56 sps:$4 sm:$0xff]  }
 0x6e0   : > { %7617 = vmatpush1.bf16.msra.mxu0 %v10259_v63  ;;  %v10339_v63 = vld [vmem:[%s11298_s28 + $0xc74] ss:$56 sps:$4 sm:$0xff]  }
 0x6e1   : > { %7470 = vmatpush1.bf16.msra.mxu1 %v10262_v5  ;;  %7627 = vmatprep.subr.bf16.mxu0 %v10267_v2  ;;  %v10342_v5 = vld [vmem:[%s11298_s28 + $0xe2c] ss:$56 sps:$4 sm:$0xff]   ;;  %v10337_v2 = vld [vmem:[%s11298_s28 + $0xc70] ss:$56 sps:$4 sm:$0xff]  }
 0x6e2   : > { %7471 = vmatprep.subr.bf16.mxu1 %v10270_v7  ;;  %v10340_v7 = vld [vmem:[%s11298_s28 + $0xe28] ss:$56 sps:$4 sm:$0xff]  }
 0x6e3   : > { %7619 = vmatmul.mubr.bf16.vlgmr.msra.gmra.mrb[20].mxu0 %v11407_v21  ;;  %v10280_v21 = vld [vmem:[%s11298_s28 + $0x9c8] ss:$56 sps:$4 sm:$0xff]  }
 0x6e4   : > { %7628 = vmatpush1.bf16.msra.mxu0 %v10265_v8  ;;  %7659 = vmatprep.mubr.bf16.mxu0 %v11410_v23  ;;  %v10288_v23 = vld [vmem:[%s11298_s28 + $0xa3c] ss:$56 sps:$4 sm:$0xff]  }
 0x6e5   : > { %7472 = vmatpush1.bf16.msra.mxu1 %v10268_v9  ;;  %7629 = vmatprep.subr.bf16.mxu0 %v10273_v11  ;;  %v10345_v8 = vld [vmem:[%s11298_s28 + $0xce4] ss:$56 sps:$4 sm:$0xff]   ;;  %v10343_v11 = vld [vmem:[%s11298_s28 + $0xce0] ss:$56 sps:$4 sm:$0xff]  }
 0x6e6   : > { %7473 = vmatprep.subr.bf16.mxu1 %v10276_v12  ;;  %v10348_v9 = vld [vmem:[%s11298_s28 + $0xe9c] ss:$56 sps:$4 sm:$0xff]   ;;  %v10346_v12 = vld [vmem:[%s11298_s28 + $0xe98] ss:$56 sps:$4 sm:$0xff]  }
 0x6e8   : > { %7630 = vmatpush1.bf16.msra.mxu0 %v10271_v13  ;;  %v10351_v13 = vld [vmem:[%s11298_s28 + $0xd54] ss:$56 sps:$4 sm:$0xff]  }
 0x6e9   : > { %7474 = vmatpush1.bf16.msra.mxu1 %v10274_v35  ;;  %7631 = vmatprep.subr.bf16.mxu0 %v10279_v15  ;;  %v10354_v35 = vld [vmem:[%s11298_s28 + $0xf0c] ss:$56 sps:$4 sm:$0xff]   ;;  %v10349_v15 = vld [vmem:[%s11298_s28 + $0xd50] ss:$56 sps:$4 sm:$0xff]  }
 0x6ea   : > { %7475 = vmatprep.subr.bf16.mxu1 %v10282_v16  ;;  %v10352_v16 = vld [vmem:[%s11298_s28 + $0xf08] ss:$56 sps:$4 sm:$0xff]  }
 0x6ec   : > { %7632 = vmatpush1.bf16.msra.mxu0 %v10277_v17  ;;  %v10357_v17 = vld [vmem:[%s11298_s28 + $0xdc4] ss:$56 sps:$4 sm:$0xff]  }
 0x6ed   : > { %7476 = vmatpush1.bf16.msra.mxu1 %v10280_v21  ;;  %7633 = vmatprep.subr.bf16.mxu0 %v10285_v18  ;;  %v10360_v21 = vld [vmem:[%s11298_s28 + $0xf7c] ss:$56 sps:$4 sm:$0xff]   ;;  %v10355_v18 = vld [vmem:[%s11298_s28 + $0xdc0] ss:$56 sps:$4 sm:$0xff]  }
 0x6ee   : > { %7477 = vmatprep.subr.bf16.mxu1 %v10288_v23  ;;  %v10358_v23 = vld [vmem:[%s11298_s28 + $0xf78] ss:$56 sps:$4 sm:$0xff]  }
 0x6f0   : > { %7634 = vmatpush1.bf16.msra.mxu0 %v10283_v20  ;;  %v10363_v20 = vld [vmem:[%s11298_s28 + $0xe34] ss:$56 sps:$4 sm:$0xff]  }
 0x6f1   : > { %7478 = vmatpush1.bf16.msra.mxu1 %v10286_v22  ;;  %7635 = vmatprep.subr.bf16.mxu0 %v10291_v25  ;;  %v10366_v22 = vld [vmem:[%s11298_s28 + $0xfec] ss:$56 sps:$4 sm:$0xff]   ;;  %v10361_v25 = vld [vmem:[%s11298_s28 + $0xe30] ss:$56 sps:$4 sm:$0xff]  }
 0x6f2   : > { %7479 = vmatprep.subr.bf16.mxu1 %v10294_v28  ;;  %v10364_v28 = vld [vmem:[%s11298_s28 + $0xfe8] ss:$56 sps:$4 sm:$0xff]  }
 0x6f4   : > { %7636 = vmatpush1.bf16.msra.mxu0 %v10289_v29  ;;  %v10369_v29 = vld [vmem:[%s11298_s28 + $0xea4] ss:$56 sps:$4 sm:$0xff]  }
 0x6f5   : > { %7480 = vmatpush1.bf16.msra.mxu1 %v10292_v30  ;;  %7637 = vmatprep.subr.bf16.mxu0 %v10297_v32  ;;  %v10372_v30 = vld [vmem:[%s11298_s28 + $0x105c] ss:$56 sps:$4 sm:$0xff]   ;;  %v10367_v32 = vld [vmem:[%s11298_s28 + $0xea0] ss:$56 sps:$4 sm:$0xff]  }
 0x6f6   : > { %7481 = vmatprep.subr.bf16.mxu1 %v10300_v33  ;;  %v10370_v33 = vld [vmem:[%s11298_s28 + $0x1058] ss:$56 sps:$4 sm:$0xff]  }
 0x6f8   : > { %7638 = vmatpush1.bf16.msra.mxu0 %v10295_v34  ;;  %v10375_v34 = vld [vmem:[%s11298_s28 + $0xf14] ss:$56 sps:$4 sm:$0xff]  }
 0x6f9   : > { %7482 = vmatpush1.bf16.msra.mxu1 %v10298_v36  ;;  %7639 = vmatprep.subr.bf16.mxu0 %v10303_v37  ;;  %v10378_v36 = vld [vmem:[%s11298_s28 + $0x10cc] ss:$56 sps:$4 sm:$0xff]   ;;  %v10373_v37 = vld [vmem:[%s11298_s28 + $0xf10] ss:$56 sps:$4 sm:$0xff]  }
 0x6fa   : > { %7483 = vmatprep.subr.bf16.mxu1 %v10306_v38  ;;  %v10381_v38 = vld [vmem:[%s11298_s28 + $0xf84] ss:$56 sps:$4 sm:$0xff]  }
 0x6fc   : > { %7640 = vmatpush1.bf16.msra.mxu0 %v10301_v39  ;;  %v10379_v39 = vld [vmem:[%s11298_s28 + $0xf80] ss:$56 sps:$4 sm:$0xff]  }
 0x6fd   : > { %7484 = vmatpush1.bf16.msra.mxu1 %v10304_v40  ;;  %7641 = vmatprep.subr.bf16.mxu0 %v10309_v41  ;;  %v10382_v40 = vld [vmem:[%s11298_s28 + $0x1138] ss:$56 sps:$4 sm:$0xff]   ;;  %v10387_v41 = vld [vmem:[%s11298_s28 + $0xff4] ss:$56 sps:$4 sm:$0xff]  }
 0x6fe   : > { %7485 = vmatprep.subr.bf16.mxu1 %v10312_v42  ;;  %v10390_v42 = vld [vmem:[%s11298_s28 + $0x11ac] ss:$56 sps:$4 sm:$0xff]  }
 0x700   : > { %7642 = vmatpush1.bf16.msra.mxu0 %v10307_v43  ;;  %v10385_v43 = vld [vmem:[%s11298_s28 + $0xff0] ss:$56 sps:$4 sm:$0xff]  }
 0x701   : > { %7486 = vmatpush1.bf16.msra.mxu1 %v10310_v44  ;;  %7643 = vmatprep.subr.bf16.mxu0 %v10315_v45  ;;  %v10388_v44 = vld [vmem:[%s11298_s28 + $0x11a8] ss:$56 sps:$4 sm:$0xff]   ;;  %v10393_v45 = vld [vmem:[%s11298_s28 + $0x1064] ss:$56 sps:$4 sm:$0xff]  }
 0x702   : > { %7487 = vmatprep.subr.bf16.mxu1 %v10318_v47  ;;  %v10396_v47 = vld [vmem:[%s11298_s28 + $0x121c] ss:$56 sps:$4 sm:$0xff]  }
 0x704   : > { %7644 = vmatpush1.bf16.msra.mxu0 %v10313_v48  ;;  %v10391_v48 = vld [vmem:[%s11298_s28 + $0x1060] ss:$56 sps:$4 sm:$0xff]  }
 0x705   : > { %7488 = vmatpush1.bf16.msra.mxu1 %v10316_v50  ;;  %7645 = vmatprep.subr.bf16.mxu0 %v10321_v51  ;;  %v10394_v50 = vld [vmem:[%s11298_s28 + $0x1218] ss:$56 sps:$4 sm:$0xff]   ;;  %v10399_v51 = vld [vmem:[%s11298_s28 + $0x10d4] ss:$56 sps:$4 sm:$0xff]  }
 0x706   : > { %7489 = vmatprep.subr.bf16.mxu1 %v10324_v10  ;;  %v10402_v10 = vld [vmem:[%s11298_s28 + $0x128c] ss:$56 sps:$4 sm:$0xff]  }
 0x708   : > { %7646 = vmatpush1.bf16.msra.mxu0 %v10319_v53  ;;  %v10397_v53 = vld [vmem:[%s11298_s28 + $0x10d0] ss:$56 sps:$4 sm:$0xff]  }
 0x709   : > { %7490 = vmatpush1.bf16.msra.mxu1 %v10322_v56  ;;  %7647 = vmatprep.subr.bf16.mxu0 %v10327_v57  ;;  %v10400_v56 = vld [vmem:[%s11298_s28 + $0x1288] ss:$56 sps:$4 sm:$0xff]   ;;  %v10405_v57 = vld [vmem:[%s11298_s28 + $0x1144] ss:$56 sps:$4 sm:$0xff]  }
 0x70a   : > { %7491 = vmatprep.subr.bf16.mxu1 %v10330_v58  ;;  %v10408_v58 = vld [vmem:[%s11298_s28 + $0x12fc] ss:$56 sps:$4 sm:$0xff]  }
 0x70c   : > { %7648 = vmatpush1.bf16.msra.mxu0 %v10325_v59  ;;  %v10403_v59 = vld [vmem:[%s11298_s28 + $0x1140] ss:$56 sps:$4 sm:$0xff]  }
 0x70d   : > { %7492 = vmatpush1.bf16.msra.mxu1 %v10328_v6  ;;  %7649 = vmatprep.subr.bf16.mxu0 %v10333_v60  ;;  %v10406_v6 = vld [vmem:[%s11298_s28 + $0x12f8] ss:$56 sps:$4 sm:$0xff]   ;;  %v10411_v60 = vld [vmem:[%s11298_s28 + $0x11b4] ss:$56 sps:$4 sm:$0xff]  }
 0x70e   : > { %7493 = vmatprep.subr.bf16.mxu1 %v10336_v61  ;;  %v10414_v61 = vld [vmem:[%s11298_s28 + $0x136c] ss:$56 sps:$4 sm:$0xff]  }
 0x710   : > { %7650 = vmatpush1.bf16.msra.mxu0 %v10331_v62  ;;  %v10409_v62 = vld [vmem:[%s11298_s28 + $0x11b0] ss:$56 sps:$4 sm:$0xff]  }
 0x711   : > { %7494 = vmatpush1.bf16.msra.mxu1 %v10334_v19  ;;  %7651 = vmatprep.subr.bf16.mxu0 %v10339_v63  ;;  %v10412_v19 = vld [vmem:[%s11298_s28 + $0x1368] ss:$56 sps:$4 sm:$0xff]   ;;  %v10417_v63 = vld [vmem:[%s11298_s28 + $0x1224] ss:$56 sps:$4 sm:$0xff]  }
 0x712   : > { %7504 = vmatprep.subr.bf16.mxu1 %v10342_v5  ;;  %v10420_v5 = vld [vmem:[%s11298_s28 + $0x13dc] ss:$56 sps:$4 sm:$0xff]  }
 0x714   : > { %7496 = vmatmul.mubr.bf16.vlgmr.msra.gmra.mrb[20].mxu1 %v11502_v54  ;;  %7652 = vmatpush1.bf16.msra.mxu0 %v10337_v2  ;;  %v10415_v2 = vld [vmem:[%s11298_s28 + $0x1220] ss:$56 sps:$4 sm:$0xff]  }
 0x715   : > { %7505 = vmatpush1.bf16.msra.mxu1 %v10340_v7  ;;  %7536 = vmatprep.mubr.bf16.mxu1 %v11437_v46  ;;  %v10418_v7 = vld [vmem:[%s11298_s28 + $0x13d8] ss:$56 sps:$4 sm:$0xff]  }
 0x716   : > { %7653 = vmatprep.subr.bf16.mxu0 %v10345_v8  ;;  %7506 = vmatprep.subr.bf16.mxu1 %v10348_v9  ;;  %v10423_v8 = vld [vmem:[%s11298_s28 + $0x1294] ss:$56 sps:$4 sm:$0xff]  }
 0x717   : > { %v10426_v9 = vld [vmem:[%s11298_s28 + $0x144c] ss:$56 sps:$4 sm:$0xff]  }
 0x718   : > { %7654 = vmatpush1.bf16.msra.mxu0 %v10343_v11  ;;  %v10421_v11 = vld [vmem:[%s11298_s28 + $0x1290] ss:$56 sps:$4 sm:$0xff]  }
 0x719   : > { %7507 = vmatpush1.bf16.msra.mxu1 %v10346_v12  ;;  %7655 = vmatprep.subr.bf16.mxu0 %v10351_v13  ;;  %v10424_v12 = vld [vmem:[%s11298_s28 + $0x1448] ss:$56 sps:$4 sm:$0xff]   ;;  %v10429_v13 = vld [vmem:[%s11298_s28 + $0x1304] ss:$56 sps:$4 sm:$0xff]  }
 0x71a   : > { %7508 = vmatprep.subr.bf16.mxu1 %v10354_v35  ;;  %v10432_v35 = vld [vmem:[%s11298_s28 + $0x14bc] ss:$56 sps:$4 sm:$0xff]  }
 0x71c   : > { %7656 = vmatpush1.bf16.msra.mxu0 %v10349_v15  ;;  %v10427_v15 = vld [vmem:[%s11298_s28 + $0x1300] ss:$56 sps:$4 sm:$0xff]  }
 0x71d   : > { %7509 = vmatpush1.bf16.msra.mxu1 %v10352_v16  ;;  %7657 = vmatprep.subr.bf16.mxu0 %v10357_v17  ;;  %v10430_v16 = vld [vmem:[%s11298_s28 + $0x14b8] ss:$56 sps:$4 sm:$0xff]   ;;  %v10435_v17 = vld [vmem:[%s11298_s28 + $0x1374] ss:$56 sps:$4 sm:$0xff]  }
 0x71e   : > { %7510 = vmatprep.subr.bf16.mxu1 %v10360_v21  ;;  %v10438_v21 = vld [vmem:[%s11298_s28 + $0x152c] ss:$56 sps:$4 sm:$0xff]  }
 0x720   : > { %7658 = vmatpush1.bf16.msra.mxu0 %v10355_v18  ;;  %v10433_v18 = vld [vmem:[%s11298_s28 + $0x1370] ss:$56 sps:$4 sm:$0xff]  }
 0x721   : > { %7511 = vmatpush1.bf16.msra.mxu1 %v10358_v23  ;;  %7668 = vmatprep.subr.bf16.mxu0 %v10363_v20  ;;  %v10436_v23 = vld [vmem:[%s11298_s28 + $0x1528] ss:$56 sps:$4 sm:$0xff]   ;;  %v10441_v20 = vld [vmem:[%s11298_s28 + $0x13e4] ss:$56 sps:$4 sm:$0xff]  }
 0x722   : > { %7512 = vmatprep.subr.bf16.mxu1 %v10366_v22  ;;  %v10444_v22 = vld [vmem:[%s11298_s28 + $0x159c] ss:$56 sps:$4 sm:$0xff]  }
 0x723   : > { %7660 = vmatmul.mubr.bf16.vlgmr.msra.gmra.mrb[20].mxu0 %v11502_v54  ;;  %v10376_v54 = vld [vmem:[%s11298_s28 + $0x10c8] ss:$56 sps:$4 sm:$0xff]  }
 0x724   : > { %7669 = vmatpush1.bf16.msra.mxu0 %v10361_v25  ;;  %7700 = vmatprep.mubr.bf16.mxu0 %v11437_v46  ;;  %v10384_v46 = vld [vmem:[%s11298_s28 + $0x113c] ss:$56 sps:$4 sm:$0xff]   ;;  %v10439_v25 = vld [vmem:[%s11298_s28 + $0x13e0] ss:$56 sps:$4 sm:$0xff]  }
 0x725   : > { %7513 = vmatpush1.bf16.msra.mxu1 %v10364_v28  ;;  %7670 = vmatprep.subr.bf16.mxu0 %v10369_v29  ;;  %v10442_v28 = vld [vmem:[%s11298_s28 + $0x1598] ss:$56 sps:$4 sm:$0xff]   ;;  %v10447_v29 = vld [vmem:[%s11298_s28 + $0x1454] ss:$56 sps:$4 sm:$0xff]  }
 0x726   : > { %7514 = vmatprep.subr.bf16.mxu1 %v10372_v30  ;;  %v10450_v30 = vld [vmem:[%s11298_s28 + $0x160c] ss:$56 sps:$4 sm:$0xff]  }
 0x728   : > { %7671 = vmatpush1.bf16.msra.mxu0 %v10367_v32  ;;  %v10445_v32 = vld [vmem:[%s11298_s28 + $0x1450] ss:$56 sps:$4 sm:$0xff]  }
 0x729   : > { %7515 = vmatpush1.bf16.msra.mxu1 %v10370_v33  ;;  %7672 = vmatprep.subr.bf16.mxu0 %v10375_v34  ;;  %v10448_v33 = vld [vmem:[%s11298_s28 + $0x1608] ss:$56 sps:$4 sm:$0xff]   ;;  %v10453_v34 = vld [vmem:[%s11298_s28 + $0x14c4] ss:$56 sps:$4 sm:$0xff]  }
 0x72a   : > { %7516 = vmatprep.subr.bf16.mxu1 %v10378_v36  ;;  %v10456_v36 = vld [vmem:[%s11298_s28 + $0x167c] ss:$56 sps:$4 sm:$0xff]  }
 0x72c   : > { %7673 = vmatpush1.bf16.msra.mxu0 %v10373_v37  ;;  %v10451_v37 = vld [vmem:[%s11298_s28 + $0x14c0] ss:$56 sps:$4 sm:$0xff]  }
 0x72d   : > { %7517 = vmatpush1.bf16.msra.mxu1 %v10376_v54  ;;  %7674 = vmatprep.subr.bf16.mxu0 %v10381_v38  ;;  %v10454_v54 = vld [vmem:[%s11298_s28 + $0x1678] ss:$56 sps:$4 sm:$0xff]   ;;  %v10459_v38 = vld [vmem:[%s11298_s28 + $0x1534] ss:$56 sps:$4 sm:$0xff]  }
 0x72e   : > { %7518 = vmatprep.subr.bf16.mxu1 %v10384_v46  ;;  %v10462_v46 = vld [vmem:[%s11298_s28 + $0x16ec] ss:$56 sps:$4 sm:$0xff]  }
 0x730   : > { %7675 = vmatpush1.bf16.msra.mxu0 %v10379_v39  ;;  %v10457_v39 = vld [vmem:[%s11298_s28 + $0x1530] ss:$56 sps:$4 sm:$0xff]  }
 0x731   : > { %7519 = vmatpush1.bf16.msra.mxu1 %v10382_v40  ;;  %7676 = vmatprep.subr.bf16.mxu0 %v10387_v41  ;;  %v10460_v40 = vld [vmem:[%s11298_s28 + $0x16e8] ss:$56 sps:$4 sm:$0xff]   ;;  %v10465_v41 = vld [vmem:[%s11298_s28 + $0x15a4] ss:$56 sps:$4 sm:$0xff]  }
 0x732   : > { %7520 = vmatprep.subr.bf16.mxu1 %v10390_v42  ;;  %v10468_v42 = vld [vmem:[%s11298_s28 + $0x175c] ss:$56 sps:$4 sm:$0xff]  }
 0x734   : > { %7677 = vmatpush1.bf16.msra.mxu0 %v10385_v43  ;;  %v10542_v43 = vld [vmem:[%s11751_s23] sm:$0xff] }
 0x735   : > { %7521 = vmatpush1.bf16.msra.mxu1 %v10388_v44  ;;  %7678 = vmatprep.subr.bf16.mxu0 %v10393_v45  ;;  %v2079_v44 = vrot.slane %v10542_v43, %v834_v55  ;;  %v10463_v45 = vld [vmem:[%s11298_s28 + $0x15a0] ss:$56 sps:$4 sm:$0xff]   ;;  %v10469_v55 = vld [vmem:[%s11298_s28 + $0x1610] ss:$56 sps:$4 sm:$0xff]  }
 0x736   : > { %7522 = vmatprep.subr.bf16.mxu1 %v10396_v47  ;;  %v2083_v47 = vrot.slane %v10542_v43, %v838_v27  ;;  %v10477_v27 = vld [vmem:[%s11298_s28 + $0x1684] ss:$56 sps:$4 sm:$0xff]   ;;  %v10526_v43 = vld [vmem:[%s11298_s28 + $0x1bb8] ss:$56 sps:$4 sm:$0xff]  }
 0x738   : > { %7679 = vmatpush1.bf16.msra.mxu0 %v10391_v48  ;;  %v10466_v48 = vld [vmem:[%s11298_s28 + $0x1758] ss:$56 sps:$4 sm:$0xff]  }
 0x739   : > { %7523 = vmatpush1.bf16.msra.mxu1 %v10394_v50  ;;  %7680 = vmatprep.subr.bf16.mxu0 %v10399_v51  ;;  %v10471_v50 = vld [vmem:[%s11298_s28 + $0x1614] ss:$56 sps:$4 sm:$0xff]  }
 0x73a   : > { %7524 = vmatprep.subr.bf16.mxu1 %v10402_v10 }
 0x73c   : > { %7681 = vmatpush1.bf16.msra.mxu0 %v10397_v53 }
 0x73d   : > { %7525 = vmatpush1.bf16.msra.mxu1 %v10400_v56  ;;  %7682 = vmatprep.subr.bf16.mxu0 %v10405_v57 }
 0x73e   : > { %7526 = vmatprep.subr.bf16.mxu1 %v10408_v58  ;;  %v10480_v58 = vld [vmem:[%s11298_s28 + $0x183c] ss:$56 sps:$4 sm:$0xff]  }
 0x740   : > { %7683 = vmatpush1.bf16.msra.mxu0 %v10403_v59  ;;  %v10475_v59 = vld [vmem:[%s11298_s28 + $0x1680] ss:$56 sps:$4 sm:$0xff]  }
 0x741   : > { %7527 = vmatpush1.bf16.msra.mxu1 %v10406_v6  ;;  %7684 = vmatprep.subr.bf16.mxu0 %v10411_v60  ;;  %v10478_v6 = vld [vmem:[%s11298_s28 + $0x1838] ss:$56 sps:$4 sm:$0xff]   ;;  %v10483_v60 = vld [vmem:[%s11298_s28 + $0x16f4] ss:$56 sps:$4 sm:$0xff]  }
 0x742   : > { %7528 = vmatprep.subr.bf16.mxu1 %v10414_v61  ;;  %v10486_v61 = vld [vmem:[%s11298_s28 + $0x18ac] ss:$56 sps:$4 sm:$0xff]  }
 0x744   : > { %7685 = vmatpush1.bf16.msra.mxu0 %v10409_v62  ;;  %v10481_v62 = vld [vmem:[%s11298_s28 + $0x16f0] ss:$56 sps:$4 sm:$0xff]  }
 0x745   : > { %7529 = vmatpush1.bf16.msra.mxu1 %v10412_v19  ;;  %7686 = vmatprep.subr.bf16.mxu0 %v10417_v63  ;;  %v12326_v19 = vld [vmem:[%s11751_s23 + $0x8] sm:$0x3f] }
 0x746   : > { %7530 = vmatprep.subr.bf16.mxu1 %v10420_v5  ;;  %v10484_v63 = vld [vmem:[%s11298_s28 + $0x18a8] ss:$56 sps:$4 sm:$0xff]   ;;  %v10489_v5 = vld [vmem:[%s11298_s28 + $0x1764] ss:$56 sps:$4 sm:$0xff]  }
 0x748   : > { %7687 = vmatpush1.bf16.msra.mxu0 %v10415_v2  ;;  %v10492_v2 = vld [vmem:[%s11298_s28 + $0x191c] ss:$56 sps:$4 sm:$0xff]  }
 0x749   : > { %7531 = vmatpush1.bf16.msra.mxu1 %v10418_v7  ;;  %7688 = vmatprep.subr.bf16.mxu0 %v10423_v8  ;;  %v2087_v7 = vrot.slane %v12326_v19, %v11386_v1  ;;  %v2091_v8 = vrot.slane %v12326_v19, %v11391_v3  ;;  %v10493_v3 = vld [vmem:[%s11298_s28 + $0x17d0] ss:$56 sps:$4 sm:$0xff]  }
 0x74a   : > { %7532 = vmatprep.subr.bf16.mxu1 %v10426_v9  ;;  %v10487_v9 = vld [vmem:[%s11298_s28 + $0x1760] ss:$56 sps:$4 sm:$0xff]  }
 0x74c   : > { %7689 = vmatpush1.bf16.msra.mxu0 %v10421_v11  ;;  %v10490_v11 = vld [vmem:[%s11298_s28 + $0x1918] ss:$56 sps:$4 sm:$0xff]  }
 0x74d   : > { %7533 = vmatpush1.bf16.msra.mxu1 %v10424_v12  ;;  %7690 = vmatprep.subr.bf16.mxu0 %v10429_v13  ;;  %v10495_v12 = vld [vmem:[%s11298_s28 + $0x17d4] ss:$56 sps:$4 sm:$0xff]  }
 0x74e   : > { %7534 = vmatprep.subr.bf16.mxu1 %v10432_v35  ;;  %v10498_v35 = vld [vmem:[%s11298_s28 + $0x198c] ss:$56 sps:$4 sm:$0xff]  }
 0x750   : > { %7691 = vmatpush1.bf16.msra.mxu0 %v10427_v15 }
 0x751   : > { %7535 = vmatpush1.bf16.msra.mxu1 %v10430_v16  ;;  %7692 = vmatprep.subr.bf16.mxu0 %v10435_v17 }
 0x752   : > { %7545 = vmatprep.subr.bf16.mxu1 %v10438_v21 }
 0x754   : > { %7537 = vmatmul.mubr.bf16.vlgmr.msra.gmra.mrb[20].mxu1 %v11441_v49  ;;  %7693 = vmatpush1.bf16.msra.mxu0 %v10433_v18  ;;  %v10496_v18 = vld [vmem:[%s11298_s28 + $0x1988] ss:$56 sps:$4 sm:$0xff]  }
 0x755   : > { %7546 = vmatpush1.bf16.msra.mxu1 %v10436_v23  ;;  %7577 = vmatprep.mubr.bf16.mxu1 %v11446_v52  ;;  %v10501_v23 = vld [vmem:[%s11298_s28 + $0x1844] ss:$56 sps:$4 sm:$0xff]  }
 0x756   : > { %7694 = vmatprep.subr.bf16.mxu0 %v10441_v20  ;;  %7547 = vmatprep.subr.bf16.mxu1 %v10444_v22  ;;  %v10504_v20 = vld [vmem:[%s11298_s28 + $0x19fc] ss:$56 sps:$4 sm:$0xff]   ;;  %v10499_v22 = vld [vmem:[%s11298_s28 + $0x1840] ss:$56 sps:$4 sm:$0xff]  }
 0x758   : > { %7695 = vmatpush1.bf16.msra.mxu0 %v10439_v25  ;;  %v10502_v25 = vld [vmem:[%s11298_s28 + $0x19f8] ss:$56 sps:$4 sm:$0xff]  }
 0x759   : > { %7548 = vmatpush1.bf16.msra.mxu1 %v10442_v28  ;;  %7696 = vmatprep.subr.bf16.mxu0 %v10447_v29  ;;  %v10507_v28 = vld [vmem:[%s11298_s28 + $0x18b4] ss:$56 sps:$4 sm:$0xff]  }
 0x75a   : > { %7549 = vmatprep.subr.bf16.mxu1 %v10450_v30  ;;  %v10510_v29 = vld [vmem:[%s11298_s28 + $0x1a6c] ss:$56 sps:$4 sm:$0xff]   ;;  %v10505_v30 = vld [vmem:[%s11298_s28 + $0x18b0] ss:$56 sps:$4 sm:$0xff]  }
 0x75c   : > { %7697 = vmatpush1.bf16.msra.mxu0 %v10445_v32  ;;  %v10508_v32 = vld [vmem:[%s11298_s28 + $0x1a68] ss:$56 sps:$4 sm:$0xff]  }
 0x75d   : > { %7550 = vmatpush1.bf16.msra.mxu1 %v10448_v33  ;;  %7698 = vmatprep.subr.bf16.mxu0 %v10453_v34  ;;  %v10513_v33 = vld [vmem:[%s11298_s28 + $0x1924] ss:$56 sps:$4 sm:$0xff]  }
 0x75e   : > { %7551 = vmatprep.subr.bf16.mxu1 %v10456_v36  ;;  %v10516_v34 = vld [vmem:[%s11298_s28 + $0x1adc] ss:$56 sps:$4 sm:$0xff]   ;;  %v10511_v36 = vld [vmem:[%s11298_s28 + $0x1920] ss:$56 sps:$4 sm:$0xff]  }
 0x760   : > { %7699 = vmatpush1.bf16.msra.mxu0 %v10451_v37  ;;  %v10514_v37 = vld [vmem:[%s11298_s28 + $0x1ad8] ss:$56 sps:$4 sm:$0xff]  }
 0x761   : > { %7552 = vmatpush1.bf16.msra.mxu1 %v10454_v54  ;;  %7709 = vmatprep.subr.bf16.mxu0 %v10459_v38  ;;  %v10519_v54 = vld [vmem:[%s11298_s28 + $0x1994] ss:$56 sps:$4 sm:$0xff]  }
 0x762   : > { %7553 = vmatprep.subr.bf16.mxu1 %v10462_v46  ;;  %v10522_v38 = vld [vmem:[%s11298_s28 + $0x1b4c] ss:$56 sps:$4 sm:$0xff]   ;;  %v10517_v46 = vld [vmem:[%s11298_s28 + $0x1990] ss:$56 sps:$4 sm:$0xff]  }
 0x763   : > { %7701 = vmatmul.mubr.bf16.vlgmr.msra.gmra.mrb[20].mxu0 %v11441_v49  ;;  %v10474_v49 = vld [vmem:[%s11298_s28 + $0x17cc] ss:$56 sps:$4 sm:$0xff]  }
 0x764   : > { %7710 = vmatpush1.bf16.msra.mxu0 %v10457_v39  ;;  %7741 = vmatprep.mubr.bf16.mxu0 %v11446_v52  ;;  %v10520_v39 = vld [vmem:[%s11298_s28 + $0x1b48] ss:$56 sps:$4 sm:$0xff]  }
 0x765   : > { %7554 = vmatpush1.bf16.msra.mxu1 %v10460_v40  ;;  %7711 = vmatprep.subr.bf16.mxu0 %v10465_v41  ;;  %v10525_v40 = vld [vmem:[%s11298_s28 + $0x1a04] ss:$56 sps:$4 sm:$0xff]  }
 0x766   : > { %7555 = vmatprep.subr.bf16.mxu1 %v10468_v42  ;;  %v10528_v41 = vld [vmem:[%s11298_s28 + $0x1bbc] ss:$56 sps:$4 sm:$0xff]   ;;  %v10523_v42 = vld [vmem:[%s11298_s28 + $0x1a00] ss:$56 sps:$4 sm:$0xff]  }
 0x767   : > { %v7251_v52 = vpop.f32.mrb[16].mxu1 }
 0x768   : > { %v8968_v51 = vadd.f32 %v7251_v52, %v2079_v44  ;;  %v7253_v10 = vpop.f32.mrb[17].mxu1  ;;  %7712 = vmatpush1.bf16.msra.mxu0 %v10463_v45  ;;  %v10531_v44 = vld [vmem:[%s11298_s28 + $0x1a74] ss:$56 sps:$4 sm:$0xff]   ;;  %v10529_v45 = vld [vmem:[%s11298_s28 + $0x1a70] ss:$56 sps:$4 sm:$0xff]  }
 0x769   : > { %v8969_v53 = vadd.f32 %v7253_v10, %v2083_v47  ;;  %v7255_v56 = vpop.f32.mrb[18].mxu1  ;;  %7556 = vmatpush1.bf16.msra.mxu1 %v10466_v48  ;;  %7713 = vmatprep.subr.bf16.mxu0 %v10471_v50  ;;  %v10534_v47 = vld [vmem:[%s11298_s28 + $0x1ae4] ss:$56 sps:$4 sm:$0xff]   ;;  %v10532_v48 = vld [vmem:[%s11298_s28 + $0x1ae0] ss:$56 sps:$4 sm:$0xff]   ;;  %v2095_v10 = vrot.slane %v12326_v19, %v11481_v31 }
 0x76a   : > { %7756 = vst [vmem:[%s11767_s29 + $0x30] sm:$0xff] %v8968_v51  ;;  %v7256_v57 = vpop.f32.mrb[19].mxu1  ;;  %7557 = vmatprep.subr.bf16.mxu1 %v10474_v49  ;;  %v10537_v50 = vld [vmem:[%s11298_s28 + $0x1b54] ss:$56 sps:$4 sm:$0xff]   ;;  %v10535_v49 = vld [vmem:[%s11298_s28 + $0x1b50] ss:$56 sps:$4 sm:$0xff]  }
 0x76b   : > { %7757 = vst [vmem:[%s11767_s29 + $0x38] sm:$0xff] %v8969_v53  ;;  %v10540_v52 = vld [vmem:[%s11298_s28 + $0x1bc4] ss:$56 sps:$4 sm:$0xff]   ;;  %v10538_v51 = vld [vmem:[%s11298_s28 + $0x1bc0] ss:$56 sps:$4 sm:$0xff]  }
 0x76c   : > { %7714 = vmatpush1.bf16.msra.mxu0 %v10469_v55  ;;  %v2099_v55 = vrot.slane %v12326_v19, %v11394_v4 }
 0x76d   : > { %7558 = vmatpush1.bf16.msra.mxu1 %v10472_v0  ;;  %7715 = vmatprep.subr.bf16.mxu0 %v10477_v27 }
 0x76e   : > { %7559 = vmatprep.subr.bf16.mxu1 %v10480_v58 }
 0x770   : > { %7716 = vmatpush1.bf16.msra.mxu0 %v10475_v59  ;;  %v2103_v59 = vrot.slane %v12326_v19, %v11415_v24 }
 0x771   : > { %7560 = vmatpush1.bf16.msra.mxu1 %v10478_v6  ;;  %7717 = vmatprep.subr.bf16.mxu0 %v10483_v60 }
 0x772   : > { %7561 = vmatprep.subr.bf16.mxu1 %v10486_v61 }
 0x774   : > { %7718 = vmatpush1.bf16.msra.mxu0 %v10481_v62 }
 0x775   : > { %7562 = vmatpush1.bf16.msra.mxu1 %v10484_v63  ;;  %7719 = vmatprep.subr.bf16.mxu0 %v10489_v5 }
 0x776   : > { %v7415_v13 = vpop.f32.mrb[16].mxu0  ;;  %7563 = vmatprep.subr.bf16.mxu1 %v10492_v2 }
 0x777   : > { %v8970_v15 = vadd.f32 %v7415_v13, %v2087_v7  ;;  %v7417_v1 = vpop.f32.mrb[17].mxu0 }
 0x778   : > { %v8971_v16 = vadd.f32 %v7417_v1, %v2091_v8  ;;  %v7419_v17 = vpop.f32.mrb[18].mxu0  ;;  %7720 = vmatpush1.bf16.msra.mxu0 %v10487_v9 }
 0x779   : > { %7758 = vst [vmem:[%s11767_s29 + $0x40] sm:$0xff] %v8970_v15  ;;  %v7420_v21 = vpop.f32.mrb[19].mxu0  ;;  %7564 = vmatpush1.bf16.msra.mxu1 %v10490_v11  ;;  %7721 = vmatprep.subr.bf16.mxu0 %v10495_v12 }
 0x77a   : > { %7759 = vst [vmem:[%s11767_s29 + $0x48] sm:$0xff] %v8971_v16  ;;  %7565 = vmatprep.subr.bf16.mxu1 %v10498_v35 }
 0x77c   : > { %7722 = vmatpush1.bf16.msra.mxu0 %v10493_v3 }
 0x77d   : > { %7566 = vmatpush1.bf16.msra.mxu1 %v10496_v18  ;;  %7723 = vmatprep.subr.bf16.mxu0 %v10501_v23 }
 0x77e   : > { %7567 = vmatprep.subr.bf16.mxu1 %v10504_v20 }
 0x780   : > { %7724 = vmatpush1.bf16.msra.mxu0 %v10499_v22 }
 0x781   : > { %7568 = vmatpush1.bf16.msra.mxu1 %v10502_v25  ;;  %7725 = vmatprep.subr.bf16.mxu0 %v10507_v28 }
 0x782   : > { %7569 = vmatprep.subr.bf16.mxu1 %v10510_v29 }
 0x784   : > { %7726 = vmatpush1.bf16.msra.mxu0 %v10505_v30 }
 0x785   : > { %7570 = vmatpush1.bf16.msra.mxu1 %v10508_v32  ;;  %7727 = vmatprep.subr.bf16.mxu0 %v10513_v33 }
 0x786   : > { %7571 = vmatprep.subr.bf16.mxu1 %v10516_v34 }
 0x788   : > { %7728 = vmatpush1.bf16.msra.mxu0 %v10511_v36 }
 0x789   : > { %7572 = vmatpush1.bf16.msra.mxu1 %v10514_v37  ;;  %7729 = vmatprep.subr.bf16.mxu0 %v10519_v54 }
 0x78a   : > { %7573 = vmatprep.subr.bf16.mxu1 %v10522_v38 }
 0x78c   : > { %7730 = vmatpush1.bf16.msra.mxu0 %v10517_v46 }
 0x78d   : > { %7574 = vmatpush1.bf16.msra.mxu1 %v10520_v39  ;;  %7731 = vmatprep.subr.bf16.mxu0 %v10525_v40 }
 0x78e   : > { %7575 = vmatprep.subr.bf16.mxu1 %v10528_v41 }
 0x790   : > { %7732 = vmatpush1.bf16.msra.mxu0 %v10523_v42 }
 0x791   : > { %7576 = vmatpush1.bf16.msra.mxu1 %v10526_v43  ;;  %7733 = vmatprep.subr.bf16.mxu0 %v10531_v44 }
 0x794   : > { %7578 = vmatmul.mubr.bf16.vlgmr.msra.gmra.mrb[20].mxu1 %v11526_v14  ;;  %7734 = vmatpush1.bf16.msra.mxu0 %v10529_v45 }
 0x795   : > { %7735 = vmatprep.subr.bf16.mxu0 %v10534_v47 }
 0x798   : > { %7736 = vmatpush1.bf16.msra.mxu0 %v10532_v48 }
 0x799   : > { %7737 = vmatprep.subr.bf16.mxu0 %v10537_v50 }
 0x79c   : > { %7738 = vmatpush1.bf16.msra.mxu0 %v10535_v49 }
 0x79d   : > { %7739 = vmatprep.subr.bf16.mxu0 %v10540_v52 }
 0x7a0   : > { %7740 = vmatpush1.bf16.msra.mxu0 %v10538_v51 }
 0x7a3   : > { %7742 = vmatmul.mubr.bf16.vlgmr.msra.gmra.mrb[20].mxu0 %v11526_v14  ;;  %v2107_v14 = vrot.slane %v12326_v19, %v11420_v26 }
 0x867   : > { %v7579_v53 = vpop.f32.mrb[20].mxu1 }
 0x868   : > { %v8972_v56 = vadd.f32 %v7579_v53, %v2095_v10  ;;  %v7581_v0 = vpop.f32.mrb[21].mxu1 }
 0x869   : > { %v8973_v27 = vadd.f32 %v7581_v0, %v2099_v55  ;;  %v7583_v57 = vpop.f32.mrb[22].mxu1 }
 0x86a   : > { %7760 = vst [vmem:[%s11767_s29 + $0x50] sm:$0xff] %v8972_v56  ;;  %v7584_v58 = vpop.f32.mrb[23].mxu1 }
 0x86b   : > { %7761 = vst [vmem:[%s11767_s29 + $0x58] sm:$0xff] %v8973_v27 }
 0x876   : > { %v7743_v31 = vpop.f32.mrb[20].mxu0 }
 0x877   : > { %v8974_v6 = vadd.f32 %v7743_v31, %v2103_v59  ;;  %v7745_v60 = vpop.f32.mrb[21].mxu0 }
 0x878   : > { %v8975_v4 = vadd.f32 %v7745_v60, %v2107_v14  ;;  %v7747_v61 = vpop.f32.mrb[22].mxu0 }
 0x879   : > { %7762 = vst [vmem:[%s11767_s29 + $0x60] sm:$0xff] %v8974_v6  ;;  %v7748_v62 = vpop.f32.mrb[23].mxu0 }
 0x87a   : > { %7763 = vst [vmem:[%s11767_s29 + $0x68] sm:$0xff] %v8975_v4 }
 0x87b PF: > { %s12460_s20 = sld [smem:[#allocation23_spill]]  ;;  %s12461_s6 = sld [smem:[#allocation24_spill]] }
 0x87c   : > { %s12462_s17 = smov %s10873_s18  ;;  %s12463_s18 = smov %s10877_s19 }
 0x881   : > { %p23_p5 = scmp.ge.s32.totalorder %s12460_s20, 4   ;;  %s12464_s19 = smov %s12461_s6 }
 0x883   :  { %25 = sbr.rel (!%p23_p5) target bundleno = 14 (0xe), region = 146 }
 0x88a   :  { %7786 = vsyncpa [#allocation3], 1 }
 0x88b   :  { %7788 = vsyncpa [#allocation3 + $0x1], 1 }
 0x88c   :  { %7789 = vsyncpa [#allocation5], 1 }
 0x88d   :  { %7790 = vsyncpa [#allocation8], 1 }
 0x88e   :  { %7791 = vsyncpa [#allocation11], 1 }
 0x88f   :  { %7792 = vsyncpa [#allocation14], 1 }

</bundles_post_ra>
